<compile_context>
chip_gen: v6e
topology: v6e:2x2x1
jax: 0.10.0
libtpu: 0.0.40
codegen_flags: <defaults>
</compile_context>

<pallas_src>
from functools import partial

import jax
import jax.numpy as jnp
from jax import lax
from jax.experimental import pallas as pl
from jax.experimental.pallas import tpu as pltpu

BN_EPS = 1e-5
LANES = 128


def _round_up(x, m):
    return (x + m - 1) // m * m


# ---------------------------------------------------------------------------
# In-kernel helpers
# ---------------------------------------------------------------------------
def _stage_halo(halo_ref, cur, up, dn, W):
    """Write the strip plus one image row of halo on each side (f32 scratch).

    Halo layout (rows):  [0, HALO) top pad (last W rows = row above strip),
    [HALO, HALO+R) strip, [HALO+R, HALO+R+W) row below strip.  The 8 extra
    pad rows at each end are only ever read under the w-edge masks, so they
    never need initialization."""
    HALO = W + 8
    rows = cur.shape[0]
    dt = halo_ref.dtype
    halo_ref[pl.ds(HALO - W, W), :] = up.astype(dt)
    halo_ref[pl.ds(HALO, rows), :] = cur.astype(dt)
    halo_ref[pl.ds(HALO + rows, W), :] = dn.astype(dt)


def _conv3x3_dy_split(halo_ref, w_ref, b_ref, W):
    """3x3 'same' conv of the staged strip as 3 accumulated MXU matmuls.

    Per-dy K-split (K = 3*ci_p): the full (rows, 9*ci_p) patch is never
    materialized; masks / staging stay f32, downcast once right before each
    dot."""
    HALO = W + 8
    rows = halo_ref.shape[0] - 2 * HALO
    col = lax.broadcasted_iota(jnp.int32, (rows, 1), 0) % W
    not_left = col >= 1            # (w-1) neighbour exists
    not_right = col <= W - 2       # (w+1) neighbour exists
    mdt = w_ref.dtype

    acc = jnp.zeros((rows, w_ref.shape[-1]), jnp.float32)
    for i, dy in enumerate((-1, 0, 1)):
        base = HALO + dy * W       # h-boundary absorbed by the zero halo rows
        left = jnp.where(not_left, halo_ref[pl.ds(base - 1, rows), :], 0.0)
        mid = halo_ref[pl.ds(base, rows), :]
        right = jnp.where(not_right, halo_ref[pl.ds(base + 1, rows), :], 0.0)
        patch = jnp.concatenate([left, mid, right], axis=-1).astype(mdt)
        acc = acc + jnp.dot(patch, w_ref[i], preferred_element_type=jnp.float32)
    return acc + b_ref[...]


def _write_partial_stats(st_ref, y):
    """Per-strip [sum, sum_sq] over rows -> one-pass BN statistics (f32)."""
    s = jnp.sum(y, axis=0, keepdims=True)
    ss = jnp.sum(y * y, axis=0, keepdims=True)
    st_ref[...] = jnp.concatenate([s, ss], axis=0).reshape(st_ref.shape)


# ---------------------------------------------------------------------------
# Kernels
# ---------------------------------------------------------------------------
def _conv1_kernel(W, x_ref, xu_ref, xd_ref, w_ref, b_ref, y_ref, st_ref, halo_ref):
    s = pl.program_id(1)
    is_top = s == 0
    is_bot = s == pl.num_programs(1) - 1
    up = jnp.where(is_top, 0.0, xu_ref[...].astype(jnp.float32))
    dn = jnp.where(is_bot, 0.0, xd_ref[...].astype(jnp.float32))
    _stage_halo(halo_ref, x_ref[...].astype(jnp.float32), up, dn, W)
    acc = _conv3x3_dy_split(halo_ref, w_ref, b_ref, W)
    y_ref[...] = acc.astype(y_ref.dtype)          # bf16 to HBM
    _write_partial_stats(st_ref, acc)             # stats from the f32 acc


def _bn_relu_conv2_kernel(W, y1_ref, y1u_ref, y1d_ref, sc_ref, sh_ref, w_ref,
                          b_ref, y2_ref, st_ref, halo_ref):
    s = pl.program_id(1)
    is_top = s == 0
    is_bot = s == pl.num_programs(1) - 1

    def bn_relu(v):                                # folded BN (one FMA) + ReLU, f32
        return jnp.maximum(v.astype(jnp.float32) * sc_ref[...] + sh_ref[...], 0.0)

    # Zero-padding of conv2's input is in the post-BN/ReLU domain -> zero last.
    up = jnp.where(is_top, 0.0, bn_relu(y1u_ref[...]))
    dn = jnp.where(is_bot, 0.0, bn_relu(y1d_ref[...]))
    _stage_halo(halo_ref, bn_relu(y1_ref[...]), up, dn, W)
    acc = _conv3x3_dy_split(halo_ref, w_ref, b_ref, W)
    y2_ref[...] = acc.astype(y2_ref.dtype)
    _write_partial_stats(st_ref, acc)


def _bn_relu_residual_kernel(cout, y2_ref, x_ref, sc_ref, sh_ref, wr_ref,
                             br_ref, o_ref):
    a = jnp.maximum(y2_ref[...].astype(jnp.float32) * sc_ref[...] + sh_ref[...], 0.0)
    res = jnp.dot(x_ref[...], wr_ref[...],
                  preferred_element_type=jnp.float32) + br_ref[...]
    # Narrow (true-Cout) store: padded lanes never reach HBM.
    o_ref[...] = (a + res)[:, :cout].astype(o_ref.dtype)


# ---------------------------------------------------------------------------
# Host-side packing / wrapper
# ---------------------------------------------------------------------------
def _pack_conv3x3(w, ci_p, co_p, dtype):
    """Torch (Co, Ci, 3, 3) conv weight -> (3, 3*ci_p, co_p) per-dy im2col weight."""
    co, ci = w.shape[0], w.shape[1]
    wt = jnp.transpose(w.astype(jnp.float32), (2, 3, 1, 0)).reshape(9, ci, co)
    wt = jnp.pad(wt, ((0, 0), (0, ci_p - ci), (0, co_p - co)))
    return wt.reshape(3, 3 * ci_p, co_p).astype(dtype)


def _pad_row(v, c_p):
    v = v.astype(jnp.float32).reshape(1, -1)
    return jnp.pad(v, ((0, 0), (0, c_p - v.shape[1])))


def _fold_bn(partial_stats, gamma, beta, count):
    """(N*S, 2, C) per-strip [sum, sum_sq] -> fused per-channel scale/shift."""
    # TODO(synk): PyTorch's running_mean/running_var buffer update (training
    # side effect) is not modelled; forward output uses batch stats only.
    # NOTE: one-pass E[x^2]-E[x]^2 in f32 can lose precision for activations
    # with |mean| >> std; acceptable here, clamped at 0.
    s = jnp.sum(partial_stats[:, 0, :], axis=0, keepdims=True)
    ss = jnp.sum(partial_stats[:, 1, :], axis=0, keepdims=True)
    mean = s / count
    var = jnp.maximum(ss / count - mean * mean, 0.0)
    scale = gamma * lax.rsqrt(var + BN_EPS)
    shift = beta - mean * scale
    return scale, shift


def _vmem_limit_bytes():
    """Generation-aware scoped VMEM limit: ~96 MiB v5e/v6e, ~48 MiB v7x."""
    cap = 64 << 20
    try:
        info = pltpu.get_tpu_info()
        cap = int(getattr(info, "vmem_capacity_bytes", cap)) or cap
    except Exception:
        pass
    return int(min(cap * 3 // 4, 96 << 20))


def _choose_strip_h(H, W, c_p_max, budget_bytes):
    """Largest divisor of H whose per-strip footprint fits the budget,
    preferring >= 2 strips per image (megacore)."""
    divisors = sorted((d for d in range(1, H + 1) if H % d == 0), reverse=True)

    def footprint(sh):
        rows = sh * W
        halo = (rows + 2 * (W + 8)) * c_p_max * 4          # f32 halo scratch
        io = 6 * rows * c_p_max * 2                         # in/out blocks, 2-buffered
        wts = 2 * 9 * c_p_max * c_p_max * 2                 # packed conv weights
        return halo + io + wts

    fitting = [d for d in divisors if footprint(d) <= budget_bytes] or [divisors[-1]]
    multi = [d for d in fitting if H // d >= 2]
    return multi[0] if multi else fitting[0]


def res_conv_block_nhwc(x_nhwc, params, matmul_dtype=jnp.bfloat16):
    """Pallas Res_Conv_Block forward on NHWC input; returns NHWC output."""
    N, H, W, Cin = x_nhwc.shape
    Cout = params["res_w"].shape[0]
    if W % 8 != 0:
        raise ValueError("W must be a multiple of 8 (sublane tiling of row blocks)")
    HW, M = H * W, N * H * W

    ci_p = _round_up(Cin, LANES)      # padded in channels (lane-dense MXU operand)
    cm_p = ci_p                       # conv1 keeps the channel count (in_dim -> in_dim)
    co_p = _round_up(Cout, LANES)     # padded out channels
    act_bytes = jnp.dtype(matmul_dtype).itemsize

    vmem_limit = _vmem_limit_bytes()
    strip_h = _choose_strip_h(H, W, max(ci_p, co_p), vmem_limit // 4)
    S = H // strip_h                  # strips per image
    R = strip_h * W                   # rows per strip (multiple of 8 since W % 8 == 0)
    HALO = W + 8

    # ---- one-time packing of input / parameters ---------------------------
    # x / y1 stay lane-padded in HBM: the zero lanes must be real zeros for
    # the halo staging (keeping the padding VMEM-only would require re-zeroing
    # pad lanes every parallel step, which costs as much as staging them).
    x_p = jnp.pad(x_nhwc.astype(jnp.float32).reshape(M, Cin),
                  ((0, 0), (0, ci_p - Cin))).astype(matmul_dtype)
    w1 = _pack_conv3x3(params["conv1_w"], ci_p, cm_p, matmul_dtype)
    b1 = _pad_row(params["conv1_b"], cm_p)
    g1, be1 = _pad_row(params["bn1_g"], cm_p), _pad_row(params["bn1_b"], cm_p)
    w2 = _pack_conv3x3(params["conv2_w"], cm_p, co_p, matmul_dtype)
    b2 = _pad_row(params["conv2_b"], co_p)
    g2, be2 = _pad_row(params["bn2_g"], co_p), _pad_row(params["bn2_b"], co_p)
    wr = jnp.pad(params["res_w"][:, :, 0, 0].astype(jnp.float32).T,
                 ((0, ci_p - Cin), (0, co_p - Cout))).astype(matmul_dtype)
    br = _pad_row(params["res_b"], co_p)

    cparams = pltpu.CompilerParams(
        dimension_semantics=("parallel", "parallel"),
        vmem_limit_bytes=vmem_limit)

    # ---- BlockSpecs ---------------------------------------------------------
    def cur_spec(c):                       # one strip of rows
        return pl.BlockSpec((R, c), lambda n, s: (n * S + s, 0))

    def up_spec(c):                        # image row just above the strip (clamped)
        return pl.BlockSpec(
            (W, c), lambda n, s: (n * H + jnp.maximum(s * strip_h - 1, 0), 0))

    def dn_spec(c):                        # image row just below the strip (clamped)
        return pl.BlockSpec(
            (W, c), lambda n, s: (n * H + jnp.minimum((s + 1) * strip_h, H - 1), 0))

    def full_spec(shp):
        return pl.BlockSpec(shp, lambda n, s: (0,) * len(shp))

    def stats_spec(c):
        return pl.BlockSpec((1, 2, c), lambda n, s: (n * S + s, 0, 0))

    # ---- pass 1: conv1 + partial BN1 statistics ----------------------------
    y1, st1 = pl.pallas_call(
        partial(_conv1_kernel, W),
        grid=(N, S),
        in_specs=[cur_spec(ci_p), up_spec(ci_p), dn_spec(ci_p),
                  full_spec(w1.shape), full_spec(b1.shape)],
        out_specs=[cur_spec(cm_p), stats_spec(cm_p)],
        out_shape=[jax.ShapeDtypeStruct((M, cm_p), matmul_dtype),
                   jax.ShapeDtypeStruct((N * S, 2, cm_p), jnp.float32)],
        scratch_shapes=[pltpu.VMEM((R + 2 * HALO, ci_p), jnp.float32)],
        compiler_params=cparams,
        cost_estimate=pl.CostEstimate(
            flops=2 * M * 9 * ci_p * cm_p + 4 * M * cm_p,
            transcendentals=0,
            bytes_accessed=int(M * ci_p * act_bytes + w1.size * act_bytes
                               + M * cm_p * act_bytes + 4 * N * S * 2 * cm_p)),
    )(x_p, x_p, x_p, w1, b1)
    scale1, shift1 = _fold_bn(st1, g1, be1, M)

    # ---- pass 2: BN1 + ReLU + conv2 + partial BN2 statistics ---------------
    y2, st2 = pl.pallas_call(
        partial(_bn_relu_conv2_kernel, W),
        grid=(N, S),
        in_specs=[cur_spec(cm_p), up_spec(cm_p), dn_spec(cm_p),
                  full_spec(scale1.shape), full_spec(shift1.shape),
                  full_spec(w2.shape), full_spec(b2.shape)],
        out_specs=[cur_spec(co_p), stats_spec(co_p)],
        out_shape=[jax.ShapeDtypeStruct((M, co_p), matmul_dtype),
                   jax.ShapeDtypeStruct((N * S, 2, co_p), jnp.float32)],
        scratch_shapes=[pltpu.VMEM((R + 2 * HALO, cm_p), jnp.float32)],
        compiler_params=cparams,
        cost_estimate=pl.CostEstimate(
            flops=2 * M * 9 * cm_p * co_p + 3 * M * cm_p + 4 * M * co_p,
            transcendentals=0,
            bytes_accessed=int(M * cm_p * act_bytes + w2.size * act_bytes
                               + M * co_p * act_bytes + 4 * N * S * 2 * co_p)),
    )(y1, y1, y1, scale1, shift1, w2, b2)
    scale2, shift2 = _fold_bn(st2, g2, be2, M)

    # ---- pass 3: BN2 + ReLU + 1x1 residual conv + add (narrow store) -------
    out_flat = pl.pallas_call(
        partial(_bn_relu_residual_kernel, Cout),
        grid=(N, S),
        in_specs=[cur_spec(co_p), cur_spec(ci_p),
                  full_spec(scale2.shape), full_spec(shift2.shape),
                  full_spec(wr.shape), full_spec(br.shape)],
        out_specs=pl.BlockSpec((R, Cout), lambda n, s: (n * S + s, 0)),
        out_shape=jax.ShapeDtypeStruct((M, Cout), x_nhwc.dtype),
        compiler_params=cparams,
        cost_estimate=pl.CostEstimate(
            flops=2 * M * ci_p * co_p + 4 * M * co_p,
            transcendentals=0,
            bytes_accessed=int(M * co_p * act_bytes + M * ci_p * act_bytes
                               + wr.size * act_bytes + 4 * M * Cout)),
    )(y2, x_p, scale2, shift2, wr, br)

    return out_flat.reshape(N, H, W, Cout)


def res_conv_block(x_nchw, params, matmul_dtype=jnp.bfloat16):
    """NCHW entry matching the PyTorch module.  Prefer res_conv_block_nhwc to
    avoid the two full-tensor layout transposes (extra HBM round trips)."""
    x_nhwc = jnp.transpose(x_nchw, (0, 2, 3, 1))
    out = res_conv_block_nhwc(x_nhwc, params, matmul_dtype=matmul_dtype)
    return jnp.transpose(out, (0, 3, 1, 2))


# ---------------------------------------------------------------------------
# Pure-JAX reference (faithful to the PyTorch module, training-mode BN)
# ---------------------------------------------------------------------------
def ref_forward(x, p):
    dn = ("NCHW", "OIHW", "NCHW")

    def conv(x, w, b, pad):
        y = lax.conv_general_dilated(x, w, (1, 1), pad, dimension_numbers=dn)
        return y + b[None, :, None, None]

    def bn_relu(y, g, be):
        mean = jnp.mean(y, axis=(0, 2, 3), keepdims=True)
        var = jnp.mean((y - mean) ** 2, axis=(0, 2, 3), keepdims=True)
        yhat = (y - mean) / jnp.sqrt(var + BN_EPS)
        return jax.nn.relu(yhat * g[None, :, None, None] + be[None, :, None, None])

    y = bn_relu(conv(x, p["conv1_w"], p["conv1_b"], ((1, 1), (1, 1))),
                p["bn1_g"], p["bn1_b"])
    y = bn_relu(conv(y, p["conv2_w"], p["conv2_b"], ((1, 1), (1, 1))),
                p["bn2_g"], p["bn2_b"])
    y_res = conv(x, p["res_w"], p["res_b"], ((0, 0), (0, 0)))
    return y + y_res


if __name__ == "__main__":
    N, Cin, Cout, H, W = 2, 4, 8, 16, 16

    key = jax.random.PRNGKey(0)
    keys = jax.random.split(key, 11)
    params = {
        "conv1_w": jax.random.normal(keys[0], (Cin, Cin, 3, 3), jnp.float32) * 0.2,
        "conv1_b": jax.random.normal(keys[1], (Cin,), jnp.float32) * 0.1,
        "bn1_g": 1.0 + jax.random.normal(keys[2], (Cin,), jnp.float32) * 0.1,
        "bn1_b": jax.random.normal(keys[3], (Cin,), jnp.float32) * 0.1,
        "conv2_w": jax.random.normal(keys[4], (Cout, Cin, 3, 3), jnp.float32) * 0.2,
        "conv2_b": jax.random.normal(keys[5], (Cout,), jnp.float32) * 0.1,
        "bn2_g": 1.0 + jax.random.normal(keys[6], (Cout,), jnp.float32) * 0.1,
        "bn2_b": jax.random.normal(keys[7], (Cout,), jnp.float32) * 0.1,
        "res_w": jax.random.normal(keys[8], (Cout, Cin, 1, 1), jnp.float32) * 0.2,
        "res_b": jax.random.normal(keys[9], (Cout,), jnp.float32) * 0.1,
    }
    x = jax.random.normal(keys[10], (N, Cin, H, W), jnp.float32)

    fwd_bf16 = jax.jit(lambda xx: res_conv_block(xx, params))
    fwd_f32 = jax.jit(lambda xx: res_conv_block(xx, params, matmul_dtype=jnp.float32))

    out_bf16 = jax.block_until_ready(fwd_bf16(x))
    out_f32 = jax.block_until_ready(fwd_f32(x))
    ref = jax.block_until_ready(ref_forward(x, params))

    assert out_bf16.shape == (N, Cout, H, W), out_bf16.shape
    err_f32 = float(jnp.max(jnp.abs(out_f32 - ref)))
    err_bf16 = float(jnp.max(jnp.abs(out_bf16 - ref)))
    # f32 path: tight check of the kernel structure / halo / BN fold.
    assert jnp.allclose(out_f32, ref, atol=2e-3, rtol=2e-3), err_f32
    # bf16 path (default): loosened tolerance for bf16 MXU inputs + bf16 y1/y2.
    assert jnp.allclose(out_bf16, ref, atol=1e-1, rtol=1e-1), err_bf16
    print("KERNEL_OK")
</pallas_src>

<mosaic_0001>
module attributes {stable_mosaic.version = 11 : i64} {
  func.func @_conv1_kernel(%arg0: i32, %arg1: i32, %arg2: memref<128x128xbf16, #tpu.memory_space<vmem>>, %arg3: memref<16x128xbf16, #tpu.memory_space<vmem>>, %arg4: memref<16x128xbf16, #tpu.memory_space<vmem>>, %arg5: memref<3x384x128xbf16, #tpu.memory_space<vmem>>, %arg6: memref<1x128xf32, #tpu.memory_space<vmem>>, %arg7: memref<128x128xbf16, #tpu.memory_space<vmem>>, %arg8: memref<1x2x128xf32, #tpu.memory_space<vmem>>, %arg9: memref<176x128xf32, #tpu.memory_space<vmem>>) attributes {dimension_semantics = [#tpu.dimension_semantics<parallel>, #tpu.dimension_semantics<parallel>], iteration_bounds = array<i64: 2, 2>, scalar_prefetch = 0 : i64, scratch_operands = 1 : i64, tpu.core_type = #tpu.core_type<tc>, window_params = [{transform_indices = @transform_0, window_bounds = array<i64: 128, 128>}, {transform_indices = @transform_1, window_bounds = array<i64: 16, 128>}, {transform_indices = @transform_2, window_bounds = array<i64: 16, 128>}, {pipeline_mode = #tpu.pipeline_mode<synchronous>, transform_indices = @transform_3, window_bounds = array<i64: 3, 384, 128>}, {pipeline_mode = #tpu.pipeline_mode<synchronous>, transform_indices = @transform_4, window_bounds = array<i64: 1, 128>}, {transform_indices = @transform_5, window_bounds = array<i64: 128, 128>}, {transform_indices = @transform_6, window_bounds = array<i64: 1, 2, 128>}]} {
    %c0_i32 = arith.constant 0 : i32
    %0 = arith.cmpi eq, %arg1, %c0_i32 : i32
    %c1_i32 = arith.constant 1 : i32
    %1 = arith.cmpi eq, %arg1, %c1_i32 : i32
    %c0 = arith.constant 0 : index
    %c0_0 = arith.constant 0 : index
    %2 = vector.load %arg3[%c0, %c0_0] : memref<16x128xbf16, #tpu.memory_space<vmem>>, vector<16x128xbf16>
    %3 = arith.extf %2 : vector<16x128xbf16> to vector<16x128xf32>
    %cst = arith.constant 0.000000e+00 : f32
    %4 = vector.broadcast %cst : f32 to vector<16x128xf32>
    %5 = arith.select %0, %4, %3 : vector<16x128xf32>
    %c0_1 = arith.constant 0 : index
    %c0_2 = arith.constant 0 : index
    %6 = vector.load %arg4[%c0_1, %c0_2] : memref<16x128xbf16, #tpu.memory_space<vmem>>, vector<16x128xbf16>
    %7 = arith.extf %6 : vector<16x128xbf16> to vector<16x128xf32>
    %cst_3 = arith.constant 0.000000e+00 : f32
    %8 = vector.broadcast %cst_3 : f32 to vector<16x128xf32>
    %9 = arith.select %1, %8, %7 : vector<16x128xf32>
    %c0_4 = arith.constant 0 : index
    %c0_5 = arith.constant 0 : index
    %10 = vector.load %arg2[%c0_4, %c0_5] : memref<128x128xbf16, #tpu.memory_space<vmem>>, vector<128x128xbf16>
    %11 = arith.extf %10 : vector<128x128xbf16> to vector<128x128xf32>
    %c8 = arith.constant 8 : index
    %c0_6 = arith.constant 0 : index
    %12 = vector.load %arg9[%c8, %c0_6] : memref<176x128xf32, #tpu.memory_space<vmem>>, vector<16x128xf32>
    tpu.vector_store %arg9[%c8, %c0_6], %5 {strides = array<i32>} : memref<176x128xf32, #tpu.memory_space<vmem>>, vector<16x128xf32>,
    %c24 = arith.constant 24 : index
    %c0_7 = arith.constant 0 : index
    %13 = vector.load %arg9[%c24, %c0_7] : memref<176x128xf32, #tpu.memory_space<vmem>>, vector<128x128xf32>
    tpu.vector_store %arg9[%c24, %c0_7], %11 {strides = array<i32>} : memref<176x128xf32, #tpu.memory_space<vmem>>, vector<128x128xf32>,
    %c152 = arith.constant 152 : index
    %c0_8 = arith.constant 0 : index
    %14 = vector.load %arg9[%c152, %c0_8] : memref<176x128xf32, #tpu.memory_space<vmem>>, vector<16x128xf32>
    tpu.vector_store %arg9[%c152, %c0_8], %9 {strides = array<i32>} : memref<176x128xf32, #tpu.memory_space<vmem>>, vector<16x128xf32>,
    %15 = tpu.iota {dimensions = array<i32: 0>} : vector<128x1xi32>
    %c16_i32 = arith.constant 16 : i32
    %c0_i32_9 = arith.constant 0 : i32
    %16 = arith.cmpi eq, %c16_i32, %c0_i32_9 : i32
    %c1_i32_10 = arith.constant 1 : i32
    %17 = arith.select %16, %c1_i32_10, %c16_i32 : i32
    %18 = vector.broadcast %17 : i32 to vector<128x1xi32>
    %19 = arith.remsi %15, %18 : vector<128x1xi32>
    %c0_i32_11 = arith.constant 0 : i32
    %20 = vector.broadcast %c0_i32_11 : i32 to vector<128x1xi32>
    %21 = arith.cmpi ne, %19, %20 : vector<128x1xi32>
    %c0_i32_12 = arith.constant 0 : i32
    %22 = vector.broadcast %c0_i32_12 : i32 to vector<128x1xi32>
    %23 = arith.cmpi slt, %19, %22 : vector<128x1xi32>
    %c0_i32_13 = arith.constant 0 : i32
    %24 = arith.cmpi slt, %17, %c0_i32_13 : i32
    %25 = vector.broadcast %24 : i1 to vector<128x1xi1>
    %26 = vector.broadcast %25 : vector<128x1xi1> to vector<128x1xi1>
    %27 = arith.xori %23, %26 : vector<128x1xi1>
    %28 = arith.andi %27, %21 : vector<128x1xi1>
    %29 = vector.broadcast %17 : i32 to vector<128x1xi32>
    %30 = arith.addi %19, %29 : vector<128x1xi32>
    %31 = arith.select %28, %30, %19 : vector<128x1xi1>, vector<128x1xi32>
    %c1_i32_14 = arith.constant 1 : i32
    %32 = vector.broadcast %c1_i32_14 : i32 to vector<128x1xi32>
    %33 = arith.cmpi sge, %31, %32 : vector<128x1xi32>
    %c14_i32 = arith.constant 14 : i32
    %34 = vector.broadcast %c14_i32 : i32 to vector<128x1xi32>
    %35 = arith.cmpi sle, %31, %34 : vector<128x1xi32>
    %cst_15 = arith.constant 0.000000e+00 : f32
    %36 = vector.broadcast %cst_15 : f32 to vector<128x128xf32>
    %c7 = arith.constant 7 : index
    %c0_16 = arith.constant 0 : index
    %37 = vector.load %arg9[%c7, %c0_16] : memref<176x128xf32, #tpu.memory_space<vmem>>, vector<128x128xf32>
    %cst_17 = arith.constant 0.000000e+00 : f32
    %38 = vector.shape_cast %33 : vector<128x1xi1> to vector<128x1xi1>
    %39 = vector.broadcast %38 : vector<128x1xi1> to vector<128x128xi1>
    %40 = vector.broadcast %cst_17 : f32 to vector<128x128xf32>
    %41 = arith.select %39, %37, %40 : vector<128x128xi1>, vector<128x128xf32>
    %c8_18 = arith.constant 8 : index
    %c0_19 = arith.constant 0 : index
    %42 = vector.load %arg9[%c8_18, %c0_19] : memref<176x128xf32, #tpu.memory_space<vmem>>, vector<128x128xf32>
    %c9 = arith.constant 9 : index
    %c0_20 = arith.constant 0 : index
    %43 = vector.load %arg9[%c9, %c0_20] : memref<176x128xf32, #tpu.memory_space<vmem>>, vector<128x128xf32>
    %cst_21 = arith.constant 0.000000e+00 : f32
    %44 = vector.shape_cast %35 : vector<128x1xi1> to vector<128x1xi1>
    %45 = vector.broadcast %44 : vector<128x1xi1> to vector<128x128xi1>
    %46 = vector.broadcast %cst_21 : f32 to vector<128x128xf32>
    %47 = arith.select %45, %43, %46 : vector<128x128xi1>, vector<128x128xf32>
    %48 = tpu.concatenate %41, %42, %47 in 1 : vector<128x128xf32>, vector<128x128xf32>, vector<128x128xf32> -> vector<128x384xf32>
    %49 = arith.truncf %48 : vector<128x384xf32> to vector<128x384xbf16>
    %c0_22 = arith.constant 0 : index
    %c0_23 = arith.constant 0 : index
    %c0_24 = arith.constant 0 : index
    %50 = vector.load %arg5[%c0_22, %c0_23, %c0_24] : memref<3x384x128xbf16, #tpu.memory_space<vmem>>, vector<1x384x128xbf16>
    %51 = vector.shape_cast %50 : vector<1x384x128xbf16> to vector<384x128xbf16>
    %cst_25 = arith.constant dense<0.000000e+00> : vector<128x128xf32>
    %52 = tpu.matmul %49, %51, %cst_25 {dimension_numbers = #tpu.dot_dimension_numbers<[1], [0], [0], [1], [0, 0, 1, 1], [], []>} : vector<128x384xbf16>, vector<384x128xbf16>, vector<128x128xf32> -> vector<128x128xf32>
    %53 = arith.addf %36, %52 : vector<128x128xf32>
    %c23 = arith.constant 23 : index
    %c0_26 = arith.constant 0 : index
    %54 = vector.load %arg9[%c23, %c0_26] : memref<176x128xf32, #tpu.memory_space<vmem>>, vector<128x128xf32>
    %cst_27 = arith.constant 0.000000e+00 : f32
    %55 = vector.shape_cast %33 : vector<128x1xi1> to vector<128x1xi1>
    %56 = vector.broadcast %55 : vector<128x1xi1> to vector<128x128xi1>
    %57 = vector.broadcast %cst_27 : f32 to vector<128x128xf32>
    %58 = arith.select %56, %54, %57 : vector<128x128xi1>, vector<128x128xf32>
    %c24_28 = arith.constant 24 : index
    %c0_29 = arith.constant 0 : index
    %59 = vector.load %arg9[%c24_28, %c0_29] : memref<176x128xf32, #tpu.memory_space<vmem>>, vector<128x128xf32>
    %c25 = arith.constant 25 : index
    %c0_30 = arith.constant 0 : index
    %60 = vector.load %arg9[%c25, %c0_30] : memref<176x128xf32, #tpu.memory_space<vmem>>, vector<128x128xf32>
    %cst_31 = arith.constant 0.000000e+00 : f32
    %61 = vector.shape_cast %35 : vector<128x1xi1> to vector<128x1xi1>
    %62 = vector.broadcast %61 : vector<128x1xi1> to vector<128x128xi1>
    %63 = vector.broadcast %cst_31 : f32 to vector<128x128xf32>
    %64 = arith.select %62, %60, %63 : vector<128x128xi1>, vector<128x128xf32>
    %65 = tpu.concatenate %58, %59, %64 in 1 : vector<128x128xf32>, vector<128x128xf32>, vector<128x128xf32> -> vector<128x384xf32>
    %66 = arith.truncf %65 : vector<128x384xf32> to vector<128x384xbf16>
    %c1 = arith.constant 1 : index
    %c0_32 = arith.constant 0 : index
    %c0_33 = arith.constant 0 : index
    %67 = vector.load %arg5[%c1, %c0_32, %c0_33] : memref<3x384x128xbf16, #tpu.memory_space<vmem>>, vector<1x384x128xbf16>
    %68 = vector.shape_cast %67 : vector<1x384x128xbf16> to vector<384x128xbf16>
    %cst_34 = arith.constant dense<0.000000e+00> : vector<128x128xf32>
    %69 = tpu.matmul %66, %68, %cst_34 {dimension_numbers = #tpu.dot_dimension_numbers<[1], [0], [0], [1], [0, 0, 1, 1], [], []>} : vector<128x384xbf16>, vector<384x128xbf16>, vector<128x128xf32> -> vector<128x128xf32>
    %70 = arith.addf %53, %69 : vector<128x128xf32>
    %c39 = arith.constant 39 : index
    %c0_35 = arith.constant 0 : index
    %71 = vector.load %arg9[%c39, %c0_35] : memref<176x128xf32, #tpu.memory_space<vmem>>, vector<128x128xf32>
    %cst_36 = arith.constant 0.000000e+00 : f32
    %72 = vector.shape_cast %33 : vector<128x1xi1> to vector<128x1xi1>
    %73 = vector.broadcast %72 : vector<128x1xi1> to vector<128x128xi1>
    %74 = vector.broadcast %cst_36 : f32 to vector<128x128xf32>
    %75 = arith.select %73, %71, %74 : vector<128x128xi1>, vector<128x128xf32>
    %c40 = arith.constant 40 : index
    %c0_37 = arith.constant 0 : index
    %76 = vector.load %arg9[%c40, %c0_37] : memref<176x128xf32, #tpu.memory_space<vmem>>, vector<128x128xf32>
    %c41 = arith.constant 41 : index
    %c0_38 = arith.constant 0 : index
    %77 = vector.load %arg9[%c41, %c0_38] : memref<176x128xf32, #tpu.memory_space<vmem>>, vector<128x128xf32>
    %cst_39 = arith.constant 0.000000e+00 : f32
    %78 = vector.shape_cast %35 : vector<128x1xi1> to vector<128x1xi1>
    %79 = vector.broadcast %78 : vector<128x1xi1> to vector<128x128xi1>
    %80 = vector.broadcast %cst_39 : f32 to vector<128x128xf32>
    %81 = arith.select %79, %77, %80 : vector<128x128xi1>, vector<128x128xf32>
    %82 = tpu.concatenate %75, %76, %81 in 1 : vector<128x128xf32>, vector<128x128xf32>, vector<128x128xf32> -> vector<128x384xf32>
    %83 = arith.truncf %82 : vector<128x384xf32> to vector<128x384xbf16>
    %c2 = arith.constant 2 : index
    %c0_40 = arith.constant 0 : index
    %c0_41 = arith.constant 0 : index
    %84 = vector.load %arg5[%c2, %c0_40, %c0_41] : memref<3x384x128xbf16, #tpu.memory_space<vmem>>, vector<1x384x128xbf16>
    %85 = vector.shape_cast %84 : vector<1x384x128xbf16> to vector<384x128xbf16>
    %cst_42 = arith.constant dense<0.000000e+00> : vector<128x128xf32>
    %86 = tpu.matmul %83, %85, %cst_42 {dimension_numbers = #tpu.dot_dimension_numbers<[1], [0], [0], [1], [0, 0, 1, 1], [], []>} : vector<128x384xbf16>, vector<384x128xbf16>, vector<128x128xf32> -> vector<128x128xf32>
    %87 = arith.addf %70, %86 : vector<128x128xf32>
    %c0_43 = arith.constant 0 : index
    %c0_44 = arith.constant 0 : index
    %88 = vector.load %arg6[%c0_43, %c0_44] : memref<1x128xf32, #tpu.memory_space<vmem>>, vector<1x128xf32>
    %89 = vector.broadcast %88 : vector<1x128xf32> to vector<128x128xf32>
    %90 = arith.addf %87, %89 : vector<128x128xf32>
    %91 = arith.truncf %90 : vector<128x128xf32> to vector<128x128xbf16>
    %c0_45 = arith.constant 0 : index
    %c0_46 = arith.constant 0 : index
    %92 = vector.load %arg7[%c0_45, %c0_46] : memref<128x128xbf16, #tpu.memory_space<vmem>>, vector<128x128xbf16>
    tpu.vector_store %arg7[%c0_45, %c0_46], %91 {strides = array<i32>} : memref<128x128xbf16, #tpu.memory_space<vmem>>, vector<128x128xbf16>,
    %cst_47 = arith.constant dense<0.000000e+00> : vector<128xf32>
    %93 = vector.multi_reduction <add>, %90, %cst_47 [0] : vector<128x128xf32> to vector<128xf32>
    %94 = vector.shape_cast %93 : vector<128xf32> to vector<1x128xf32>
    %95 = arith.mulf %90, %90 : vector<128x128xf32>
    %cst_48 = arith.constant dense<0.000000e+00> : vector<128xf32>
    %96 = vector.multi_reduction <add>, %95, %cst_48 [0] : vector<128x128xf32> to vector<128xf32>
    %97 = vector.shape_cast %96 : vector<128xf32> to vector<1x128xf32>
    %98 = tpu.concatenate %94, %97 in 0 : vector<1x128xf32>, vector<1x128xf32> -> vector<2x128xf32>
    %99 = vector.shape_cast %98 : vector<2x128xf32> to vector<1x2x128xf32>
    %c0_49 = arith.constant 0 : index
    %c0_50 = arith.constant 0 : index
    %c0_51 = arith.constant 0 : index
    %100 = vector.load %arg8[%c0_49, %c0_50, %c0_51] : memref<1x2x128xf32, #tpu.memory_space<vmem>>, vector<1x2x128xf32>
    tpu.vector_store %arg8[%c0_49, %c0_50, %c0_51], %99 {strides = array<i32>} : memref<1x2x128xf32, #tpu.memory_space<vmem>>, vector<1x2x128xf32>,
    return
  }
  func.func @transform_0(%arg0: i32, %arg1: i32) -> (i32, i32) {
    %c2_i32 = arith.constant 2 : i32
    %0 = arith.muli %arg0, %c2_i32 : i32
    %1 = arith.addi %0, %arg1 : i32
    %c0_i32 = arith.constant 0 : i32
    %c0_i32_0 = arith.constant 0 : i32
    return %1, %c0_i32 : i32, i32
  }
  func.func @transform_1(%arg0: i32, %arg1: i32) -> (i32, i32) {
    %c16_i32 = arith.constant 16 : i32
    %0 = arith.muli %arg0, %c16_i32 : i32
    %c8_i32 = arith.constant 8 : i32
    %1 = arith.muli %arg1, %c8_i32 : i32
    %c1_i32 = arith.constant 1 : i32
    %2 = arith.subi %1, %c1_i32 : i32
    %c0_i32 = arith.constant 0 : i32
    %3 = arith.maxsi %2, %c0_i32 : i32
    %4 = arith.addi %0, %3 : i32
    %c0_i32_0 = arith.constant 0 : i32
    %c0_i32_1 = arith.constant 0 : i32
    return %4, %c0_i32_0 : i32, i32
  }
  func.func @transform_2(%arg0: i32, %arg1: i32) -> (i32, i32) {
    %c16_i32 = arith.constant 16 : i32
    %0 = arith.muli %arg0, %c16_i32 : i32
    %c1_i32 = arith.constant 1 : i32
    %1 = arith.addi %arg1, %c1_i32 : i32
    %c8_i32 = arith.constant 8 : i32
    %2 = arith.muli %1, %c8_i32 : i32
    %c15_i32 = arith.constant 15 : i32
    %3 = arith.minsi %2, %c15_i32 : i32
    %4 = arith.addi %0, %3 : i32
    %c0_i32 = arith.constant 0 : i32
    %c0_i32_0 = arith.constant 0 : i32
    return %4, %c0_i32 : i32, i32
  }
  func.func @transform_3(%arg0: i32, %arg1: i32) -> (i32, i32, i32) {
    %c0_i32 = arith.constant 0 : i32
    %c0_i32_0 = arith.constant 0 : i32
    %c0_i32_1 = arith.constant 0 : i32
    %c0_i32_2 = arith.constant 0 : i32
    return %c0_i32, %c0_i32_0, %c0_i32_1 : i32, i32, i32
  }
  func.func @transform_4(%arg0: i32, %arg1: i32) -> (i32, i32) {
    %c0_i32 = arith.constant 0 : i32
    %c0_i32_0 = arith.constant 0 : i32
    %c0_i32_1 = arith.constant 0 : i32
    return %c0_i32, %c0_i32_0 : i32, i32
  }
  func.func @transform_5(%arg0: i32, %arg1: i32) -> (i32, i32) {
    %c2_i32 = arith.constant 2 : i32
    %0 = arith.muli %arg0, %c2_i32 : i32
    %1 = arith.addi %0, %arg1 : i32
    %c0_i32 = arith.constant 0 : i32
    %c0_i32_0 = arith.constant 0 : i32
    return %1, %c0_i32 : i32, i32
  }
  func.func @transform_6(%arg0: i32, %arg1: i32) -> (i32, i32, i32) {
    %c2_i32 = arith.constant 2 : i32
    %0 = arith.muli %arg0, %c2_i32 : i32
    %1 = arith.addi %0, %arg1 : i32
    %c0_i32 = arith.constant 0 : i32
    %c0_i32_0 = arith.constant 0 : i32
    %c0_i32_1 = arith.constant 0 : i32
    return %1, %c0_i32, %c0_i32_0 : i32, i32, i32
  }
}

module attributes {stable_mosaic.version = 11 : i64} {
  func.func @_bn_relu_conv2_kernel(%arg0: i32, %arg1: i32, %arg2: memref<128x128xbf16, #tpu.memory_space<vmem>>, %arg3: memref<16x128xbf16, #tpu.memory_space<vmem>>, %arg4: memref<16x128xbf16, #tpu.memory_space<vmem>>, %arg5: memref<1x128xf32, #tpu.memory_space<vmem>>, %arg6: memref<1x128xf32, #tpu.memory_space<vmem>>, %arg7: memref<3x384x128xbf16, #tpu.memory_space<vmem>>, %arg8: memref<1x128xf32, #tpu.memory_space<vmem>>, %arg9: memref<128x128xbf16, #tpu.memory_space<vmem>>, %arg10: memref<1x2x128xf32, #tpu.memory_space<vmem>>, %arg11: memref<176x128xf32, #tpu.memory_space<vmem>>) attributes {dimension_semantics = [#tpu.dimension_semantics<parallel>, #tpu.dimension_semantics<parallel>], iteration_bounds = array<i64: 2, 2>, scalar_prefetch = 0 : i64, scratch_operands = 1 : i64, tpu.core_type = #tpu.core_type<tc>, window_params = [{transform_indices = @transform_0, window_bounds = array<i64: 128, 128>}, {transform_indices = @transform_1, window_bounds = array<i64: 16, 128>}, {transform_indices = @transform_2, window_bounds = array<i64: 16, 128>}, {pipeline_mode = #tpu.pipeline_mode<synchronous>, transform_indices = @transform_3, window_bounds = array<i64: 1, 128>}, {pipeline_mode = #tpu.pipeline_mode<synchronous>, transform_indices = @transform_4, window_bounds = array<i64: 1, 128>}, {pipeline_mode = #tpu.pipeline_mode<synchronous>, transform_indices = @transform_5, window_bounds = array<i64: 3, 384, 128>}, {pipeline_mode = #tpu.pipeline_mode<synchronous>, transform_indices = @transform_6, window_bounds = array<i64: 1, 128>}, {transform_indices = @transform_7, window_bounds = array<i64: 128, 128>}, {transform_indices = @transform_8, window_bounds = array<i64: 1, 2, 128>}]} {
    %c0_i32 = arith.constant 0 : i32
    %0 = arith.cmpi eq, %arg1, %c0_i32 : i32
    %c1_i32 = arith.constant 1 : i32
    %1 = arith.cmpi eq, %arg1, %c1_i32 : i32
    %c0 = arith.constant 0 : index
    %c0_0 = arith.constant 0 : index
    %2 = vector.load %arg3[%c0, %c0_0] : memref<16x128xbf16, #tpu.memory_space<vmem>>, vector<16x128xbf16>
    %3 = arith.extf %2 : vector<16x128xbf16> to vector<16x128xf32>
    %c0_1 = arith.constant 0 : index
    %c0_2 = arith.constant 0 : index
    %4 = vector.load %arg5[%c0_1, %c0_2] : memref<1x128xf32, #tpu.memory_space<vmem>>, vector<1x128xf32>
    %5 = vector.broadcast %4 : vector<1x128xf32> to vector<16x128xf32>
    %6 = arith.mulf %3, %5 : vector<16x128xf32>
    %c0_3 = arith.constant 0 : index
    %c0_4 = arith.constant 0 : index
    %7 = vector.load %arg6[%c0_3, %c0_4] : memref<1x128xf32, #tpu.memory_space<vmem>>, vector<1x128xf32>
    %8 = vector.broadcast %7 : vector<1x128xf32> to vector<16x128xf32>
    %9 = arith.addf %6, %8 : vector<16x128xf32>
    %cst = arith.constant 0.000000e+00 : f32
    %10 = vector.broadcast %cst : f32 to vector<16x128xf32>
    %11 = arith.maximumf %9, %10 : vector<16x128xf32>
    %cst_5 = arith.constant 0.000000e+00 : f32
    %12 = vector.broadcast %cst_5 : f32 to vector<16x128xf32>
    %13 = arith.select %0, %12, %11 : vector<16x128xf32>
    %c0_6 = arith.constant 0 : index
    %c0_7 = arith.constant 0 : index
    %14 = vector.load %arg4[%c0_6, %c0_7] : memref<16x128xbf16, #tpu.memory_space<vmem>>, vector<16x128xbf16>
    %15 = arith.extf %14 : vector<16x128xbf16> to vector<16x128xf32>
    %c0_8 = arith.constant 0 : index
    %c0_9 = arith.constant 0 : index
    %16 = vector.load %arg5[%c0_8, %c0_9] : memref<1x128xf32, #tpu.memory_space<vmem>>, vector<1x128xf32>
    %17 = vector.broadcast %16 : vector<1x128xf32> to vector<16x128xf32>
    %18 = arith.mulf %15, %17 : vector<16x128xf32>
    %c0_10 = arith.constant 0 : index
    %c0_11 = arith.constant 0 : index
    %19 = vector.load %arg6[%c0_10, %c0_11] : memref<1x128xf32, #tpu.memory_space<vmem>>, vector<1x128xf32>
    %20 = vector.broadcast %19 : vector<1x128xf32> to vector<16x128xf32>
    %21 = arith.addf %18, %20 : vector<16x128xf32>
    %cst_12 = arith.constant 0.000000e+00 : f32
    %22 = vector.broadcast %cst_12 : f32 to vector<16x128xf32>
    %23 = arith.maximumf %21, %22 : vector<16x128xf32>
    %cst_13 = arith.constant 0.000000e+00 : f32
    %24 = vector.broadcast %cst_13 : f32 to vector<16x128xf32>
    %25 = arith.select %1, %24, %23 : vector<16x128xf32>
    %c0_14 = arith.constant 0 : index
    %c0_15 = arith.constant 0 : index
    %26 = vector.load %arg2[%c0_14, %c0_15] : memref<128x128xbf16, #tpu.memory_space<vmem>>, vector<128x128xbf16>
    %27 = arith.extf %26 : vector<128x128xbf16> to vector<128x128xf32>
    %c0_16 = arith.constant 0 : index
    %c0_17 = arith.constant 0 : index
    %28 = vector.load %arg5[%c0_16, %c0_17] : memref<1x128xf32, #tpu.memory_space<vmem>>, vector<1x128xf32>
    %29 = vector.broadcast %28 : vector<1x128xf32> to vector<128x128xf32>
    %30 = arith.mulf %27, %29 : vector<128x128xf32>
    %c0_18 = arith.constant 0 : index
    %c0_19 = arith.constant 0 : index
    %31 = vector.load %arg6[%c0_18, %c0_19] : memref<1x128xf32, #tpu.memory_space<vmem>>, vector<1x128xf32>
    %32 = vector.broadcast %31 : vector<1x128xf32> to vector<128x128xf32>
    %33 = arith.addf %30, %32 : vector<128x128xf32>
    %cst_20 = arith.constant 0.000000e+00 : f32
    %34 = vector.broadcast %cst_20 : f32 to vector<128x128xf32>
    %35 = arith.maximumf %33, %34 : vector<128x128xf32>
    %c8 = arith.constant 8 : index
    %c0_21 = arith.constant 0 : index
    %36 = vector.load %arg11[%c8, %c0_21] : memref<176x128xf32, #tpu.memory_space<vmem>>, vector<16x128xf32>
    tpu.vector_store %arg11[%c8, %c0_21], %13 {strides = array<i32>} : memref<176x128xf32, #tpu.memory_space<vmem>>, vector<16x128xf32>,
    %c24 = arith.constant 24 : index
    %c0_22 = arith.constant 0 : index
    %37 = vector.load %arg11[%c24, %c0_22] : memref<176x128xf32, #tpu.memory_space<vmem>>, vector<128x128xf32>
    tpu.vector_store %arg11[%c24, %c0_22], %35 {strides = array<i32>} : memref<176x128xf32, #tpu.memory_space<vmem>>, vector<128x128xf32>,
    %c152 = arith.constant 152 : index
    %c0_23 = arith.constant 0 : index
    %38 = vector.load %arg11[%c152, %c0_23] : memref<176x128xf32, #tpu.memory_space<vmem>>, vector<16x128xf32>
    tpu.vector_store %arg11[%c152, %c0_23], %25 {strides = array<i32>} : memref<176x128xf32, #tpu.memory_space<vmem>>, vector<16x128xf32>,
    %39 = tpu.iota {dimensions = array<i32: 0>} : vector<128x1xi32>
    %c16_i32 = arith.constant 16 : i32
    %c0_i32_24 = arith.constant 0 : i32
    %40 = arith.cmpi eq, %c16_i32, %c0_i32_24 : i32
    %c1_i32_25 = arith.constant 1 : i32
    %41 = arith.select %40, %c1_i32_25, %c16_i32 : i32
    %42 = vector.broadcast %41 : i32 to vector<128x1xi32>
    %43 = arith.remsi %39, %42 : vector<128x1xi32>
    %c0_i32_26 = arith.constant 0 : i32
    %44 = vector.broadcast %c0_i32_26 : i32 to vector<128x1xi32>
    %45 = arith.cmpi ne, %43, %44 : vector<128x1xi32>
    %c0_i32_27 = arith.constant 0 : i32
    %46 = vector.broadcast %c0_i32_27 : i32 to vector<128x1xi32>
    %47 = arith.cmpi slt, %43, %46 : vector<128x1xi32>
    %c0_i32_28 = arith.constant 0 : i32
    %48 = arith.cmpi slt, %41, %c0_i32_28 : i32
    %49 = vector.broadcast %48 : i1 to vector<128x1xi1>
    %50 = vector.broadcast %49 : vector<128x1xi1> to vector<128x1xi1>
    %51 = arith.xori %47, %50 : vector<128x1xi1>
    %52 = arith.andi %51, %45 : vector<128x1xi1>
    %53 = vector.broadcast %41 : i32 to vector<128x1xi32>
    %54 = arith.addi %43, %53 : vector<128x1xi32>
    %55 = arith.select %52, %54, %43 : vector<128x1xi1>, vector<128x1xi32>
    %c1_i32_29 = arith.constant 1 : i32
    %56 = vector.broadcast %c1_i32_29 : i32 to vector<128x1xi32>
    %57 = arith.cmpi sge, %55, %56 : vector<128x1xi32>
    %c14_i32 = arith.constant 14 : i32
    %58 = vector.broadcast %c14_i32 : i32 to vector<128x1xi32>
    %59 = arith.cmpi sle, %55, %58 : vector<128x1xi32>
    %cst_30 = arith.constant 0.000000e+00 : f32
    %60 = vector.broadcast %cst_30 : f32 to vector<128x128xf32>
    %c7 = arith.constant 7 : index
    %c0_31 = arith.constant 0 : index
    %61 = vector.load %arg11[%c7, %c0_31] : memref<176x128xf32, #tpu.memory_space<vmem>>, vector<128x128xf32>
    %cst_32 = arith.constant 0.000000e+00 : f32
    %62 = vector.shape_cast %57 : vector<128x1xi1> to vector<128x1xi1>
    %63 = vector.broadcast %62 : vector<128x1xi1> to vector<128x128xi1>
    %64 = vector.broadcast %cst_32 : f32 to vector<128x128xf32>
    %65 = arith.select %63, %61, %64 : vector<128x128xi1>, vector<128x128xf32>
    %c8_33 = arith.constant 8 : index
    %c0_34 = arith.constant 0 : index
    %66 = vector.load %arg11[%c8_33, %c0_34] : memref<176x128xf32, #tpu.memory_space<vmem>>, vector<128x128xf32>
    %c9 = arith.constant 9 : index
    %c0_35 = arith.constant 0 : index
    %67 = vector.load %arg11[%c9, %c0_35] : memref<176x128xf32, #tpu.memory_space<vmem>>, vector<128x128xf32>
    %cst_36 = arith.constant 0.000000e+00 : f32
    %68 = vector.shape_cast %59 : vector<128x1xi1> to vector<128x1xi1>
    %69 = vector.broadcast %68 : vector<128x1xi1> to vector<128x128xi1>
    %70 = vector.broadcast %cst_36 : f32 to vector<128x128xf32>
    %71 = arith.select %69, %67, %70 : vector<128x128xi1>, vector<128x128xf32>
    %72 = tpu.concatenate %65, %66, %71 in 1 : vector<128x128xf32>, vector<128x128xf32>, vector<128x128xf32> -> vector<128x384xf32>
    %73 = arith.truncf %72 : vector<128x384xf32> to vector<128x384xbf16>
    %c0_37 = arith.constant 0 : index
    %c0_38 = arith.constant 0 : index
    %c0_39 = arith.constant 0 : index
    %74 = vector.load %arg7[%c0_37, %c0_38, %c0_39] : memref<3x384x128xbf16, #tpu.memory_space<vmem>>, vector<1x384x128xbf16>
    %75 = vector.shape_cast %74 : vector<1x384x128xbf16> to vector<384x128xbf16>
    %cst_40 = arith.constant dense<0.000000e+00> : vector<128x128xf32>
    %76 = tpu.matmul %73, %75, %cst_40 {dimension_numbers = #tpu.dot_dimension_numbers<[1], [0], [0], [1], [0, 0, 1, 1], [], []>} : vector<128x384xbf16>, vector<384x128xbf16>, vector<128x128xf32> -> vector<128x128xf32>
    %77 = arith.addf %60, %76 : vector<128x128xf32>
    %c23 = arith.constant 23 : index
    %c0_41 = arith.constant 0 : index
    %78 = vector.load %arg11[%c23, %c0_41] : memref<176x128xf32, #tpu.memory_space<vmem>>, vector<128x128xf32>
    %cst_42 = arith.constant 0.000000e+00 : f32
    %79 = vector.shape_cast %57 : vector<128x1xi1> to vector<128x1xi1>
    %80 = vector.broadcast %79 : vector<128x1xi1> to vector<128x128xi1>
    %81 = vector.broadcast %cst_42 : f32 to vector<128x128xf32>
    %82 = arith.select %80, %78, %81 : vector<128x128xi1>, vector<128x128xf32>
    %c24_43 = arith.constant 24 : index
    %c0_44 = arith.constant 0 : index
    %83 = vector.load %arg11[%c24_43, %c0_44] : memref<176x128xf32, #tpu.memory_space<vmem>>, vector<128x128xf32>
    %c25 = arith.constant 25 : index
    %c0_45 = arith.constant 0 : index
    %84 = vector.load %arg11[%c25, %c0_45] : memref<176x128xf32, #tpu.memory_space<vmem>>, vector<128x128xf32>
    %cst_46 = arith.constant 0.000000e+00 : f32
    %85 = vector.shape_cast %59 : vector<128x1xi1> to vector<128x1xi1>
    %86 = vector.broadcast %85 : vector<128x1xi1> to vector<128x128xi1>
    %87 = vector.broadcast %cst_46 : f32 to vector<128x128xf32>
    %88 = arith.select %86, %84, %87 : vector<128x128xi1>, vector<128x128xf32>
    %89 = tpu.concatenate %82, %83, %88 in 1 : vector<128x128xf32>, vector<128x128xf32>, vector<128x128xf32> -> vector<128x384xf32>
    %90 = arith.truncf %89 : vector<128x384xf32> to vector<128x384xbf16>
    %c1 = arith.constant 1 : index
    %c0_47 = arith.constant 0 : index
    %c0_48 = arith.constant 0 : index
    %91 = vector.load %arg7[%c1, %c0_47, %c0_48] : memref<3x384x128xbf16, #tpu.memory_space<vmem>>, vector<1x384x128xbf16>
    %92 = vector.shape_cast %91 : vector<1x384x128xbf16> to vector<384x128xbf16>
    %cst_49 = arith.constant dense<0.000000e+00> : vector<128x128xf32>
    %93 = tpu.matmul %90, %92, %cst_49 {dimension_numbers = #tpu.dot_dimension_numbers<[1], [0], [0], [1], [0, 0, 1, 1], [], []>} : vector<128x384xbf16>, vector<384x128xbf16>, vector<128x128xf32> -> vector<128x128xf32>
    %94 = arith.addf %77, %93 : vector<128x128xf32>
    %c39 = arith.constant 39 : index
    %c0_50 = arith.constant 0 : index
    %95 = vector.load %arg11[%c39, %c0_50] : memref<176x128xf32, #tpu.memory_space<vmem>>, vector<128x128xf32>
    %cst_51 = arith.constant 0.000000e+00 : f32
    %96 = vector.shape_cast %57 : vector<128x1xi1> to vector<128x1xi1>
    %97 = vector.broadcast %96 : vector<128x1xi1> to vector<128x128xi1>
    %98 = vector.broadcast %cst_51 : f32 to vector<128x128xf32>
    %99 = arith.select %97, %95, %98 : vector<128x128xi1>, vector<128x128xf32>
    %c40 = arith.constant 40 : index
    %c0_52 = arith.constant 0 : index
    %100 = vector.load %arg11[%c40, %c0_52] : memref<176x128xf32, #tpu.memory_space<vmem>>, vector<128x128xf32>
    %c41 = arith.constant 41 : index
    %c0_53 = arith.constant 0 : index
    %101 = vector.load %arg11[%c41, %c0_53] : memref<176x128xf32, #tpu.memory_space<vmem>>, vector<128x128xf32>
    %cst_54 = arith.constant 0.000000e+00 : f32
    %102 = vector.shape_cast %59 : vector<128x1xi1> to vector<128x1xi1>
    %103 = vector.broadcast %102 : vector<128x1xi1> to vector<128x128xi1>
    %104 = vector.broadcast %cst_54 : f32 to vector<128x128xf32>
    %105 = arith.select %103, %101, %104 : vector<128x128xi1>, vector<128x128xf32>
    %106 = tpu.concatenate %99, %100, %105 in 1 : vector<128x128xf32>, vector<128x128xf32>, vector<128x128xf32> -> vector<128x384xf32>
    %107 = arith.truncf %106 : vector<128x384xf32> to vector<128x384xbf16>
    %c2 = arith.constant 2 : index
    %c0_55 = arith.constant 0 : index
    %c0_56 = arith.constant 0 : index
    %108 = vector.load %arg7[%c2, %c0_55, %c0_56] : memref<3x384x128xbf16, #tpu.memory_space<vmem>>, vector<1x384x128xbf16>
    %109 = vector.shape_cast %108 : vector<1x384x128xbf16> to vector<384x128xbf16>
    %cst_57 = arith.constant dense<0.000000e+00> : vector<128x128xf32>
    %110 = tpu.matmul %107, %109, %cst_57 {dimension_numbers = #tpu.dot_dimension_numbers<[1], [0], [0], [1], [0, 0, 1, 1], [], []>} : vector<128x384xbf16>, vector<384x128xbf16>, vector<128x128xf32> -> vector<128x128xf32>
    %111 = arith.addf %94, %110 : vector<128x128xf32>
    %c0_58 = arith.constant 0 : index
    %c0_59 = arith.constant 0 : index
    %112 = vector.load %arg8[%c0_58, %c0_59] : memref<1x128xf32, #tpu.memory_space<vmem>>, vector<1x128xf32>
    %113 = vector.broadcast %112 : vector<1x128xf32> to vector<128x128xf32>
    %114 = arith.addf %111, %113 : vector<128x128xf32>
    %115 = arith.truncf %114 : vector<128x128xf32> to vector<128x128xbf16>
    %c0_60 = arith.constant 0 : index
    %c0_61 = arith.constant 0 : index
    %116 = vector.load %arg9[%c0_60, %c0_61] : memref<128x128xbf16, #tpu.memory_space<vmem>>, vector<128x128xbf16>
    tpu.vector_store %arg9[%c0_60, %c0_61], %115 {strides = array<i32>} : memref<128x128xbf16, #tpu.memory_space<vmem>>, vector<128x128xbf16>,
    %cst_62 = arith.constant dense<0.000000e+00> : vector<128xf32>
    %117 = vector.multi_reduction <add>, %114, %cst_62 [0] : vector<128x128xf32> to vector<128xf32>
    %118 = vector.shape_cast %117 : vector<128xf32> to vector<1x128xf32>
    %119 = arith.mulf %114, %114 : vector<128x128xf32>
    %cst_63 = arith.constant dense<0.000000e+00> : vector<128xf32>
    %120 = vector.multi_reduction <add>, %119, %cst_63 [0] : vector<128x128xf32> to vector<128xf32>
    %121 = vector.shape_cast %120 : vector<128xf32> to vector<1x128xf32>
    %122 = tpu.concatenate %118, %121 in 0 : vector<1x128xf32>, vector<1x128xf32> -> vector<2x128xf32>
    %123 = vector.shape_cast %122 : vector<2x128xf32> to vector<1x2x128xf32>
    %c0_64 = arith.constant 0 : index
    %c0_65 = arith.constant 0 : index
    %c0_66 = arith.constant 0 : index
    %124 = vector.load %arg10[%c0_64, %c0_65, %c0_66] : memref<1x2x128xf32, #tpu.memory_space<vmem>>, vector<1x2x128xf32>
    tpu.vector_store %arg10[%c0_64, %c0_65, %c0_66], %123 {strides = array<i32>} : memref<1x2x128xf32, #tpu.memory_space<vmem>>, vector<1x2x128xf32>,
    return
  }
  func.func @transform_0(%arg0: i32, %arg1: i32) -> (i32, i32) {
    %c2_i32 = arith.constant 2 : i32
    %0 = arith.muli %arg0, %c2_i32 : i32
    %1 = arith.addi %0, %arg1 : i32
    %c0_i32 = arith.constant 0 : i32
    %c0_i32_0 = arith.constant 0 : i32
    return %1, %c0_i32 : i32, i32
  }
  func.func @transform_1(%arg0: i32, %arg1: i32) -> (i32, i32) {
    %c16_i32 = arith.constant 16 : i32
    %0 = arith.muli %arg0, %c16_i32 : i32
    %c8_i32 = arith.constant 8 : i32
    %1 = arith.muli %arg1, %c8_i32 : i32
    %c1_i32 = arith.constant 1 : i32
    %2 = arith.subi %1, %c1_i32 : i32
    %c0_i32 = arith.constant 0 : i32
    %3 = arith.maxsi %2, %c0_i32 : i32
    %4 = arith.addi %0, %3 : i32
    %c0_i32_0 = arith.constant 0 : i32
    %c0_i32_1 = arith.constant 0 : i32
    return %4, %c0_i32_0 : i32, i32
  }
  func.func @transform_2(%arg0: i32, %arg1: i32) -> (i32, i32) {
    %c16_i32 = arith.constant 16 : i32
    %0 = arith.muli %arg0, %c16_i32 : i32
    %c1_i32 = arith.constant 1 : i32
    %1 = arith.addi %arg1, %c1_i32 : i32
    %c8_i32 = arith.constant 8 : i32
    %2 = arith.muli %1, %c8_i32 : i32
    %c15_i32 = arith.constant 15 : i32
    %3 = arith.minsi %2, %c15_i32 : i32
    %4 = arith.addi %0, %3 : i32
    %c0_i32 = arith.constant 0 : i32
    %c0_i32_0 = arith.constant 0 : i32
    return %4, %c0_i32 : i32, i32
  }
  func.func @transform_3(%arg0: i32, %arg1: i32) -> (i32, i32) {
    %c0_i32 = arith.constant 0 : i32
    %c0_i32_0 = arith.constant 0 : i32
    %c0_i32_1 = arith.constant 0 : i32
    return %c0_i32, %c0_i32_0 : i32, i32
  }
  func.func @transform_4(%arg0: i32, %arg1: i32) -> (i32, i32) {
    %c0_i32 = arith.constant 0 : i32
    %c0_i32_0 = arith.constant 0 : i32
    %c0_i32_1 = arith.constant 0 : i32
    return %c0_i32, %c0_i32_0 : i32, i32
  }
  func.func @transform_5(%arg0: i32, %arg1: i32) -> (i32, i32, i32) {
    %c0_i32 = arith.constant 0 : i32
    %c0_i32_0 = arith.constant 0 : i32
    %c0_i32_1 = arith.constant 0 : i32
    %c0_i32_2 = arith.constant 0 : i32
    return %c0_i32, %c0_i32_0, %c0_i32_1 : i32, i32, i32
  }
  func.func @transform_6(%arg0: i32, %arg1: i32) -> (i32, i32) {
    %c0_i32 = arith.constant 0 : i32
    %c0_i32_0 = arith.constant 0 : i32
    %c0_i32_1 = arith.constant 0 : i32
    return %c0_i32, %c0_i32_0 : i32, i32
  }
  func.func @transform_7(%arg0: i32, %arg1: i32) -> (i32, i32) {
    %c2_i32 = arith.constant 2 : i32
    %0 = arith.muli %arg0, %c2_i32 : i32
    %1 = arith.addi %0, %arg1 : i32
    %c0_i32 = arith.constant 0 : i32
    %c0_i32_0 = arith.constant 0 : i32
    return %1, %c0_i32 : i32, i32
  }
  func.func @transform_8(%arg0: i32, %arg1: i32) -> (i32, i32, i32) {
    %c2_i32 = arith.constant 2 : i32
    %0 = arith.muli %arg0, %c2_i32 : i32
    %1 = arith.addi %0, %arg1 : i32
    %c0_i32 = arith.constant 0 : i32
    %c0_i32_0 = arith.constant 0 : i32
    %c0_i32_1 = arith.constant 0 : i32
    return %1, %c0_i32, %c0_i32_0 : i32, i32, i32
  }
}

module attributes {stable_mosaic.version = 11 : i64} {
  func.func @_bn_relu_residual_kernel(%arg0: i32, %arg1: i32, %arg2: memref<128x128xbf16, #tpu.memory_space<vmem>>, %arg3: memref<128x128xbf16, #tpu.memory_space<vmem>>, %arg4: memref<1x128xf32, #tpu.memory_space<vmem>>, %arg5: memref<1x128xf32, #tpu.memory_space<vmem>>, %arg6: memref<128x128xbf16, #tpu.memory_space<vmem>>, %arg7: memref<1x128xf32, #tpu.memory_space<vmem>>, %arg8: memref<128x8xf32, #tpu.memory_space<vmem>>) attributes {dimension_semantics = [#tpu.dimension_semantics<parallel>, #tpu.dimension_semantics<parallel>], iteration_bounds = array<i64: 2, 2>, scalar_prefetch = 0 : i64, scratch_operands = 0 : i64, tpu.core_type = #tpu.core_type<tc>, window_params = [{transform_indices = @transform_0, window_bounds = array<i64: 128, 128>}, {transform_indices = @transform_1, window_bounds = array<i64: 128, 128>}, {pipeline_mode = #tpu.pipeline_mode<synchronous>, transform_indices = @transform_2, window_bounds = array<i64: 1, 128>}, {pipeline_mode = #tpu.pipeline_mode<synchronous>, transform_indices = @transform_3, window_bounds = array<i64: 1, 128>}, {pipeline_mode = #tpu.pipeline_mode<synchronous>, transform_indices = @transform_4, window_bounds = array<i64: 128, 128>}, {pipeline_mode = #tpu.pipeline_mode<synchronous>, transform_indices = @transform_5, window_bounds = array<i64: 1, 128>}, {transform_indices = @transform_6, window_bounds = array<i64: 128, 8>}]} {
    %c0 = arith.constant 0 : index
    %c0_0 = arith.constant 0 : index
    %0 = vector.load %arg2[%c0, %c0_0] : memref<128x128xbf16, #tpu.memory_space<vmem>>, vector<128x128xbf16>
    %1 = arith.extf %0 : vector<128x128xbf16> to vector<128x128xf32>
    %c0_1 = arith.constant 0 : index
    %c0_2 = arith.constant 0 : index
    %2 = vector.load %arg4[%c0_1, %c0_2] : memref<1x128xf32, #tpu.memory_space<vmem>>, vector<1x128xf32>
    %3 = vector.broadcast %2 : vector<1x128xf32> to vector<128x128xf32>
    %4 = arith.mulf %1, %3 : vector<128x128xf32>
    %c0_3 = arith.constant 0 : index
    %c0_4 = arith.constant 0 : index
    %5 = vector.load %arg5[%c0_3, %c0_4] : memref<1x128xf32, #tpu.memory_space<vmem>>, vector<1x128xf32>
    %6 = vector.broadcast %5 : vector<1x128xf32> to vector<128x128xf32>
    %7 = arith.addf %4, %6 : vector<128x128xf32>
    %cst = arith.constant 0.000000e+00 : f32
    %8 = vector.broadcast %cst : f32 to vector<128x128xf32>
    %9 = arith.maximumf %7, %8 : vector<128x128xf32>
    %c0_5 = arith.constant 0 : index
    %c0_6 = arith.constant 0 : index
    %10 = vector.load %arg3[%c0_5, %c0_6] : memref<128x128xbf16, #tpu.memory_space<vmem>>, vector<128x128xbf16>
    %c0_7 = arith.constant 0 : index
    %c0_8 = arith.constant 0 : index
    %11 = vector.load %arg6[%c0_7, %c0_8] : memref<128x128xbf16, #tpu.memory_space<vmem>>, vector<128x128xbf16>
    %cst_9 = arith.constant dense<0.000000e+00> : vector<128x128xf32>
    %12 = tpu.matmul %10, %11, %cst_9 {dimension_numbers = #tpu.dot_dimension_numbers<[1], [0], [0], [1], [0, 0, 1, 1], [], []>} : vector<128x128xbf16>, vector<128x128xbf16>, vector<128x128xf32> -> vector<128x128xf32>
    %c0_10 = arith.constant 0 : index
    %c0_11 = arith.constant 0 : index
    %13 = vector.load %arg7[%c0_10, %c0_11] : memref<1x128xf32, #tpu.memory_space<vmem>>, vector<1x128xf32>
    %14 = vector.broadcast %13 : vector<1x128xf32> to vector<128x128xf32>
    %15 = arith.addf %12, %14 : vector<128x128xf32>
    %16 = arith.addf %9, %15 : vector<128x128xf32>
    %17 = vector.extract_strided_slice %16 {offsets = [0, 0], sizes = [128, 8], strides = [1, 1]} : vector<128x128xf32> to vector<128x8xf32>
    %c0_12 = arith.constant 0 : index
    %c0_13 = arith.constant 0 : index
    %18 = vector.load %arg8[%c0_12, %c0_13] : memref<128x8xf32, #tpu.memory_space<vmem>>, vector<128x8xf32>
    tpu.vector_store %arg8[%c0_12, %c0_13], %17 {strides = array<i32>} : memref<128x8xf32, #tpu.memory_space<vmem>>, vector<128x8xf32>,
    return
  }
  func.func @transform_0(%arg0: i32, %arg1: i32) -> (i32, i32) {
    %c2_i32 = arith.constant 2 : i32
    %0 = arith.muli %arg0, %c2_i32 : i32
    %1 = arith.addi %0, %arg1 : i32
    %c0_i32 = arith.constant 0 : i32
    %c0_i32_0 = arith.constant 0 : i32
    return %1, %c0_i32 : i32, i32
  }
  func.func @transform_1(%arg0: i32, %arg1: i32) -> (i32, i32) {
    %c2_i32 = arith.constant 2 : i32
    %0 = arith.muli %arg0, %c2_i32 : i32
    %1 = arith.addi %0, %arg1 : i32
    %c0_i32 = arith.constant 0 : i32
    %c0_i32_0 = arith.constant 0 : i32
    return %1, %c0_i32 : i32, i32
  }
  func.func @transform_2(%arg0: i32, %arg1: i32) -> (i32, i32) {
    %c0_i32 = arith.constant 0 : i32
    %c0_i32_0 = arith.constant 0 : i32
    %c0_i32_1 = arith.constant 0 : i32
    return %c0_i32, %c0_i32_0 : i32, i32
  }
  func.func @transform_3(%arg0: i32, %arg1: i32) -> (i32, i32) {
    %c0_i32 = arith.constant 0 : i32
    %c0_i32_0 = arith.constant 0 : i32
    %c0_i32_1 = arith.constant 0 : i32
    return %c0_i32, %c0_i32_0 : i32, i32
  }
  func.func @transform_4(%arg0: i32, %arg1: i32) -> (i32, i32) {
    %c0_i32 = arith.constant 0 : i32
    %c0_i32_0 = arith.constant 0 : i32
    %c0_i32_1 = arith.constant 0 : i32
    return %c0_i32, %c0_i32_0 : i32, i32
  }
  func.func @transform_5(%arg0: i32, %arg1: i32) -> (i32, i32) {
    %c0_i32 = arith.constant 0 : i32
    %c0_i32_0 = arith.constant 0 : i32
    %c0_i32_1 = arith.constant 0 : i32
    return %c0_i32, %c0_i32_0 : i32, i32
  }
  func.func @transform_6(%arg0: i32, %arg1: i32) -> (i32, i32) {
    %c2_i32 = arith.constant 2 : i32
    %0 = arith.muli %arg0, %c2_i32 : i32
    %1 = arith.addi %0, %arg1 : i32
    %c0_i32 = arith.constant 0 : i32
    %c0_i32_0 = arith.constant 0 : i32
    return %1, %c0_i32 : i32, i32
  }
}

</mosaic_0001>

<bundles_post_ra>
// kernel: _lambda_.5
= control target key start
LH: loop header
LB: loop body
LE: loop exit
PB: predicated region body
PF: predicated region fallthrough
CT: control target
= control target key end

     0   :  { %s1048_s21 = smov 0   ;;  %s1050_s22 = smov 0   ;;  %s1247_s0 = inlined_call_operand.vmem [shape: bf16[512,128], index: 0, kind: input, shape index: {}]   ;;  %s1248_s1 = inlined_call_operand.vmem [shape: bf16[512,128], index: 1, kind: input, shape index: {}]   ;;  %s1249_s2 = inlined_call_operand.vmem [shape: f32[1,128], index: 2, kind: input, shape index: {}]   ;;  %s1250_s3 = inlined_call_operand.vmem [shape: f32[1,128], index: 3, kind: input, shape index: {}]   ;;  %s1251_s4 = inlined_call_operand.vmem [shape: bf16[128,128], index: 4, kind: input, shape index: {}]   ;;  %s1252_s5 = inlined_call_operand.vmem [shape: f32[1,128], index: 5, kind: input, shape index: {}]   ;;  %s1253_s6 = inlined_call_operand.vmem [shape: f32[512,8], index: 6, kind: output, shape index: {}]  }
   0x1   :  { %s1052_s23 = smov 0   ;;  %s1054_s24 = smov 0  }
   0x2   :  { %s1056_s25 = smov 0  }
   0x3 LB: > { %s25_s26 = sadd.s32 1, %s1003_s23  ;;  %s28_s27 = sadd.s32 1, %s1007_s24  ;;  %s1011_s25 = sphi %s1056_s25, %s16_s25   ;;  %s1007_s24 = sphi %s1054_s24, %s1257_s24   ;;  %s1003_s23 = sphi %s1052_s23, %s1256_s23   ;;  %s999_s22 = sphi %s1050_s22, %s1255_s22   ;;  %s995_s21 = sphi %s1048_s21, %s1254_s21  }
   0x4   : > { %p26_p0 = scmp.ge.s32.totalorder %s25_s26, 2  ;;  %p783_p1 = scmp.ge.s32.totalorder %s1011_s25, 1 }
   0x5   : > { %p256_p2 = scmp.lt.s32.totalorder %s1011_s25, 5 }
   0x6   : > { %s1259_s26 = smov (%p26_p0, %s25_s26), 0  ;;  %s1261_s27 = smov (!%p26_p0, %s28_s27), %s1007_s24 }
   0x7   : > { %p257_p3 = pnand %p783_p1, %p256_p2  ;;  %p30_p4 = scmp.ge.s32.totalorder %s1261_s27, 2 }
   0x8   : > { %s784_s30 = sshll.u32 (!%p257_p3), %s999_s22, 1 }
   0x9   : > { %s1263_s27 = smov (%p30_p4, %s1261_s27), 0  ;;  %260 = sbr.rel (%p257_p3) target bundleno = 259 (0x103), region = 44 }
   0xa   : > { %s298_s9 = sadd.s32 (!%p257_p3), %s995_s21, %s784_s30 }
   0xb   : > { %s785_s10 = sshll.u32 (!%p257_p3), %s298_s9, 4 }
   0xc   : > { %p300_p5 = scmp.lt.s32.totalorder (!%p257_p3), %s785_s10, 63 }
   0xe   : > { %v957_v0 = vld [vmem:[%s1251_s4 + $0x38] sm:$0xff]   ;;  %v958_v1 = vld [vmem:[%s1251_s4 + $0x30] sm:$0xff]   ;;  %v959_v2 = vld [vmem:[%s1251_s4 + $0x28] sm:$0xff]   ;;  %s1265_s10 = smov (!%p300_p5, %s785_s10), 63  ;;  %vm670_vm0 = vcmask 64512  }
   0xf   : > { %869 = vmatprep.subr.bf16.mxu0 %v957_v0  ;;  %901 = vmatprep.subr.bf16.mxu1 %v957_v0  ;;  %s786_s13 = sshll.u32 %s1265_s10, 2  ;;  %v960_v3 = vld [vmem:[%s1251_s4 + $0x20] sm:$0xff]   ;;  %v961_v6 = vld [vmem:[%s1251_s4 + $0x18] sm:$0xff]   ;;  %v962_v7 = vld [vmem:[%s1251_s4 + $0x10] sm:$0xff]  }
  0x10   : > { %870 = vmatpush3.bf16.msra.mxu0 %v957_v0  ;;  %909 = vmatpush3.bf16.msra.mxu1 %v957_v0  ;;  %s1098_s18 = scalar_lea.vmem %s1248_s1, %s786_s13  ;;  %v963_v8 = vld [vmem:[%s1251_s4 + $0x8] sm:$0xff]   ;;  %v964_v9 = vld [vmem:[%s1251_s4] sm:$0xff]   ;;  %s303_s11 = scalar_lea.vmem %s1247_s0, %s786_s13 }
  0x11   : > { %871 = vmatprep.subr.bf16.mxu0 %v958_v1  ;;  %902 = vmatprep.subr.bf16.mxu1 %v958_v1  ;;  %v965_v4 = vld [vmem:[%s1098_s18] sm:$0xff]   ;;  %v967_v10 = vld [vmem:[%s1098_s18 + $0x8] sm:$0xff]   ;;  %v969_v12 = vld [vmem:[%s1098_s18 + $0x10] sm:$0xff]  }
  0x12   : > { %v966_v5 = vld [vmem:[%s1098_s18 + $0x20] sm:$0xff]   ;;  %885 = vmatprep.mubr.bf16.mxu0 %v965_v4  ;;  %v968_v11 = vld [vmem:[%s1098_s18 + $0x28] sm:$0xff]   ;;  %v970_v13 = vld [vmem:[%s1098_s18 + $0x30] sm:$0xff]  }
  0x13   : > { %893 = vmatprep.mubr.bf16.mxu1 %v966_v5  ;;  %v971_v14 = vld [vmem:[%s1098_s18 + $0x18] sm:$0xff]   ;;  %v846_v16 = vld [vmem:[%s303_s11 + $0x8] sm:$0xff]   ;;  %v815_v19 = vld [vmem:[%s303_s11] sm:$0xff]  }
  0x14   : > { %872 = vmatpush3.bf16.msra.mxu0 %v958_v1  ;;  %910 = vmatpush3.bf16.msra.mxu1 %v958_v1  ;;  %v972_v15 = vld [vmem:[%s1098_s18 + $0x38] sm:$0xff]   ;;  %v850_v17 = vld [vmem:[%s303_s11 + $0x28] sm:$0xff]   ;;  %v820_v18 = vunpack.c.l.bf16 %v846_v16  ;;  %v849_v20 = vld [vmem:[%s303_s11 + $0x20] sm:$0xff]   ;;  %v816_v23 = vunpack.c.l.bf16 %v815_v19  ;;  %v821_v25 = vunpack.c.h.bf16 %v846_v16  ;;  %v817_v30 = vunpack.c.h.bf16 %v815_v19  ;;  %s792_s18 = sshll.u32 %s1265_s10, 3 }
  0x15   : > { %873 = vmatprep.subr.bf16.mxu0 %v959_v2  ;;  %903 = vmatprep.subr.bf16.mxu1 %v959_v2  ;;  %v1128_v21 = vld [vmem:[%s1249_s2] ss:$0 sm:$0xff]  ;;  %v836_v22 = vunpack.c.l.bf16 %v850_v17  ;;  %v832_v24 = vunpack.c.l.bf16 %v849_v20  ;;  %v837_v26 = vunpack.c.h.bf16 %v850_v17  ;;  %v833_v31 = vunpack.c.h.bf16 %v849_v20  ;;  %v848_v36 = vld [vmem:[%s303_s11 + $0x18] sm:$0xff]   ;;  %v847_v42 = vld [vmem:[%s303_s11 + $0x10] sm:$0xff]   ;;  %s1172_s20 = scalar_lea.vmem %s1253_s6, %s792_s18 }
  0x16   : > { %v369_v27 = vmul.f32 %v820_v18, %v1128_v21  ;;  %v1134_v28 = vld [vmem:[%s1250_s3] ss:$0 sm:$0xff]  ;;  %v367_v32 = vmul.f32 %v816_v23, %v1128_v21  ;;  %v370_v34 = vmul.f32 %v821_v25, %v1128_v21  ;;  %v852_v37 = vld [vmem:[%s303_s11 + $0x38] sm:$0xff]   ;;  %v368_v40 = vmul.f32 %v817_v30, %v1128_v21  ;;  %v851_v43 = vld [vmem:[%s303_s11 + $0x30] sm:$0xff]  }
  0x17   : > { %v377_v29 = vmul.f32 %v836_v22, %v1128_v21  ;;  %v375_v33 = vmul.f32 %v832_v24, %v1128_v21  ;;  %v378_v35 = vmul.f32 %v837_v26, %v1128_v21  ;;  %v376_v41 = vmul.f32 %v833_v31, %v1128_v21  ;;  %v1158_v56 = vld [vmem:[%s1252_s5] ss:$0 sm:$0xff] }
  0x18   : > { %874 = vmatpush3.bf16.msra.mxu0 %v959_v2  ;;  %911 = vmatpush3.bf16.msra.mxu1 %v959_v2  ;;  %v392_v38 = vadd.f32 %v1134_v28, %v369_v27  ;;  %v828_v44 = vunpack.c.l.bf16 %v848_v36  ;;  %v844_v45 = vunpack.c.l.bf16 %v852_v37  ;;  %v390_v46 = vadd.f32 %v1134_v28, %v367_v32 }
  0x19   : > { %875 = vmatprep.subr.bf16.mxu0 %v960_v3  ;;  %904 = vmatprep.subr.bf16.mxu1 %v960_v3  ;;  %v400_v39 = vadd.f32 %v1134_v28, %v377_v29  ;;  %v398_v47 = vadd.f32 %v1134_v28, %v375_v33  ;;  %v393_v48 = vadd.f32 %v1134_v28, %v370_v34  ;;  %v824_v51 = vunpack.c.l.bf16 %v847_v42 }
  0x1a   : > { %v401_v49 = vadd.f32 %v1134_v28, %v378_v35  ;;  %v408_v50 = vmax.f32 %v392_v38, 0.0  ;;  %v840_v52 = vunpack.c.l.bf16 %v851_v43  ;;  %v1150_v54 = vadd.f32 %v1134_v28, %v368_v40 }
  0x1b   : > { %v416_v53 = vmax.f32 %v400_v39, 0.0  ;;  %v1153_v55 = vadd.f32 %v1134_v28, %v376_v41  ;;  %v373_v57 = vmul.f32 %v828_v44, %v1128_v21  ;;  %v381_v58 = vmul.f32 %v844_v45, %v1128_v21 }
  0x1c   : > { %876 = vmatpush3.bf16.msra.mxu0 %v960_v3  ;;  %912 = vmatpush3.bf16.msra.mxu1 %v960_v3  ;;  %v829_v59 = vunpack.c.h.bf16 %v848_v36  ;;  %v845_v60 = vunpack.c.h.bf16 %v852_v37  ;;  %v406_v61 = vmax.f32 %v390_v46, 0.0  ;;  %v414_v62 = vmax.f32 %v398_v47, 0.0 }
  0x1d   : > { %877 = vmatprep.subr.bf16.mxu0 %v961_v6  ;;  %905 = vmatprep.subr.bf16.mxu1 %v961_v6  ;;  %v409_v63 = vmax.f32 %v393_v48, 0.0  ;;  %v417_v0 = vmax.f32 %v401_v49, 0.0  ;;  %v371_v3 = vmul.f32 %v824_v51, %v1128_v21  ;;  %v379_v4 = vmul.f32 %v840_v52, %v1128_v21 }
  0x1e   : > { %v825_v5 = vunpack.c.h.bf16 %v847_v42  ;;  %v382_v16 = vmul.f32 %v845_v60, %v1128_v21 }
  0x1f   : > { %v394_v24 = vadd.f32 %v1134_v28, %v371_v3  ;;  %v402_v25 = vadd.f32 %v1134_v28, %v379_v4 }
  0x20   : > { %878 = vmatpush3.bf16.msra.mxu0 %v961_v6  ;;  %913 = vmatpush3.bf16.msra.mxu1 %v961_v6  ;;  %v841_v6 = vunpack.c.h.bf16 %v851_v43  ;;  %v372_v26 = vmul.f32 %v825_v5, %v1128_v21 }
  0x21   : > { %879 = vmatprep.subr.bf16.mxu0 %v962_v7  ;;  %906 = vmatprep.subr.bf16.mxu1 %v962_v7  ;;  %v410_v44 = vmax.f32 %v394_v24, 0.0  ;;  %v418_v45 = vmax.f32 %v402_v25, 0.0 }
  0x22   : > { %v380_v27 = vmul.f32 %v841_v6, %v1128_v21  ;;  %v395_v46 = vadd.f32 %v1134_v28, %v372_v26 }
  0x24   : > { %880 = vmatpush3.bf16.msra.mxu0 %v962_v7  ;;  %914 = vmatpush3.bf16.msra.mxu1 %v962_v7  ;;  %v403_v47 = vadd.f32 %v1134_v28, %v380_v27 }
  0x25   : > { %881 = vmatprep.subr.bf16.mxu0 %v963_v8  ;;  %907 = vmatprep.subr.bf16.mxu1 %v963_v8 }
  0x28   : > { %882 = vmatpush3.bf16.msra.mxu0 %v963_v8  ;;  %915 = vmatpush3.bf16.msra.mxu1 %v963_v8 }
  0x29   : > { %883 = vmatprep.subr.bf16.mxu0 %v964_v9  ;;  %908 = vmatprep.subr.bf16.mxu1 %v964_v9 }
  0x2c   : > { %884 = vmatpush3.bf16.msra.mxu0 %v964_v9  ;;  %916 = vmatpush3.bf16.msra.mxu1 %v964_v9  ;;  %v407_v9 = vmax.f32 %v1150_v54, 0.0 }
  0x2f   : > { %886 = vmatmul.mubr.bf16.vlgmr.msra.gmra.mxu0 %v967_v10  ;;  %894 = vmatmul.mubr.bf16.vlgmr.msra.gmra.mxu1 %v968_v11  ;;  %v415_v10 = vmax.f32 %v1153_v55, 0.0 }
  0x30   : > { %889 = vmatprep.mubr.bf16.mxu0 %v969_v12  ;;  %897 = vmatprep.mubr.bf16.mxu1 %v970_v13  ;;  %v396_v13 = vadd.f32 %v1134_v28, %v373_v57 }
  0x32   : > { %v412_v35 = vmax.f32 %v396_v13, 0.0 }
  0x37   : > { %890 = vmatmul.mubr.bf16.gmra.mxu0 %v971_v14  ;;  %898 = vmatmul.mubr.bf16.gmra.mxu1 %v972_v15  ;;  %v404_v14 = vadd.f32 %v1134_v28, %v381_v58  ;;  %v374_v15 = vmul.f32 %v829_v59, %v1128_v21  ;;  %v405_v21 = vadd.f32 %v1134_v28, %v382_v16 }
  0x39   : > { %v420_v36 = vmax.f32 %v404_v14, 0.0  ;;  %v397_v37 = vadd.f32 %v1134_v28, %v374_v15  ;;  %v421_v55 = vmax.f32 %v405_v21, 0.0 }
  0x3b   : > { %v413_v54 = vmax.f32 %v397_v37, 0.0 }
  0xef   : > { %v887_v1 = vpop.f32.mrf.mxu0  ;;  %v895_v2 = vpop.f32.mrf.mxu1 }
  0xf0   : > { %v600_v7 = vadd.f32 %v887_v1, %v1158_v56  ;;  %v632_v8 = vadd.f32 %v895_v2, %v1158_v56 }
  0xf1   : > { %v591_v11 = vpop.f32.mrf.mxu0  ;;  %v623_v12 = vpop.f32.mrf.mxu1 }
  0xf2   : > { %v656_v17 = vadd.f32 %v600_v7, %v408_v50  ;;  %v664_v18 = vadd.f32 %v632_v8, %v416_v53  ;;  %v592_v19 = vadd.f32 %v1158_v56, %v591_v11  ;;  %v624_v20 = vadd.f32 %v1158_v56, %v623_v12 }
  0xf3   : > { %v888_v22 = vpop.f32.mrf.mxu0  ;;  %v896_v23 = vpop.f32.mrf.mxu1 }
  0xf4   : > { %673 = vst.msk [vmem:[%s1172_s20 + $0x10] sm:$0xff] %vm670_vm0, %v656_v17  ;;  %681 = vst.msk [vmem:[%s1172_s20 + $0x50] sm:$0xff] %vm670_vm0, %v664_v18  ;;  %v654_v29 = vadd.f32 %v592_v19, %v406_v61  ;;  %v662_v30 = vadd.f32 %v624_v20, %v414_v62  ;;  %v603_v31 = vadd.f32 %v888_v22, %v1158_v56  ;;  %v411_v62 = vmax.f32 %v395_v46, 0.0 }
  0xf5   : > { %v635_v32 = vadd.f32 %v896_v23, %v1158_v56  ;;  %v594_v33 = vpop.f32.mrf.mxu0  ;;  %v626_v34 = vpop.f32.mrf.mxu1 }
  0xf6   : > { %671 = vst.msk [vmem:[%s1172_s20] sm:$0xff] %vm670_vm0, %v654_v29  ;;  %679 = vst.msk [vmem:[%s1172_s20 + $0x40] sm:$0xff] %vm670_vm0, %v662_v30  ;;  %v657_v38 = vadd.f32 %v603_v31, %v409_v63  ;;  %v595_v40 = vadd.f32 %v1158_v56, %v594_v33  ;;  %v627_v41 = vadd.f32 %v1158_v56, %v626_v34  ;;  %v419_v63 = vmax.f32 %v403_v47, 0.0 }
  0xf7   : > { %v665_v39 = vadd.f32 %v635_v32, %v417_v0  ;;  %v891_v42 = vpop.f32.mrf.mxu0  ;;  %v899_v43 = vpop.f32.mrf.mxu1 }
  0xf8   : > { %674 = vst.msk [vmem:[%s1172_s20 + $0x18] sm:$0xff] %vm670_vm0, %v657_v38  ;;  %v655_v48 = vadd.f32 %v595_v40, %v407_v9  ;;  %v663_v49 = vadd.f32 %v627_v41, %v415_v10  ;;  %v616_v50 = vadd.f32 %v891_v42, %v1158_v56  ;;  %v648_v51 = vadd.f32 %v899_v43, %v1158_v56 }
  0xf9   : > { %682 = vst.msk [vmem:[%s1172_s20 + $0x58] sm:$0xff] %vm670_vm0, %v665_v39  ;;  %v607_v52 = vpop.f32.mrf.mxu0  ;;  %v639_v53 = vpop.f32.mrf.mxu1 }
  0xfa   : > { %672 = vst.msk [vmem:[%s1172_s20 + $0x8] sm:$0xff] %vm670_vm0, %v655_v48  ;;  %680 = vst.msk [vmem:[%s1172_s20 + $0x48] sm:$0xff] %vm670_vm0, %v663_v49  ;;  %v660_v28 = vadd.f32 %v616_v50, %v412_v35  ;;  %v668_v57 = vadd.f32 %v648_v51, %v420_v36  ;;  %v608_v58 = vadd.f32 %v1158_v56, %v607_v52 }
  0xfb   : > { %v640_v59 = vadd.f32 %v1158_v56, %v639_v53  ;;  %v892_v60 = vpop.f32.mrf.mxu0  ;;  %v900_v61 = vpop.f32.mrf.mxu1 }
  0xfc   : > { %677 = vst.msk [vmem:[%s1172_s20 + $0x30] sm:$0xff] %vm670_vm0, %v660_v28  ;;  %685 = vst.msk [vmem:[%s1172_s20 + $0x70] sm:$0xff] %vm670_vm0, %v668_v57  ;;  %v658_v0 = vadd.f32 %v608_v58, %v410_v44  ;;  %v619_v2 = vadd.f32 %v892_v60, %v1158_v56  ;;  %v651_v3 = vadd.f32 %v900_v61, %v1158_v56 }
  0xfd   : > { %v666_v1 = vadd.f32 %v640_v59, %v418_v45  ;;  %v610_v4 = vpop.f32.mrf.mxu0  ;;  %v642_v5 = vpop.f32.mrf.mxu1 }
  0xfe   : > { %675 = vst.msk [vmem:[%s1172_s20 + $0x20] sm:$0xff] %vm670_vm0, %v658_v0  ;;  %v661_v6 = vadd.f32 %v619_v2, %v413_v54  ;;  %v669_v7 = vadd.f32 %v651_v3, %v421_v55  ;;  %v611_v8 = vadd.f32 %v1158_v56, %v610_v4  ;;  %v643_v9 = vadd.f32 %v1158_v56, %v642_v5 }
  0xff   : > { %683 = vst.msk [vmem:[%s1172_s20 + $0x60] sm:$0xff] %vm670_vm0, %v666_v1 }
 0x100   : > { %678 = vst.msk [vmem:[%s1172_s20 + $0x38] sm:$0xff] %vm670_vm0, %v661_v6  ;;  %686 = vst.msk [vmem:[%s1172_s20 + $0x78] sm:$0xff] %vm670_vm0, %v669_v7  ;;  %v659_v10 = vadd.f32 %v611_v8, %v411_v62  ;;  %v667_v11 = vadd.f32 %v643_v9, %v419_v63 }
 0x102   : > { %676 = vst.msk [vmem:[%s1172_s20 + $0x28] sm:$0xff] %vm670_vm0, %v659_v10  ;;  %684 = vst.msk [vmem:[%s1172_s20 + $0x68] sm:$0xff] %vm670_vm0, %v667_v11 }
 0x103 PF: > { %s16_s25 = sadd.s32 1, %s1011_s25   ;;  %s1254_s21 = smov %s1003_s23 }
 0x104   : > { %p13_p6 = scmp.ge.s32.totalorder %s16_s25, 6   ;;  %s1255_s22 = smov %s1007_s24 }
 0x105   : > { %s1256_s23 = smov %s1259_s26  ;;  %s1257_s24 = smov %s1263_s27 }
 0x106   :  { %15 = sbr.rel (!%p13_p6) target bundleno = 3 (0x3), region = 77 }

// kernel: _lambda_.3
= control target key start
LH: loop header
LB: loop body
LE: loop exit
PB: predicated region body
PF: predicated region fallthrough
CT: control target
= control target key end

     0   :  { %s3584_s21 = smov 0   ;;  %s3586_s22 = smov 0   ;;  %s4479_s0 = inlined_call_operand.vmem [shape: bf16[512,128], index: 0, kind: input, shape index: {}, may-alias: {0,1,2}]   ;;  %s4480_s1 = inlined_call_operand.vmem [shape: bf16[512,128], index: 1, kind: input, shape index: {}, may-alias: {0,1,2}]   ;;  %s4481_s2 = inlined_call_operand.vmem [shape: bf16[512,128], index: 2, kind: input, shape index: {}, may-alias: {0,1,2}]   ;;  %s4482_s3 = inlined_call_operand.vmem [shape: bf16[3,384,128], index: 3, kind: input, shape index: {}]   ;;  %s4483_s4 = inlined_call_operand.vmem [shape: f32[1,128], index: 4, kind: input, shape index: {}]   ;;  %s4484_s5 = inlined_call_operand.vmem [shape: bf16[512,128], index: 5, kind: output, shape index: {0}]   ;;  %s4485_s6 = inlined_call_operand.vmem [shape: f32[4,2,128], index: 6, kind: output, shape index: {1}]  }
   0x1   :  { %s3588_s23 = smov 0   ;;  %s3590_s24 = smov 0  }
   0x2   :  { %s3592_s25 = smov 0  }
   0x3 LB: > { %s26_s26 = sadd.s32 1, %s3538_s23  ;;  %s29_s27 = sadd.s32 1, %s3542_s24  ;;  %s3546_s25 = sphi %s3592_s25, %s17_s25   ;;  %s3542_s24 = sphi %s3590_s24, %s4554_s24   ;;  %s3538_s23 = sphi %s3588_s23, %s4553_s23   ;;  %s3534_s22 = sphi %s3586_s22, %s4552_s22   ;;  %s3530_s21 = sphi %s3584_s21, %s4551_s21  }
   0x4   : > { %p27_p0 = scmp.ge.s32.totalorder %s26_s26, 2  ;;  %p2576_p1 = scmp.ge.s32.totalorder %s3546_s25, 1 }
   0x5   : > { %p314_p2 = scmp.lt.s32.totalorder %s3546_s25, 5 }
   0x6   : > { %s4556_s26 = smov (%p27_p0, %s26_s26), 0  ;;  %s4558_s27 = smov (!%p27_p0, %s29_s27), %s3542_s24 }
   0x7   : > { %p315_p3 = pnand %p2576_p1, %p314_p2  ;;  %p31_p4 = scmp.ge.s32.totalorder %s4558_s27, 2 }
   0x8   : > { %s2577_s30 = sshll.u32 (!%p315_p3), %s3534_s22, 1  ;;  %s2581_s16 = sshll.u32 (!%p315_p3), %s3530_s21, 3 }
   0x9   : > { %s4560_s27 = smov (%p31_p4, %s4558_s27), 0  ;;  %318 = sbr.rel (%p315_p3) target bundleno = 426 (0x1aa), region = 40 }
   0xa   : > { %s3626_s9 = sadd.s32 (!%p315_p3), %s3530_s21, %s2577_s30  ;;  %s2582_s19 = sadd.s32 (!%p315_p3), 4294967295, %s2581_s16 }
   0xb   : > { %s2578_s14 = sshll.u32 (!%p315_p3), %s3626_s9, 4  ;;  %p389_p6 = scmp.gt.s32.totalorder (!%p315_p3), %s2582_s19, 0 }
   0xc   : > { %p379_p5 = scmp.lt.s32.totalorder (!%p315_p3), %s2578_s14, 63  ;;  %s2580_s29 = sshll.u32 (!%p315_p3), %s3534_s22, 4 }
   0xd   : > { %p441_p8 = scmp.eq.s32.totalorder (!%p315_p3), %s3530_s21, 0  ;;  %s3755_s7 = sadd.s32 (!%p315_p3), 8, %s2581_s16 }
   0xe   : > { %v3418_v0 = vld [vmem:[%s4482_s3 + $0x138] sm:$0xff]   ;;  %v3421_v3 = vld [vmem:[%s4482_s3 + $0x130] sm:$0xff]   ;;  %v513_v6 = vlaneseq  ;;  %v3424_v7 = vld [vmem:[%s4482_s3 + $0x128] sm:$0xff]   ;;  %s4562_s14 = smov (!%p379_p5, %s2578_s14), 63  ;;  %s4564_s19 = smov (!%p389_p6, %s2582_s19), 0  ;;  %vm4487_vm3 = vmmov 1  }
   0xf   : > { %v3419_v1 = vld [vmem:[%s4482_s3 + $0x178] sm:$0xff]   ;;  %3041 = vmatprep.subr.bf16.mxu0 %v3418_v0  ;;  %v3422_v4 = vld [vmem:[%s4482_s3 + $0x170] sm:$0xff]   ;;  %v3425_v8 = vld [vmem:[%s4482_s3 + $0x168] sm:$0xff]   ;;  %s2579_s13 = sshll.u32 %s4562_s14, 2  ;;  %s391_s15 = sadd.s32 %s2580_s29, %s4564_s19 }
  0x10   : > { %v3420_v2 = vld [vmem:[%s4482_s3 + $0xf8] sm:$0xff]   ;;  %3281 = vmatprep.subr.bf16.mxu1 %v3419_v1  ;;  %v3423_v5 = vld [vmem:[%s4482_s3 + $0xf0] sm:$0xff]   ;;  %v3426_v9 = vld [vmem:[%s4482_s3 + $0xe8] sm:$0xff]   ;;  %v3653_v11 = vshrl.u32 %v513_v6, 7  ;;  %s2583_s20 = sshll.u32 %s391_s15, 1  ;;  %s3698_s10 = scalar_lea.vmem %s4479_s0, %s2579_s13 }
  0x11   : > { %3042 = vmatpush3.bf16.msra.mxu0 %v3420_v2  ;;  %3282 = vmatpush3.bf16.msra.mxu1 %v3419_v1  ;;  %v3427_v10 = vld [vmem:[%s4482_s3 + $0x120] sm:$0xff]   ;;  %v3430_v14 = vld [vmem:[%s4482_s3 + $0x118] sm:$0xff]   ;;  %v3433_v17 = vld [vmem:[%s4482_s3 + $0x110] sm:$0xff]   ;;  %p393_p7 = scmp.lt.s32.totalorder %s2583_s20, 63  ;;  %p407_p9 = scmp.lt.s32.totalorder %s3755_s7, 15 }
  0x12   : > { %3043 = vmatprep.subr.bf16.mxu0 %v3421_v3  ;;  %3283 = vmatprep.subr.bf16.mxu1 %v3422_v4  ;;  %v3428_v12 = vld [vmem:[%s4482_s3 + $0x160] sm:$0xff]   ;;  %v3431_v15 = vld [vmem:[%s4482_s3 + $0x158] sm:$0xff]   ;;  %v515_v18 = vadd.s32 8, %v3653_v11  ;;  %v3434_v19 = vld [vmem:[%s4482_s3 + $0x150] sm:$0xff]   ;;  %v517_v21 = vadd.s32 24, %v3653_v11  ;;  %v519_v41 = vadd.s32 40, %v3653_v11  ;;  %s4402_s22 = scalar_lea.vmem %s4484_s5, %s2579_s13 }
  0x13   : > { %v3429_v13 = vld [vmem:[%s4482_s3 + $0xe0] sm:$0xff]   ;;  %v3432_v16 = vld [vmem:[%s4482_s3 + $0xd8] sm:$0xff]   ;;  %v3435_v20 = vld [vmem:[%s4482_s3 + $0xd0] sm:$0xff]   ;;  %s4566_s20 = smov (!%p393_p7, %s2583_s20), 63  ;;  %v534_v45 = vand.u32 15, %v3653_v11  ;;  %v521_v52 = vadd.s32 56, %v3653_v11 }
  0x14   : > { %v3436_v22 = vld [vmem:[%s4482_s3 + $0x108] sm:$0xff]   ;;  %v541_v25 = vand.u32 15, %v515_v18  ;;  %v3439_v26 = vld [vmem:[%s4482_s3 + $0x100] sm:$0xff]   ;;  %s2584_s28 = sshll.u32 %s4566_s20, 2  ;;  %v555_v27 = vand.u32 15, %v517_v21  ;;  %v3028_v37 = vld [vmem:[%s3698_s10 + $0x10] sm:$0xff]  }
  0x15   : > { %3044 = vmatpush3.bf16.msra.mxu0 %v3423_v5  ;;  %3284 = vmatpush3.bf16.msra.mxu1 %v3422_v4  ;;  %v3437_v23 = vld [vmem:[%s4482_s3 + $0x148] sm:$0xff]   ;;  %v2956_v28 = vld [vmem:[%s3698_s10] sm:$0xff]   ;;  %s396_s8 = scalar_lea.vmem %s4480_s1, %s2584_s28  ;;  %v2965_v39 = vunpack.c.l.bf16 %v3028_v37  ;;  %v2966_v40 = vunpack.c.h.bf16 %v3028_v37  ;;  %v3443_v48 = vld [vmem:[%s4482_s3 + $0x78] sm:$0xff]   ;;  %v569_v51 = vand.u32 15, %v519_v41  ;;  %v516_v55 = vadd.s32 16, %v3653_v11  ;;  %s4568_s7 = smov (!%p407_p9, %s3755_s7), 15 }
  0x16   : > { %3045 = vmatprep.subr.bf16.mxu0 %v3424_v7  ;;  %3285 = vmatprep.subr.bf16.mxu1 %v3425_v8  ;;  %v3438_v24 = vld [vmem:[%s4482_s3 + $0xc8] sm:$0xff]   ;;  %v3712_v29 = vld [vmem:[%s3698_s10] sm:$0xff]  ;;  %v2957_v32 = vunpack.c.l.bf16 %v2956_v28  ;;  %v2958_v33 = vunpack.c.h.bf16 %v2956_v28  ;;  %s447_s20 = scalar_select %p441_p8, 1, 0  ;;  %vm3732_vm0 = vcmp.le.s32.totalorder %v541_v25, 14  ;;  %vm3737_vm1 = vcmp.le.s32.totalorder %v555_v27, 14 }
  0x17   : > { %v3027_v30 = vld [vmem:[%s3698_s10 + $0x8] sm:$0xff]   ;;  %v3440_v31 = vld [vmem:[%s4482_s3 + $0x140] sm:$0xff]   ;;  %1250 = vmatprep.mubr.bf16.mxu0 %v3712_v29  ;;  %499 = vst [vmem:[#allocation2 + $0x38] sm:$0xff] %v2965_v39  ;;  %500 = vst [vmem:[#allocation2 + $0x40] sm:$0xff] %v2966_v40  ;;  %v523_v57 = vadd.s32 72, %v3653_v11  ;;  %vm3769_vm5 = vcmp.ge.s32.totalorder %v534_v45, 1  ;;  %s409_s15 = sadd.s32 %s2580_s29, %s4568_s7 }
  0x18   : > { %v2961_v34 = vunpack.c.l.bf16 %v3027_v30  ;;  %v2962_v35 = vunpack.c.h.bf16 %v3027_v30  ;;  %v3721_v36 = vld [vmem:[%s396_s8] sm:$0xff]   ;;  %495 = vst [vmem:[#allocation2 + $0x18] sm:$0xff] %v2957_v32  ;;  %496 = vst [vmem:[#allocation2 + $0x20] sm:$0xff] %v2958_v33  ;;  %v448_v44 = vstv %s447_s20  ;;  %v3444_v50 = vld [vmem:[%s4482_s3 + $0xb8] sm:$0xff]   ;;  %vm3784_vm7 = vcmp.le.s32.totalorder %v569_v51, 14  ;;  %s2587_s28 = sshll.u32 %s409_s15, 1 }
  0x19   : > { %3046 = vmatpush3.bf16.msra.mxu0 %v3426_v9  ;;  %3286 = vmatpush3.bf16.msra.mxu1 %v3425_v8  ;;  %v2950_v38 = vunpack.c.h.bf16 %v3721_v36  ;;  %v3441_v42 = vld [vmem:[%s4482_s3 + $0xc0] sm:$0xff]   ;;  %vm3741_vm2 = vcmp.eq.s32.totalorder %v448_v44, 1  ;;  %vm3761_vm4 = vmpackc.low %vm3732_vm0, %vm4487_vm3  ;;  %v3029_v54 = vld [vmem:[%s3698_s10 + $0x18] sm:$0xff]   ;;  %v583_v8 = vand.u32 15, %v521_v52  ;;  %v3828_v21 = vadd.s32 104, %v3653_v11  ;;  %p411_p10 = scmp.lt.s32.totalorder %s2587_s28, 63 }
  0x1a   : > { %3047 = vmatprep.subr.bf16.mxu0 %v3427_v10  ;;  %3287 = vmatprep.subr.bf16.mxu1 %v3428_v12  ;;  %497 = vst [vmem:[#allocation2 + $0x28] sm:$0xff] %v2961_v34  ;;  %498 = vst [vmem:[#allocation2 + $0x30] sm:$0xff] %v2962_v35  ;;  %v3030_v56 = vld [vmem:[%s3698_s10 + $0x20] sm:$0xff]   ;;  %v2969_v60 = vunpack.c.l.bf16 %v3029_v54  ;;  %v2970_v61 = vunpack.c.h.bf16 %v3029_v54  ;;  %v3445_v1 = vld [vmem:[%s4482_s3 + $0x38] sm:$0xff]   ;;  %p442_p11 = scmp.eq.s32.totalorder %s3530_s21, 1  ;;  %p434_p12 = scmp.lt.s32.totalorder %s3626_s9, 3 }
  0x1b   : > { %v451_v49 = vsel %vm3741_vm2, 0.0, %v2950_v38  ;;  %vm3776_vm6 = vmpackc.low %vm3737_vm1, %vm4487_vm3  ;;  %v2973_v62 = vunpack.c.l.bf16 %v3030_v56  ;;  %v2974_v3 = vunpack.c.h.bf16 %v3030_v56  ;;  %vm3841_vm10 = vcmp.le.s32.totalorder %v583_v8, 14  ;;  %v3449_v27 = vld [vmem:[%s4482_s3 + $0x68] sm:$0xff]   ;;  %s4570_s28 = smov (!%p411_p10, %s2587_s28), 63  ;;  %v3899_v52 = vld [vmem:[%s3698_s10 + $0x10] sm:$0xff] }
  0x1c   : > { %494 = vst [vmem:[#allocation2 + $0x10] sm:$0xff] %v451_v49  ;;  %501 = vst [vmem:[#allocation2 + $0x48] sm:$0xff] %v2969_v60  ;;  %v3451_v41 = vld [vmem:[%s4482_s3 + $0x28] sm:$0xff]   ;;  %v625_v51 = vand.u32 15, %v3828_v21  ;;  %v3032_v54 = vld [vmem:[%s3698_s10 + $0x30] sm:$0xff]   ;;  %s2588_s12 = sshll.u32 %s4570_s28, 2 }
  0x1d   : > { %3048 = vmatpush3.bf16.msra.mxu0 %v3429_v13  ;;  %3288 = vmatpush3.bf16.msra.mxu1 %v3428_v12  ;;  %502 = vst [vmem:[#allocation2 + $0x50] sm:$0xff] %v2970_v61  ;;  %503 = vst [vmem:[#allocation2 + $0x58] sm:$0xff] %v2973_v62  ;;  %v3446_v12 = vld [vmem:[%s4482_s3 + $0x70] sm:$0xff]   ;;  %v3806_v13 = vld [vmem:[%s3698_s10 + $0x8] sm:$0xff]  ;;  %s3904_s19 = scalar_select %p442_p11, 1, 0  ;;  %v2981_v56 = vunpack.c.l.bf16 %v3032_v54 }
  0x1e   : > { %3049 = vmatprep.subr.bf16.mxu0 %v3430_v14  ;;  %3289 = vmatprep.subr.bf16.mxu1 %v3431_v15  ;;  %vm3796_vm8 = vmpackc.low %vm4487_vm3, %vm3769_vm5  ;;  %v548_v14 = vand.u32 15, %v516_v55  ;;  %504 = vst [vmem:[#allocation2 + $0x60] sm:$0xff] %v2974_v3  ;;  %v840_v25 = vld [vmem:[#allocation2 + $0x39] sm:$0xff]  ;;  %v3456_v60 = vld [vmem:[%s4482_s3 + $0xa8] sm:$0xff]   ;;  %v520_v61 = vadd.s32 48, %v3653_v11  ;;  %s414_s29 = scalar_lea.vmem %s4481_s2, %s2588_s12  ;;  %s4572_s9 = smov (!%p434_p12, %s3626_s9), 3 }
  0x1f   : > { %v836_v63 = vld [vmem:[#allocation2 + $0x19] sm:$0xff]  ;;  %vm3817_vm9 = vmpackc.low %vm3784_vm7, %vm4487_vm3  ;;  %507 = vst [vmem:[#allocation2 + $0x78] sm:$0xff] %v2981_v56  ;;  %v3471_v47 = vld [vmem:[%s4482_s3 + $0x88] sm:$0xff]   ;;  %s2593_s14 = sshll.u32 %s4572_s9, 1 }
  0x20   : > { %v757_v5 = vld [vmem:[#allocation2 + $0x1f] sm:$0xff]  ;;  %vm3852_vm11 = vcmp.ge.s32.totalorder %v548_v14, 1  ;;  %vm3870_vm13 = vmpackc.low %vm3841_vm10, %vm4487_vm3  ;;  %v4527_v14 = vmov 0  ;;  %s437_s30 = scalar_lea.vmem %s4485_s6, %s2593_s14 }
  0x21   : > { %3050 = vmatpush3.bf16.msra.mxu0 %v3432_v16  ;;  %3290 = vmatpush3.bf16.msra.mxu1 %v3431_v15  ;;  %v837_v0 = vld [vmem:[#allocation2 + $0x21] sm:$0xff]  ;;  %v838_v6 = vld [vmem:[#allocation2 + $0x29] sm:$0xff]  ;;  %v839_v7 = vld [vmem:[#allocation2 + $0x31] sm:$0xff]  ;;  %v597_v15 = vand.u32 15, %v523_v57  ;;  %v2982_v57 = vunpack.c.h.bf16 %v3032_v54 }
  0x22   : > { %3051 = vmatprep.subr.bf16.mxu0 %v3433_v17  ;;  %3291 = vmatprep.subr.bf16.mxu1 %v3434_v19  ;;  %v3788_v4 = vpack.c.bf16 %v837_v0, %v836_v63  ;;  %v3800_v10 = vpack.c.bf16 %v839_v7, %v838_v6  ;;  %v3447_v17 = vld [vmem:[%s4482_s3 + $0x30] sm:$0xff]   ;;  %v758_v30 = vld [vmem:[#allocation2 + $0x27] sm:$0xff]  ;;  %vm3885_vm14 = vmpackc.low %vm4487_vm3, %vm3852_vm11  ;;  %vm3970_vm11 = vcmp.le.s32.totalorder %v625_v51, 14 }
  0x23   : > { %v756_v16 = vld [vmem:[#allocation2 + $0x17] sm:$0xff]  ;;  %v841_v32 = vld [vmem:[#allocation2 + $0x41] sm:$0xff]  ;;  %vm3857_vm12 = vcmp.le.s32.totalorder %v597_v15, 14  ;;  %508 = vst [vmem:[#allocation2 + $0x80] sm:$0xff] %v2982_v57 }
  0x24   : > { %3297 = vmatprep.mubr.msk.bf16.mxu1 %vm3761_vm4, %v3788_v4  ;;  %v842_v33 = vld [vmem:[#allocation2 + $0x49] sm:$0xff]  ;;  %v843_v34 = vld [vmem:[#allocation2 + $0x51] sm:$0xff]  ;;  %v3865_v38 = vpack.c.bf16 %v841_v32, %v840_v25  ;;  %v3453_v55 = vld [vmem:[%s4482_s3 + $0x20] sm:$0xff]  }
  0x25   : > { %3052 = vmatpush3.bf16.msra.mxu0 %v3435_v20  ;;  %3292 = vmatpush3.bf16.msra.mxu1 %v3434_v19  ;;  %v3822_v19 = vadd.s32 32, %v3653_v11  ;;  %v3825_v20 = vadd.s32 88, %v3653_v11  ;;  %v3874_v40 = vpack.c.bf16 %v843_v34, %v842_v33  ;;  %v760_v58 = vld [vmem:[#allocation2 + $0x37] sm:$0xff]  ;;  %v761_v0 = vld [vmem:[#allocation2 + $0x3f] sm:$0xff]  ;;  %vm3935_vm1 = vmpackc.low %vm3857_vm12, %vm4487_vm3 }
  0x26   : > { %3053 = vmatprep.subr.bf16.mxu0 %v3436_v22  ;;  %3293 = vmatprep.subr.bf16.mxu1 %v3437_v23  ;;  %v3832_v22 = vpack.c.bf16 %v757_v5, %v756_v16  ;;  %v3455_v63 = vld [vmem:[%s4482_s3 + $0x58] sm:$0xff]   ;;  %v529_v5 = vadd.s32 120, %v3653_v11  ;;  %v3458_v15 = vld [vmem:[%s4482_s3 + $0x50] sm:$0xff]   ;;  %v762_v34 = vld [vmem:[#allocation2 + $0x47] sm:$0xff] }
  0x27   : > { %v562_v43 = vand.u32 15, %v3822_v19  ;;  %v611_v44 = vand.u32 15, %v3825_v20  ;;  %v844_v2 = vld [vmem:[#allocation2 + $0x59] sm:$0xff]  ;;  %v4529_v19 = vmov 0  ;;  %v3463_v51 = vld [vmem:[%s4482_s3 + $0x8] sm:$0xff]  }
  0x28   : > { %v3457_v7 = vld [vmem:[%s4482_s3 + $0x18] sm:$0xff]   ;;  %v639_v32 = vand.u32 15, %v529_v5  ;;  %v3464_v56 = vld [vmem:[%s4482_s3 + $0x40] sm:$0xff]  }
  0x29   : > { %3054 = vmatpush3.bf16.msra.mxu0 %v3438_v24  ;;  %3294 = vmatpush3.bf16.msra.mxu1 %v3437_v23  ;;  %v3450_v23 = vld [vmem:[%s4482_s3 + $0xb0] sm:$0xff]   ;;  %v2949_v24 = vunpack.c.l.bf16 %v3721_v36  ;;  %vm3920_vm15 = vcmp.ge.s32.totalorder %v562_v43, 1  ;;  %vm749_vm0 = vcmp.le.s32.totalorder %v611_v44, 14  ;;  %v3033_v8 = vld [vmem:[%s3698_s10 + $0x38] sm:$0xff]   ;;  %v3462_v43 = vld [vmem:[%s4482_s3 + $0xa0] sm:$0xff]  }
  0x2a   : > { %3055 = vmatprep.subr.bf16.mxu0 %v3439_v26  ;;  %3295 = vmatprep.subr.bf16.mxu1 %v3440_v31  ;;  %vm3943_vm5 = vmpackc.low %vm4487_vm3, %vm3920_vm15  ;;  %v2985_v16 = vunpack.c.l.bf16 %v3033_v8  ;;  %v2986_v20 = vunpack.c.h.bf16 %v3033_v8  ;;  %v576_v26 = vand.u32 15, %v520_v61  ;;  %v763_v44 = vld [vmem:[#allocation2 + $0x4f] sm:$0xff]  ;;  %v765_v8 = vld [vmem:[#allocation2 + $0x5f] sm:$0xff] }
  0x2b   : > { %v450_v37 = vsel %vm3741_vm2, 0.0, %v2949_v24  ;;  %vm3954_vm7 = vmpackc.low %vm749_vm0, %vm4487_vm3  ;;  %v3968_v24 = vld [vmem:[%s3698_s10 + $0x18] sm:$0xff]  ;;  %vm753_vm0 = vcmp.le.s32.totalorder %v639_v32, 14 }
  0x2c   : > { %493 = vst [vmem:[#allocation2 + $0x8] sm:$0xff] %v450_v37  ;;  %v4528_v14 = vsel %vm3954_vm7, 4294967295, %v4527_v14  ;;  %509 = vst [vmem:[#allocation2 + $0x88] sm:$0xff] %v2985_v16  ;;  %v3461_v37 = vld [vmem:[%s4482_s3 + $0x48] sm:$0xff]   ;;  %vm728_vm12 = vcmp.ge.s32.totalorder %v576_v26, 1  ;;  %v3469_v16 = vld [vmem:[%s4482_s3 + $0x90] sm:$0xff]  }
  0x2d   : > { %3056 = vmatpush3.bf16.msra.mxu0 %v3441_v42  ;;  %3296 = vmatpush3.bf16.msra.mxu1 %v3440_v31  ;;  %v759_v31 = vld [vmem:[#allocation2 + $0x2f] sm:$0xff]  ;;  %510 = vst [vmem:[#allocation2 + $0x90] sm:$0xff] %v2986_v20  ;;  %vm4006_vm15 = vmpackc.low %vm3970_vm11, %vm4487_vm3 }
  0x2e   : > { %3121 = vmatprep.subr.bf16.mxu1 %v3443_v48  ;;  %3313 = vmatprep.subr.bf16.mxu0 %v3444_v50  ;;  %v3031_v42 = vld [vmem:[%s3698_s10 + $0x28] sm:$0xff]   ;;  %v3889_v46 = vpack.c.bf16 %v759_v31, %v758_v30  ;;  %v3452_v48 = vld [vmem:[%s4482_s3 + $0x60] sm:$0xff]   ;;  %v3459_v31 = vld [vmem:[%s4482_s3 + $0x10] sm:$0xff]  }
  0x2f   : > { %v2977_v49 = vunpack.c.l.bf16 %v3031_v42  ;;  %vm4030_vm11 = vmpackc.low %vm753_vm0, %vm4487_vm3 }
  0x30   : > { %3298 = vmatmul.mubr.msk.bf16.vlgmr.msra.gmra.mxu1 %vm3776_vm6, %v3800_v10  ;;  %2668 = vmatmul.mubr.msk.bf16.vlgmr.msra.gmra.mxu0 %vm3796_vm8, %v3832_v22  ;;  %vm3498_vm0 = vmneg %vm3741_vm2 }
  0x31   : > { %3122 = vmatpush3.bf16.msra.mxu1 %v3445_v1  ;;  %3314 = vmatpush3.bf16.msra.mxu0 %v3444_v50  ;;  %v2978_v50 = vunpack.c.h.bf16 %v3031_v42  ;;  %505 = vst [vmem:[#allocation2 + $0x68] sm:$0xff] %v2977_v49  ;;  %v457_v1 = vstv %s3904_s19  ;;  %v522_v49 = vadd.s32 64, %v3653_v11 }
  0x32   : > { %3123 = vmatprep.subr.bf16.mxu1 %v3446_v12  ;;  %1258 = vmatprep.mubr.bf16.mxu0 %v3806_v13  ;;  %v3951_v12 = vpack.c.bf16 %v761_v0, %v760_v58  ;;  %vm3963_vm10 = vcmp.eq.s32.totalorder %v457_v1, 1  ;;  %v3465_v1 = vld [vmem:[%s4482_s3] sm:$0xff]  }
  0x33   : > { %3315 = vmatprep.subr.bf16.mxu0 %v3450_v23  ;;  %3301 = vmatprep.mubr.msk.bf16.mxu1 %vm3817_vm9, %v3865_v38  ;;  %506 = vst [vmem:[#allocation2 + $0x70] sm:$0xff] %v2978_v50  ;;  %v4530_v19 = vsel %vm3963_vm10, 4294967295, %v4529_v19  ;;  %v848_v50 = vld [vmem:[#allocation2 + $0x79] sm:$0xff]  ;;  %v849_v57 = vld [vmem:[#allocation2 + $0x81] sm:$0xff] }
  0x34   : > { %v990_v58 = vld [vmem:[#allocation2 + $0x89] sm:$0xff]  ;;  %v4027_v61 = vpack.c.bf16 %v849_v57, %v848_v50  ;;  %v528_v50 = vadd.s32 112, %v3653_v11 }
  0x35   : > { %3124 = vmatpush3.bf16.msra.mxu1 %v3447_v17  ;;  %3316 = vmatpush3.bf16.msra.mxu0 %v3450_v23  ;;  %v3961_v17 = vld [vmem:[%s414_s29] sm:$0xff]  }
  0x36   : > { %3125 = vmatprep.subr.bf16.mxu1 %v3449_v27  ;;  %3317 = vmatprep.subr.bf16.mxu0 %v3456_v60  ;;  %v2953_v27 = vunpack.c.l.bf16 %v3961_v17  ;;  %v2954_v28 = vunpack.c.h.bf16 %v3961_v17  ;;  %v754_v20 = vld [vmem:[#allocation2 + $0x7] sm:$0xff] }
  0x38   : > { %3302 = vmatmul.mubr.msk.bf16.gmra.mxu1 %vm3870_vm13, %v3874_v40  ;;  %2671 = vmatmul.mubr.msk.bf16.gmra.mxu0 %vm3885_vm14, %v3889_v46  ;;  %v845_v21 = vld [vmem:[#allocation2 + $0x61] sm:$0xff]  ;;  %v459_v35 = vsel %vm3963_vm10, 0.0, %v2953_v27 }
  0x39   : > { %3126 = vmatpush3.bf16.msra.mxu1 %v3451_v41  ;;  %1266 = vmatprep.mubr.bf16.mxu0 %v3899_v52  ;;  %v3976_v30 = vpack.c.bf16 %v845_v21, %v844_v2  ;;  %v460_v41 = vsel %vm3963_vm10, 0.0, %v2954_v28  ;;  %511 = vst [vmem:[#allocation2 + $0x98] sm:$0xff] %v459_v35  ;;  %vm4015_vm10 = vmpackc.low %vm4487_vm3, %vm728_vm12  ;;  %v3467_v2 = vld [vmem:[%s4482_s3 + $0x98] sm:$0xff]   ;;  %v755_v21 = vld [vmem:[#allocation2 + $0xf] sm:$0xff] }
  0x3a   : > { %3127 = vmatprep.subr.bf16.mxu1 %v3452_v48  ;;  %3318 = vmatpush3.bf16.msra.mxu0 %v3456_v60  ;;  %v846_v23 = vld [vmem:[#allocation2 + $0x69] sm:$0xff]  ;;  %v847_v33 = vld [vmem:[#allocation2 + $0x71] sm:$0xff]  ;;  %512 = vst [vmem:[#allocation2 + $0xa0] sm:$0xff] %v460_v41  ;;  %v4533_v48 = vmov 0  ;;  %v4025_v60 = vld [vmem:[%s3698_s10 + $0x20] sm:$0xff]  ;;  %v2739_v28 = vpack.c.bf16 %v755_v21, %v754_v20 }
  0x3b   : > { %3305 = vmatprep.mubr.msk.bf16.mxu1 %vm3935_vm1, %v3976_v30  ;;  %v3994_v42 = vpack.c.bf16 %v847_v33, %v846_v23  ;;  %v4534_v48 = vsel %vm4006_vm15, 4294967295, %v4533_v48  ;;  %3319 = vmatprep.subr.bf16.mxu0 %v3462_v43  ;;  %vm3500_vm3 = vmpackc.low %vm3498_vm0, %vm3498_vm0  ;;  %v4067_v27 = vld [vmem:[%s3698_s10 + $0x28] sm:$0xff]  ;;  %v526_v33 = vadd.s32 96, %v3653_v11  ;;  %v4094_v41 = vld [vmem:[%s3698_s10 + $0x30] sm:$0xff] }
  0x3c   : > { %v767_v32 = vld [vmem:[#allocation2 + $0x6f] sm:$0xff] }
  0x3d   : > { %3128 = vmatpush3.bf16.msra.mxu1 %v3453_v55  ;;  %v4019_v55 = vpack.c.bf16 %v763_v44, %v762_v34  ;;  %v3473_v34 = vld [vmem:[%s4482_s3 + $0x80] sm:$0xff]   ;;  %v3479_v44 = vld [vmem:[%s4482_s3 + $0x230] sm:$0xff]  }
  0x3e   : > { %3129 = vmatprep.subr.bf16.mxu1 %v3455_v63  ;;  %3320 = vmatpush3.bf16.msra.mxu0 %v3462_v43  ;;  %v590_v63 = vand.u32 15, %v522_v49  ;;  %v618_v43 = vand.u32 15, %v526_v33  ;;  %v768_v49 = vld [vmem:[#allocation2 + $0x77] sm:$0xff]  ;;  %v3483_v33 = vld [vmem:[%s4482_s3 + $0x1e0] sm:$0xff]  }
  0x3f   : > { %3321 = vmatprep.subr.bf16.mxu0 %v3467_v2 }
  0x40   : > { %2674 = vmatmul.mubr.msk.bf16.gmra.mxu0 %vm3943_vm5, %v3951_v12  ;;  %3306 = vmatmul.mubr.msk.bf16.gmra.mxu1 %vm3954_vm7, %v3994_v42  ;;  %v991_v0 = vld [vmem:[#allocation2 + $0x91] sm:$0xff]  ;;  %vm730_vm12 = vcmp.ge.s32.totalorder %v590_v63, 1 }
  0x41   : > { %3130 = vmatpush3.bf16.msra.mxu1 %v3457_v7  ;;  %1274 = vmatprep.mubr.bf16.mxu0 %v3968_v24  ;;  %v4046_v5 = vpack.c.bf16 %v991_v0, %v990_v58  ;;  %v764_v7 = vld [vmem:[#allocation2 + $0x57] sm:$0xff]  ;;  %v632_v0 = vand.u32 15, %v528_v50  ;;  %v3492_v50 = vld [vmem:[%s4482_s3 + $0x1c8] sm:$0xff]  }
  0x42   : > { %3131 = vmatprep.subr.bf16.mxu1 %v3458_v15  ;;  %3309 = vmatprep.mubr.msk.bf16.mxu1 %vm4006_vm15, %v4027_v61  ;;  %v524_v15 = vadd.s32 80, %v3653_v11  ;;  %v4059_v23 = vpack.c.bf16 %v765_v8, %v764_v7  ;;  %vm4539_vm15 = vmmov 1   ;;  %v3485_v11 = vld [vmem:[%s4482_s3 + $0x220] sm:$0xff]   ;;  %v4125_v63 = vld [vmem:[%s3698_s10 + $0x38] sm:$0xff]  ;;  %v834_v7 = vld [vmem:[#allocation2 + $0x9] sm:$0xff] }
  0x43   : > { %3322 = vmatpush3.bf16.msra.mxu0 %v3467_v2  ;;  %vm4062_vm7 = vmpackc.low %vm4539_vm15, %vm730_vm12  ;;  %vm734_vm12 = vcmp.ge.s32.totalorder %v618_v43, 1  ;;  %v971_v2 = vld [vmem:[#allocation2 + $0x8f] sm:$0xff]  ;;  %v3486_v43 = vld [vmem:[%s4482_s3 + $0x1d8] sm:$0xff]  }
  0x44   : > { %v604_v25 = vand.u32 15, %v524_v15  ;;  %3323 = vmatprep.subr.bf16.mxu0 %v3469_v16  ;;  %vm4118_vm0 = vmpackc.low %vm4539_vm15, %vm734_vm12  ;;  %v3491_v8 = vld [vmem:[%s4482_s3 + $0x210] sm:$0xff]   ;;  %v1812_v53 = vld [vmem:[#allocation2 + $0x99] sm:$0xff] }
  0x45   : > { %3132 = vmatpush3.bf16.msra.mxu1 %v3459_v31  ;;  %v766_v31 = vld [vmem:[#allocation2 + $0x67] sm:$0xff]  ;;  %v835_v15 = vld [vmem:[#allocation2 + $0x11] sm:$0xff] }
  0x46   : > { %3133 = vmatprep.subr.bf16.mxu1 %v3461_v37  ;;  %vm732_vm2 = vcmp.ge.s32.totalorder %v604_v25, 1  ;;  %v4091_v37 = vpack.c.bf16 %v767_v32, %v766_v31  ;;  %v2763_v21 = vpack.c.bf16 %v835_v15, %v834_v7  ;;  %v3494_v25 = vld [vmem:[%s4482_s3 + $0x208] sm:$0xff]   ;;  %v3478_v31 = vld [vmem:[%s4482_s3 + $0x1b0] sm:$0xff]  }
  0x47   : > { %3324 = vmatpush3.bf16.msra.mxu0 %v3469_v16  ;;  %v3480_v32 = vld [vmem:[%s4482_s3 + $0x1e8] sm:$0xff]  }
  0x48   : > { %2677 = vmatmul.mubr.msk.bf16.gmra.mxu0 %vm4015_vm10, %v4019_v55  ;;  %3310 = vmatmul.mubr.msk.bf16.gmra.mxu1 %vm4030_vm11, %v4046_v5  ;;  %v1813_v59 = vld [vmem:[#allocation2 + $0xa1] sm:$0xff] }
  0x49   : > { %3134 = vmatpush3.bf16.msra.mxu1 %v3463_v51  ;;  %1282 = vmatprep.mubr.bf16.mxu0 %v4025_v60  ;;  %v3482_v51 = vld [vmem:[%s4482_s3 + $0x228] sm:$0xff]   ;;  %v2904_v9 = vpack.c.bf16 %v1813_v59, %v1812_v53 }
  0x4a   : > { %3135 = vmatprep.subr.bf16.mxu1 %v3464_v56  ;;  %3502 = vmatprep.mubr.msk.bf16.mxu1 %vm3500_vm3, %v3721_v36  ;;  %v3474_v36 = vld [vmem:[%s4482_s3 + $0x238] sm:$0xff]   ;;  %vm4087_vm3 = vmpackc.low %vm4539_vm15, %vm732_vm2  ;;  %vm736_vm2 = vcmp.ge.s32.totalorder %v632_v0, 1 }
  0x4b   : > { %3325 = vmatprep.subr.bf16.mxu0 %v3471_v47  ;;  %v769_v56 = vld [vmem:[#allocation2 + $0x7f] sm:$0xff]  ;;  %vm4142_vm12 = vmpackc.low %vm4539_vm15, %vm736_vm2  ;;  %vm4548_vm15 = vnez %v4528_v14  ;;  %vm4549_vm2 = vnez %v4534_v48 }
  0x4c   : > { %3326 = vmatpush3.bf16.msra.mxu0 %v3471_v47  ;;  %v4122_v58 = vpack.c.bf16 %v769_v56, %v768_v49  ;;  %v3476_v47 = vld [vmem:[%s4482_s3 + $0x1b8] sm:$0xff]   ;;  %v3490_v49 = vld [vmem:[%s4482_s3 + $0x190] sm:$0xff]   ;;  %v3495_v56 = vld [vmem:[%s4482_s3 + $0x1c0] sm:$0xff]  }
  0x4d   : > { %3136 = vmatpush3.bf16.msra.mxu1 %v3465_v1  ;;  %3327 = vmatprep.subr.bf16.mxu0 %v3473_v34  ;;  %v970_v1 = vld [vmem:[#allocation2 + $0x87] sm:$0xff] }
  0x4e   : > { %3345 = vmatprep.subr.bf16.mxu1 %v3474_v36  ;;  %v4146_v20 = vpack.c.bf16 %v971_v2, %v970_v1 }
  0x50   : > { %2680 = vmatmul.mubr.msk.bf16.gmra.mxu0 %vm4062_vm7, %v4059_v23  ;;  %2740 = vmatmul.mubr.msk.bf16.vlgmr.msra.gmra.mxu1 %vm3796_vm8, %v2739_v28  ;;  %v3497_v28 = vld [vmem:[%s4482_s3 + $0x200] sm:$0xff]  }
  0x51   : > { %1290 = vmatprep.mubr.bf16.mxu0 %v4067_v27  ;;  %1596 = vmatprep.mubr.bf16.mxu1 %v3712_v29  ;;  %v3475_v29 = vld [vmem:[%s4482_s3 + $0x1f8] sm:$0xff]  }
  0x52   : > { %3346 = vmatpush3.bf16.msra.mxu1 %v3474_v36  ;;  %3328 = vmatpush3.bf16.msra.mxu0 %v3473_v34  ;;  %v3477_v36 = vld [vmem:[%s4482_s3 + $0x1f0] sm:$0xff]   ;;  %v3484_v34 = vld [vmem:[%s4482_s3 + $0x1a0] sm:$0xff]  }
  0x53   : > { %3347 = vmatprep.subr.bf16.mxu1 %v3479_v44  ;;  %3201 = vmatprep.subr.bf16.mxu0 %v3475_v29  ;;  %v3489_v29 = vld [vmem:[%s4482_s3 + $0x1d0] sm:$0xff]  }
  0x56   : > { %3348 = vmatpush3.bf16.msra.mxu1 %v3479_v44  ;;  %v3487_v44 = vld [vmem:[%s4482_s3 + $0x198] sm:$0xff]  }
  0x57   : > { %3349 = vmatprep.subr.bf16.mxu1 %v3482_v51 }
  0x58   : > { %2683 = vmatmul.mubr.msk.bf16.gmra.mxu0 %vm4087_vm3, %v4091_v37  ;;  %2743 = vmatmul.mubr.msk.bf16.gmra.mxu1 %vm3885_vm14, %v3832_v22  ;;  %v3488_v22 = vld [vmem:[%s4482_s3 + $0x218] sm:$0xff]  }
  0x59   : > { %1298 = vmatprep.mubr.bf16.mxu0 %v4094_v41  ;;  %1604 = vmatprep.mubr.bf16.mxu1 %v3806_v13 }
  0x5a   : > { %3350 = vmatpush3.bf16.msra.mxu1 %v3482_v51  ;;  %v3493_v51 = vld [vmem:[%s4482_s3 + $0x188] sm:$0xff]  }
  0x5b   : > { %3351 = vmatprep.subr.bf16.mxu1 %v3485_v11 }
  0x5e   : > { %3352 = vmatpush3.bf16.msra.mxu1 %v3485_v11  ;;  %v3496_v11 = vld [vmem:[%s4482_s3 + $0x180] sm:$0xff]  }
  0x5f   : > { %3353 = vmatprep.subr.bf16.mxu1 %v3488_v22 }
  0x60   : > { %2686 = vmatmul.mubr.msk.bf16.gmra.mxu0 %vm4118_vm0, %v4122_v58  ;;  %2746 = vmatmul.mubr.msk.bf16.gmra.mxu1 %vm3943_vm5, %v3889_v46 }
  0x61   : > { %1306 = vmatprep.mubr.bf16.mxu0 %v4125_v63  ;;  %1612 = vmatprep.mubr.bf16.mxu1 %v3899_v52 }
  0x62   : > { %3354 = vmatpush3.bf16.msra.mxu1 %v3488_v22 }
  0x63   : > { %3355 = vmatprep.subr.bf16.mxu1 %v3491_v8 }
  0x66   : > { %3356 = vmatpush3.bf16.msra.mxu1 %v3491_v8 }
  0x67   : > { %3357 = vmatprep.subr.bf16.mxu1 %v3494_v25 }
  0x68   : > { %2689 = vmatmul.mubr.msk.bf16.gmra.mxu0 %vm4142_vm12, %v4146_v20  ;;  %2749 = vmatmul.mubr.msk.bf16.gmra.mxu1 %vm4015_vm10, %v3951_v12 }
  0x69   : > { %3329 = vmatprep.mubr.msk.bf16.mxu0 %vm3761_vm4, %v2763_v21  ;;  %1620 = vmatprep.mubr.bf16.mxu1 %v3968_v24 }
  0x6a   : > { %3358 = vmatpush3.bf16.msra.mxu1 %v3494_v25 }
  0x6b   : > { %3359 = vmatprep.subr.bf16.mxu1 %v3497_v28 }
  0x6e   : > { %3360 = vmatpush3.bf16.msra.mxu1 %v3497_v28 }
  0x70   : > { %3330 = vmatmul.mubr.msk.bf16.vlgmr.msra.gmra.mxu0 %vm3776_vm6, %v3788_v4  ;;  %2752 = vmatmul.mubr.msk.bf16.gmra.mxu1 %vm4062_vm7, %v4019_v55  ;;  %v3481_v4 = vld [vmem:[%s4482_s3 + $0x1a8] sm:$0xff]  }
  0x71   : > { %3202 = vmatpush3.bf16.msra.mxu0 %v3476_v47  ;;  %3333 = vmatprep.mubr.msk.bf16.mxu0 %vm3817_vm9, %v3800_v10 }
  0x72   : > { %3203 = vmatprep.subr.bf16.mxu0 %v3477_v36  ;;  %1628 = vmatprep.mubr.bf16.mxu1 %v4025_v60 }
  0x75   : > { %3204 = vmatpush3.bf16.msra.mxu0 %v3478_v31 }
  0x76   : > { %3205 = vmatprep.subr.bf16.mxu0 %v3480_v32 }
  0x78   : > { %3334 = vmatmul.mubr.msk.bf16.gmra.mxu0 %vm3870_vm13, %v3865_v38  ;;  %2755 = vmatmul.mubr.msk.bf16.gmra.mxu1 %vm4087_vm3, %v4059_v23 }
  0x79   : > { %3206 = vmatpush3.bf16.msra.mxu0 %v3481_v4  ;;  %3337 = vmatprep.mubr.msk.bf16.mxu0 %vm3935_vm1, %v3874_v40 }
  0x7a   : > { %3207 = vmatprep.subr.bf16.mxu0 %v3483_v33  ;;  %1636 = vmatprep.mubr.bf16.mxu1 %v4067_v27 }
  0x7d   : > { %3208 = vmatpush3.bf16.msra.mxu0 %v3484_v34 }
  0x7e   : > { %3209 = vmatprep.subr.bf16.mxu0 %v3486_v43 }
  0x80   : > { %3338 = vmatmul.mubr.msk.bf16.gmra.mxu0 %vm4548_vm15, %v3976_v30  ;;  %2758 = vmatmul.mubr.msk.bf16.gmra.mxu1 %vm4118_vm0, %v4091_v37 }
  0x81   : > { %3210 = vmatpush3.bf16.msra.mxu0 %v3487_v44  ;;  %3341 = vmatprep.mubr.msk.bf16.mxu0 %vm4549_vm2, %v3994_v42 }
  0x82   : > { %3211 = vmatprep.subr.bf16.mxu0 %v3489_v29  ;;  %1644 = vmatprep.mubr.bf16.mxu1 %v4094_v41 }
  0x85   : > { %3212 = vmatpush3.bf16.msra.mxu0 %v3490_v49 }
  0x86   : > { %3213 = vmatprep.subr.bf16.mxu0 %v3492_v50 }
  0x88   : > { %3342 = vmatmul.mubr.msk.bf16.gmra.mxu0 %vm4030_vm11, %v4027_v61  ;;  %2761 = vmatmul.mubr.msk.bf16.gmra.mxu1 %vm4142_vm12, %v4122_v58 }
  0x89   : > { %3214 = vmatpush3.bf16.msra.mxu0 %v3493_v51  ;;  %2079 = vmatprep.mubr.bf16.mxu0 %v3806_v13  ;;  %v1765_v13 = vld [vmem:[#allocation2 + $0x9f] sm:$0xff] }
  0x8a   : > { %3215 = vmatprep.subr.bf16.mxu0 %v3495_v56  ;;  %3361 = vmatprep.mubr.msk.bf16.mxu1 %vm3761_vm4, %v3800_v10  ;;  %vm4550_vm4 = vnez %v4530_v19  ;;  %v1764_v10 = vld [vmem:[#allocation2 + $0x97] sm:$0xff] }
  0x8b   : > { %v2880_v18 = vpack.c.bf16 %v1765_v13, %v1764_v10 }
  0x8d   : > { %3216 = vmatpush3.bf16.msra.mxu0 %v3496_v11 }
  0x90   : > { %2860 = vmatmul.mubr.msk.bf16.vlgmr.msra.gmra.mxu0 %vm3796_vm8, %v3889_v46  ;;  %3362 = vmatmul.mubr.msk.bf16.vlgmr.msra.gmra.mxu1 %vm3776_vm6, %v3865_v38  ;;  %vm3503_vm6 = vmneg %vm4550_vm4 }
  0x91   : > { %2087 = vmatprep.mubr.bf16.mxu0 %v3899_v52  ;;  %3365 = vmatprep.mubr.msk.bf16.mxu1 %vm3817_vm9, %v3874_v40  ;;  %vm3505_vm8 = vmpackc.low %vm3503_vm6, %vm3503_vm6  ;;  %vm2418_vm9 = vcmask 1040384  }
  0x98   : > { %2863 = vmatmul.mubr.msk.bf16.gmra.mxu0 %vm3885_vm14, %v3951_v12  ;;  %3366 = vmatmul.mubr.msk.bf16.gmra.mxu1 %vm3870_vm13, %v3976_v30 }
  0x99   : > { %2095 = vmatprep.mubr.bf16.mxu0 %v3968_v24  ;;  %3369 = vmatprep.mubr.msk.bf16.mxu1 %vm3935_vm1, %v3994_v42 }
  0xa0   : > { %2866 = vmatmul.mubr.msk.bf16.gmra.mxu0 %vm3943_vm5, %v4019_v55  ;;  %3370 = vmatmul.mubr.msk.bf16.gmra.mxu1 %vm4548_vm15, %v4027_v61 }
  0xa1   : > { %2103 = vmatprep.mubr.bf16.mxu0 %v4025_v60  ;;  %3373 = vmatprep.mubr.msk.bf16.mxu1 %vm4549_vm2, %v4046_v5 }
  0xa8   : > { %2869 = vmatmul.mubr.msk.bf16.gmra.mxu0 %vm4015_vm10, %v4059_v23  ;;  %3374 = vmatmul.mubr.msk.bf16.gmra.mxu1 %vm4030_vm11, %v2904_v9 }
  0xa9   : > { %2111 = vmatprep.mubr.bf16.mxu0 %v4067_v27 }
  0xb0   : > { %2872 = vmatmul.mubr.msk.bf16.gmra.mxu0 %vm4062_vm7, %v4091_v37 }
  0xb1   : > { %2119 = vmatprep.mubr.bf16.mxu0 %v4094_v41 }
  0xb8   : > { %2875 = vmatmul.mubr.msk.bf16.gmra.mxu0 %vm4087_vm3, %v4122_v58 }
  0xb9   : > { %2127 = vmatprep.mubr.bf16.mxu0 %v4125_v63 }
  0xc0   : > { %2878 = vmatmul.mubr.msk.bf16.gmra.mxu0 %vm4118_vm0, %v4146_v20 }
  0xc1   : > { %3507 = vmatprep.mubr.msk.bf16.mxu0 %vm3505_vm8, %v3961_v17 }
  0xc8   : > { %2881 = vmatmul.mubr.msk.bf16.gmra.mxu0 %vm4142_vm12, %v2880_v18 }
  0xf0   : > { %v3299_v38 = vpop.f32.mrf.mxu1  ;;  %v3057_v39 = vpop.f32.mrf.mxu0 }
  0xf2   : > { %v1349_v40 = vpop.f32.mrf.mxu1  ;;  %v3058_v45 = vpop.f32.mrf.mxu0 }
  0xf3   : > { %v3059_v52 = vadd.f32 %v3058_v45, %v3057_v39 }
  0xf4   : > { %v3300_v46 = vpop.f32.mrf.mxu1  ;;  %v3060_v3 = vpop.f32.mrf.mxu0 }
  0xf5   : > { %v1350_v12 = vadd.f32 %v3059_v52, %v1349_v40 }
  0xf6   : > { %v1352_v6 = vpop.f32.mrf.mxu1  ;;  %v3061_v14 = vpop.f32.mrf.mxu0 }
  0xf7   : > { %v3062_v24 = vadd.f32 %v3061_v14, %v3060_v3 }
  0xf8   : > { %v3303_v19 = vpop.f32.mrf.mxu1  ;;  %v3063_v30 = vpop.f32.mrf.mxu0 }
  0xf9   : > { %v4300_v42 = vadd.f32 %v3062_v24, %v1352_v6 }
  0xfa   : > { %v1365_v17 = vpop.f32.mrf.mxu1  ;;  %v3064_v48 = vpop.f32.mrf.mxu0 }
  0xfb   : > { %v3065_v55 = vadd.f32 %v3064_v48, %v3063_v30 }
  0xfc   : > { %v3304_v54 = vpop.f32.mrf.mxu1  ;;  %v3066_v60 = vpop.f32.mrf.mxu0 }
  0xfd   : > { %v1358_v61 = vadd.f32 %v3299_v38, %v3065_v55 }
  0xfe   : > { %v3067_v62 = vpop.f32.mrf.mxu0  ;;  %v1368_v5 = vpop.f32.mrf.mxu1 }
  0xff   : > { %v3068_v23 = vadd.f32 %v3067_v62, %v3066_v60 }
 0x100   : > { %v3069_v26 = vpop.f32.mrf.mxu0  ;;  %v3307_v35 = vpop.f32.mrf.mxu1 }
 0x101   : > { %v4302_v27 = vadd.f32 %v3300_v46, %v3068_v23 }
 0x102   : > { %v3070_v37 = vpop.f32.mrf.mxu0  ;;  %v1381_v57 = vpop.f32.mrf.mxu1 }
 0x103   : > { %v3071_v41 = vadd.f32 %v3070_v37, %v3069_v26 }
 0x104   : > { %v3072_v58 = vpop.f32.mrf.mxu0  ;;  %v3308_v0 = vpop.f32.mrf.mxu1 }
 0x105   : > { %v1366_v63 = vadd.f32 %v3071_v41, %v1365_v17 }
 0x106   : > { %v3073_v22 = vpop.f32.mrf.mxu0  ;;  %v1384_v2 = vpop.f32.mrf.mxu1 }
 0x107   : > { %v3074_v1 = vadd.f32 %v3073_v22, %v3072_v58 }
 0x108   : > { %v3075_v7 = vpop.f32.mrf.mxu0  ;;  %v3311_v15 = vpop.f32.mrf.mxu1 }
 0x109   : > { %v4304_v8 = vadd.f32 %v3074_v1, %v1368_v5 }
 0x10a   : > { %v3076_v16 = vpop.f32.mrf.mxu0  ;;  %v1397_v21 = vpop.f32.mrf.mxu1 }
 0x10b   : > { %v3077_v20 = vadd.f32 %v3076_v16, %v3075_v7 }
 0x10c   : > { %v3078_v25 = vpop.f32.mrf.mxu0  ;;  %v3312_v47 = vpop.f32.mrf.mxu1 }
 0x10d   : > { %v1374_v28 = vadd.f32 %v3303_v19, %v3077_v20 }
 0x10e   : > { %v3079_v36 = vpop.f32.mrf.mxu0  ;;  %v1400_v32 = vpop.f32.mrf.mxu1 }
 0x10f   : > { %v3080_v31 = vadd.f32 %v3079_v36, %v3078_v25 }
 0x110   : > { %v3081_v4 = vpop.f32.mrf.mxu0  ;;  %v3137_v34 = vpop.f32.mrf.mxu1 }
 0x111   : > { %v4306_v33 = vadd.f32 %v3304_v54, %v3080_v31 }
 0x112   : > { %v3082_v43 = vpop.f32.mrf.mxu0  ;;  %v3138_v29 = vpop.f32.mrf.mxu1 }
 0x113   : > { %v3083_v44 = vadd.f32 %v3082_v43, %v3081_v4  ;;  %v3139_v51 = vadd.f32 %v3138_v29, %v3137_v34 }
 0x114   : > { %v3084_v49 = vpop.f32.mrf.mxu0  ;;  %v4308_v56 = vpop.f32.mrf.mxu1 }
 0x115   : > { %v1382_v50 = vadd.f32 %v3083_v44, %v1381_v57  ;;  %v4310_v59 = vadd.f32 %v3139_v51, %v1350_v12 }
 0x116   : > { %v3085_v11 = vpop.f32.mrf.mxu0  ;;  %v4312_v9 = vpop.f32.mrf.mxu1 }
 0x117   : > { %v3086_v53 = vadd.f32 %v3085_v11, %v3084_v49 }
 0x118   : > { %v3087_v10 = vpop.f32.mrf.mxu0  ;;  %v3143_v18 = vpop.f32.mrf.mxu1 }
 0x119   : > { %v4314_v13 = vadd.f32 %v3086_v53, %v1384_v2 }
 0x11a   : > { %v3088_v38 = vpop.f32.mrf.mxu0  ;;  %v3144_v40 = vpop.f32.mrf.mxu1 }
 0x11b   : > { %v3089_v39 = vadd.f32 %v3088_v38, %v3087_v10  ;;  %v3145_v52 = vadd.f32 %v3144_v40, %v3143_v18 }
 0x11c   : > { %v3090_v45 = vpop.f32.mrf.mxu0  ;;  %v4316_v3 = vpop.f32.mrf.mxu1 }
 0x11d   : > { %v1390_v46 = vadd.f32 %v3307_v35, %v3089_v39  ;;  %v4318_v19 = vadd.f32 %v3145_v52, %v1358_v61 }
 0x11e   : > { %v3091_v6 = vpop.f32.mrf.mxu0  ;;  %v4320_v12 = vpop.f32.mrf.mxu1 }
 0x11f   : > { %v3092_v14 = vadd.f32 %v3091_v6, %v3090_v45 }
 0x120   : > { %v3093_v24 = vpop.f32.mrf.mxu0  ;;  %v3149_v17 = vpop.f32.mrf.mxu1 }
 0x121   : > { %v4322_v30 = vadd.f32 %v3308_v0, %v3092_v14 }
 0x122   : > { %v3094_v48 = vpop.f32.mrf.mxu0  ;;  %v3150_v55 = vpop.f32.mrf.mxu1 }
 0x123   : > { %v3095_v54 = vadd.f32 %v3094_v48, %v3093_v24  ;;  %v3151_v5 = vadd.f32 %v3150_v55, %v3149_v17 }
 0x124   : > { %v3096_v60 = vpop.f32.mrf.mxu0  ;;  %v4324_v23 = vpop.f32.mrf.mxu1 }
 0x125   : > { %v1398_v62 = vadd.f32 %v3095_v54, %v1397_v21  ;;  %v4326_v37 = vadd.f32 %v3151_v5, %v1366_v63 }
 0x126   : > { %v3097_v26 = vpop.f32.mrf.mxu0  ;;  %v4328_v61 = vpop.f32.mrf.mxu1 }
 0x127   : > { %v3098_v35 = vadd.f32 %v3097_v26, %v3096_v60 }
 0x128   : > { %v3099_v41 = vpop.f32.mrf.mxu0  ;;  %v3155_v58 = vpop.f32.mrf.mxu1 }
 0x129   : > { %v4330_v57 = vadd.f32 %v3098_v35, %v1400_v32 }
 0x12a   : > { %v3100_v0 = vpop.f32.mrf.mxu0  ;;  %v3156_v1 = vpop.f32.mrf.mxu1 }
 0x12b   : > { %v3101_v22 = vadd.f32 %v3100_v0, %v3099_v41  ;;  %v3157_v16 = vadd.f32 %v3156_v1, %v3155_v58 }
 0x12c   : > { %v3102_v2 = vpop.f32.mrf.mxu0  ;;  %v4332_v20 = vpop.f32.mrf.mxu1 }
 0x12d   : > { %v1406_v7 = vadd.f32 %v3311_v15, %v3101_v22  ;;  %v4334_v36 = vadd.f32 %v3157_v16, %v1374_v28 }
 0x12e   : > { %v3103_v21 = vpop.f32.mrf.mxu0  ;;  %v4336_v63 = vpop.f32.mrf.mxu1 }
 0x12f   : > { %v3104_v25 = vadd.f32 %v3103_v21, %v3102_v2 }
 0x130   : > { %v4338_v31 = vpop.f32.mrf.mxu0  ;;  %v3161_v32 = vpop.f32.mrf.mxu1 }
 0x131   : > { %v1409_v4 = vadd.f32 %v3312_v47, %v3104_v25 }
 0x132   : > { %v1687_v34 = vpop.f32.mrf.mxu0  ;;  %v3162_v43 = vpop.f32.mrf.mxu1 }
 0x133   : > { %v3163_v29 = vadd.f32 %v3162_v43, %v3161_v32 }
 0x134   : > { %v4340_v44 = vpop.f32.mrf.mxu0  ;;  %v4342_v49 = vpop.f32.mrf.mxu1 }
 0x135   : > { %v4344_v51 = vadd.f32 %v3163_v29, %v1382_v50 }
 0x136   : > { %v1690_v15 = vpop.f32.mrf.mxu0  ;;  %v4346_v11 = vpop.f32.mrf.mxu1 }
 0x138   : > { %v4348_v28 = vpop.f32.mrf.mxu0  ;;  %v3167_v53 = vpop.f32.mrf.mxu1 }
 0x13a   : > { %v4350_v10 = vpop.f32.mrf.mxu0  ;;  %v3168_v18 = vpop.f32.mrf.mxu1 }
 0x13b   : > { %v3169_v38 = vadd.f32 %v3168_v18, %v3167_v53  ;;  %v3142_v53 = vadd.f32 %v4312_v9, %v4308_v56 }
 0x13c   : > { %v4352_v47 = vpop.f32.mrf.mxu0  ;;  %v4354_v39 = vpop.f32.mrf.mxu1 }
 0x13d   : > { %v1631_v45 = vadd.f32 %v3169_v38, %v1390_v46 }
 0x13e   : > { %v4356_v40 = vpop.f32.mrf.mxu0  ;;  %v4358_v52 = vpop.f32.mrf.mxu1 }
 0x140   : > { %v3339_v50 = vpop.f32.mrf.mxu0  ;;  %v3173_v14 = vpop.f32.mrf.mxu1 }
 0x141   : > { %v4360_v6 = vadd.f32 %v3339_v50, %v1631_v45 }
 0x142   : > { %v4362_v24 = vpop.f32.mrf.mxu0  ;;  %v3174_v17 = vpop.f32.mrf.mxu1 }
 0x143   : > { %v3175_v54 = vadd.f32 %v3174_v17, %v3173_v14  ;;  %v1688_v14 = vadd.f32 %v1687_v34, %v4310_v59 }
 0x144   : > { %v4364_v48 = vpop.f32.mrf.mxu0  ;;  %v4366_v55 = vpop.f32.mrf.mxu1 }
 0x145   : > { %v4370_v5 = vadd.f32 %v3175_v54, %v1398_v62 }
 0x146   : > { %v4368_v60 = vpop.f32.mrf.mxu0  ;;  %v4372_v26 = vpop.f32.mrf.mxu1 }
 0x148   : > { %v3343_v46 = vpop.f32.mrf.mxu0  ;;  %v3179_v35 = vpop.f32.mrf.mxu1 }
 0x14a   : > { %v4374_v41 = vpop.f32.mrf.mxu0  ;;  %v3180_v58 = vpop.f32.mrf.mxu1 }
 0x14b   : > { %v3181_v22 = vadd.f32 %v3180_v58, %v3179_v35 }
 0x14c   : > { %v3344_v0 = vpop.f32.mrf.mxu0  ;;  %v3182_v1 = vpop.f32.mrf.mxu1 }
 0x14d   : > { %v1647_v16 = vadd.f32 %v3181_v22, %v1406_v7  ;;  %v4389_v22 = vld [vmem:[%s4483_s4] ss:$0 sm:$0xff] }
 0x14e   : > { %v4376_v2 = vpop.f32.mrf.mxu0  ;;  %v3183_v21 = vpop.f32.mrf.mxu1 }
 0x14f   : > { %v4378_v32 = vadd.f32 %v3343_v46, %v1647_v16  ;;  %v3184_v43 = vadd.f32 %v3183_v21, %v3182_v1  ;;  %v1594_v46 = vadd.f32 %v3142_v53, %v4300_v42  ;;  %v3148_v42 = vadd.f32 %v4320_v12, %v4316_v3 }
 0x150   : > { %v3217_v25 = vpop.f32.mrf.mxu0  ;;  %v3363_v29 = vpop.f32.mrf.mxu1 }
 0x151   : > { %v1650_v18 = vadd.f32 %v3184_v43, %v1409_v4  ;;  %v1691_v1 = vadd.f32 %v1690_v15, %v1594_v46 }
 0x152   : > { %v3218_v62 = vpop.f32.mrf.mxu0  ;;  %v2178_v50 = vpop.f32.mrf.mxu1 }
 0x153   : > { %v3219_v38 = vadd.f32 %v3218_v62, %v3217_v25  ;;  %v4383_v17 = vadd.f32 %v3344_v0, %v1650_v18  ;;  %v1696_v62 = vadd.f32 %v4338_v31, %v4318_v19 }
 0x154   : > { %v3220_v45 = vpop.f32.mrf.mxu0  ;;  %v3364_v35 = vpop.f32.mrf.mxu1 }
 0x155   : > { %v2179_v54 = vadd.f32 %v3219_v38, %v2178_v50 }
 0x156   : > { %v3221_v7 = vpop.f32.mrf.mxu0  ;;  %v2181_v4 = vpop.f32.mrf.mxu1 }
 0x157   : > { %v2241_v58 = vadd.f32 %v2179_v54, %v1688_v14  ;;  %v3222_v56 = vadd.f32 %v3221_v7, %v3220_v45  ;;  %v1602_v54 = vadd.f32 %v3148_v42, %v4302_v27  ;;  %v1704_v27 = vadd.f32 %v4350_v10, %v4326_v37 }
 0x158   : > { %v3223_v9 = vpop.f32.mrf.mxu0  ;;  %v3367_v0 = vpop.f32.mrf.mxu1 }
 0x159   : > { %v2182_v16 = vadd.f32 %v3222_v56, %v2181_v4  ;;  %v2264_v59 = vadd.f32 %v4389_v22, %v2241_v58  ;;  %v1699_v46 = vadd.f32 %v4340_v44, %v1602_v54  ;;  %v3154_v4 = vadd.f32 %v4328_v61, %v4324_v23 }
 0x15a   : > { %v3224_v34 = vpop.f32.mrf.mxu0  ;;  %v2194_v45 = vpop.f32.mrf.mxu1 }
 0x15b   : > { %v2242_v21 = vadd.f32 %v2182_v16, %v1691_v1  ;;  %v3225_v25 = vadd.f32 %v3224_v34, %v3223_v9  ;;  %v2381_v38 = vmul.f32 %v2264_v59, %v2264_v59 }
 0x15c   : > { %v3226_v43 = vpop.f32.mrf.mxu0  ;;  %v3368_v9 = vpop.f32.mrf.mxu1 }
 0x15d   : > { %v2265_v53 = vadd.f32 %v4389_v22, %v2242_v21  ;;  %v2187_v18 = vadd.f32 %v3363_v29, %v3225_v25 }
 0x15e   : > { %v3227_v15 = vpop.f32.mrf.mxu0 }
 0x15f   : > { %v2990_v50 = vpack.c.bf16 %v2265_v53, %v2264_v59  ;;  %v2360_v14 = vadd.f32 %v2265_v53, %v2264_v59  ;;  %v2382_v3 = vmul.f32 %v2265_v53, %v2265_v53  ;;  %v2243_v12 = vadd.f32 %v2187_v18, %v1696_v62 }
 0x160   : > { %v3228_v19 = vadd.f32 %v3227_v15, %v3226_v43  ;;  %v3229_v31 = vpop.f32.mrf.mxu0  ;;  %v1610_v62 = vadd.f32 %v3154_v4, %v4304_v8  ;;  %v3160_v8 = vadd.f32 %v4336_v63, %v4332_v20 }
 0x161   : > { %2991 = vst [vmem:[%s4402_s22] sm:$0xff] %v2990_v50   ;;  %v2397_v29 = vadd.f32 %v2382_v3, %v2381_v38  ;;  %v2266_v7 = vadd.f32 %v4389_v22, %v2243_v12 }
 0x162   : > { %v2190_v58 = vadd.f32 %v3364_v35, %v3228_v19  ;;  %v3230_v56 = vpop.f32.mrf.mxu0  ;;  %v2197_v35 = vpop.f32.mrf.mxu1  ;;  %v1707_v50 = vadd.f32 %v4356_v40, %v1610_v62 }
 0x163   : > { %v2361_v1 = vadd.f32 %v2360_v14, %v2266_v7  ;;  %v2383_v16 = vmul.f32 %v2266_v7, %v2266_v7  ;;  %v3231_v59 = vadd.f32 %v3230_v56, %v3229_v31 }
 0x164   : > { %v2244_v34 = vadd.f32 %v2190_v58, %v1699_v46  ;;  %v3232_v21 = vpop.f32.mrf.mxu0  ;;  %v3371_v3 = vpop.f32.mrf.mxu1 }
 0x165   : > { %v2398_v25 = vadd.f32 %v2397_v29, %v2383_v16  ;;  %v2195_v42 = vadd.f32 %v3231_v59, %v2194_v45 }
 0x166   : > { %v2267_v43 = vadd.f32 %v4389_v22, %v2244_v34  ;;  %v3233_v44 = vpop.f32.mrf.mxu0  ;;  %v2210_v4 = vpop.f32.mrf.mxu1 }
 0x167   : > { %v2245_v53 = vadd.f32 %v2195_v42, %v1704_v27  ;;  %v3234_v18 = vadd.f32 %v3233_v44, %v3232_v21  ;;  %v1618_v21 = vadd.f32 %v3160_v8, %v4306_v33  ;;  %v1720_v33 = vadd.f32 %v4362_v24, %v4344_v51 }
 0x168   : > { %v2995_v23 = vpack.c.bf16 %v2267_v43, %v2266_v7  ;;  %v2384_v61 = vmul.f32 %v2267_v43, %v2267_v43  ;;  %v2362_v38 = vadd.f32 %v2361_v1, %v2267_v43  ;;  %v3235_v15 = vpop.f32.mrf.mxu0  ;;  %v1712_v7 = vadd.f32 %v4348_v28, %v4334_v36  ;;  %v3372_v43 = vpop.f32.mrf.mxu1 }
 0x169   : > { %v2268_v14 = vadd.f32 %v4389_v22, %v2245_v53  ;;  %v2198_v37 = vadd.f32 %v3234_v18, %v2197_v35  ;;  %v1715_v36 = vadd.f32 %v4352_v47, %v1618_v21 }
 0x16a   : > { %3034 = vst [vmem:[%s4402_s22 + $0x8] sm:$0xff] %v2995_v23   ;;  %v2399_v10 = vadd.f32 %v2398_v25, %v2384_v61  ;;  %v3236_v45 = vpop.f32.mrf.mxu0 }
 0x16b   : > { %v2363_v12 = vadd.f32 %v2362_v38, %v2268_v14  ;;  %v2385_v54 = vmul.f32 %v2268_v14, %v2268_v14  ;;  %v2246_v19 = vadd.f32 %v2198_v37, %v1707_v50  ;;  %v3237_v31 = vadd.f32 %v3236_v45, %v3235_v15 }
 0x16c   : > { %v3238_v29 = vpop.f32.mrf.mxu0 }
 0x16d   : > { %v2400_v40 = vadd.f32 %v2399_v10, %v2385_v54  ;;  %v2269_v46 = vadd.f32 %v4389_v22, %v2246_v19  ;;  %v2203_v58 = vadd.f32 %v3367_v0, %v3237_v31  ;;  %v3166_v0 = vadd.f32 %v4346_v11, %v4342_v49 }
 0x16e   : > { %v3239_v56 = vpop.f32.mrf.mxu0 }
 0x16f   : > { %v3000_v1 = vpack.c.bf16 %v2269_v46, %v2268_v14  ;;  %v2364_v16 = vadd.f32 %v2363_v12, %v2269_v46  ;;  %v2386_v59 = vmul.f32 %v2269_v46, %v2269_v46  ;;  %v2247_v34 = vadd.f32 %v2203_v58, %v1712_v7 }
 0x170   : > { %v3240_v27 = vadd.f32 %v3239_v56, %v3238_v29  ;;  %v3241_v25 = vpop.f32.mrf.mxu0  ;;  %v1626_v15 = vadd.f32 %v3166_v0, %v4314_v13  ;;  %v3172_v13 = vadd.f32 %v4358_v52, %v4354_v39 }
 0x171   : > { %3035 = vst [vmem:[%s4402_s22 + $0x10] sm:$0xff] %v3000_v1   ;;  %v2401_v20 = vadd.f32 %v2400_v40, %v2386_v59  ;;  %v2270_v63 = vadd.f32 %v4389_v22, %v2247_v34 }
 0x172   : > { %v2206_v28 = vadd.f32 %v3368_v9, %v3240_v27  ;;  %v3242_v42 = vpop.f32.mrf.mxu0  ;;  %v2213_v9 = vpop.f32.mrf.mxu1  ;;  %v1723_v45 = vadd.f32 %v4368_v60, %v1626_v15  ;;  %v1634_v34 = vadd.f32 %v3172_v13, %v4322_v30 }
 0x173   : > { %v2365_v44 = vadd.f32 %v2364_v16, %v2270_v63  ;;  %v2387_v35 = vmul.f32 %v2270_v63, %v2270_v63  ;;  %v3243_v62 = vadd.f32 %v3242_v42, %v3241_v25 }
 0x174   : > { %v2248_v53 = vadd.f32 %v2206_v28, %v1715_v36  ;;  %v3244_v18 = vpop.f32.mrf.mxu0  ;;  %v3375_v40 = vpop.f32.mrf.mxu1  ;;  %v1731_v52 = vadd.f32 %v4364_v48, %v1634_v34 }
 0x175   : > { %v2402_v23 = vadd.f32 %v2401_v20, %v2387_v35  ;;  %v2211_v61 = vadd.f32 %v3243_v62, %v2210_v4  ;;  %v1736_v35 = vadd.f32 %v4374_v41, %v4370_v5 }
 0x176   : > { %v2271_v38 = vadd.f32 %v4389_v22, %v2248_v53  ;;  %v3245_v47 = vpop.f32.mrf.mxu0  ;;  %v2226_v25 = vpop.f32.mrf.mxu1 }
 0x177   : > { %v2249_v50 = vadd.f32 %v2211_v61, %v1720_v33  ;;  %v3246_v14 = vadd.f32 %v3245_v47, %v3244_v18 }
 0x178   : > { %v3005_v49 = vpack.c.bf16 %v2271_v38, %v2270_v63  ;;  %v2388_v11 = vmul.f32 %v2271_v38, %v2271_v38  ;;  %v2366_v37 = vadd.f32 %v2365_v44, %v2271_v38  ;;  %v3247_v10 = vpop.f32.mrf.mxu0  ;;  %v3376_v30 = vpop.f32.mrf.mxu1 }
 0x179   : > { %v2272_v12 = vadd.f32 %v4389_v22, %v2249_v50  ;;  %v2214_v51 = vadd.f32 %v3246_v14, %v2213_v9 }
 0x17a   : > { %3036 = vst [vmem:[%s4402_s22 + $0x18] sm:$0xff] %v3005_v49   ;;  %v2403_v24 = vadd.f32 %v2402_v23, %v2388_v11  ;;  %v3248_v54 = vpop.f32.mrf.mxu0  ;;  %v2229_v38 = vpop.f32.mrf.mxu1 }
 0x17b   : > { %v2367_v19 = vadd.f32 %v2366_v37, %v2272_v12  ;;  %v2389_v31 = vmul.f32 %v2272_v12, %v2272_v12  ;;  %v2250_v8 = vadd.f32 %v2214_v51, %v1723_v45  ;;  %v3249_v29 = vadd.f32 %v3248_v54, %v3247_v10 }
 0x17c   : > { %v3250_v7 = vpop.f32.mrf.mxu0 }
 0x17d   : > { %v2404_v46 = vadd.f32 %v2403_v24, %v2389_v31  ;;  %v2273_v58 = vadd.f32 %v4389_v22, %v2250_v8  ;;  %v2219_v60 = vadd.f32 %v3371_v3, %v3249_v29  ;;  %v3178_v3 = vadd.f32 %v4372_v26, %v4366_v55 }
 0x17e   : > { %v3251_v56 = vpop.f32.mrf.mxu0 }
 0x17f   : > { %v3010_v4 = vpack.c.bf16 %v2273_v58, %v2272_v12  ;;  %v2368_v1 = vadd.f32 %v2367_v19, %v2273_v58  ;;  %v2390_v16 = vmul.f32 %v2273_v58, %v2273_v58  ;;  %v2251_v59 = vadd.f32 %v2219_v60, %v4360_v6 }
 0x180   : > { %v3252_v21 = vadd.f32 %v3251_v56, %v3250_v7  ;;  %v3253_v27 = vpop.f32.mrf.mxu0 }
 0x181   : > { %3037 = vst [vmem:[%s4402_s22 + $0x20] sm:$0xff] %v3010_v4   ;;  %v2405_v20 = vadd.f32 %v2404_v46, %v2390_v16  ;;  %v2274_v39 = vadd.f32 %v4389_v22, %v2251_v59 }
 0x182   : > { %v2222_v63 = vadd.f32 %v3372_v43, %v3252_v21  ;;  %v3254_v36 = vpop.f32.mrf.mxu0  ;;  %v1642_v43 = vadd.f32 %v3178_v3, %v4330_v57 }
 0x183   : > { %v2369_v28 = vadd.f32 %v2368_v1, %v2274_v39  ;;  %v2391_v42 = vmul.f32 %v2274_v39, %v2274_v39  ;;  %v3255_v0 = vadd.f32 %v3254_v36, %v3253_v27 }
 0x184   : > { %v2252_v6 = vadd.f32 %v2222_v63, %v1731_v52  ;;  %v3256_v44 = vpop.f32.mrf.mxu0  ;;  %v1739_v9 = vadd.f32 %v4376_v2, %v1642_v43 }
 0x185   : > { %v2406_v62 = vadd.f32 %v2405_v20, %v2391_v42  ;;  %v2227_v53 = vadd.f32 %v3255_v0, %v2226_v25 }
 0x186   : > { %v2275_v18 = vadd.f32 %v4389_v22, %v2252_v6  ;;  %v3257_v48 = vpop.f32.mrf.mxu0 }
 0x187   : > { %v2253_v33 = vadd.f32 %v2227_v53, %v1736_v35  ;;  %v3258_v23 = vadd.f32 %v3257_v48, %v3256_v44 }
 0x188   : > { %v3015_v55 = vpack.c.bf16 %v2275_v18, %v2274_v39  ;;  %v2392_v26 = vmul.f32 %v2275_v18, %v2275_v18  ;;  %v2370_v61 = vadd.f32 %v2369_v28, %v2275_v18  ;;  %v3259_v47 = vpop.f32.mrf.mxu0 }
 0x189   : > { %v2276_v15 = vadd.f32 %v4389_v22, %v2253_v33  ;;  %v2230_v5 = vadd.f32 %v3258_v23, %v2229_v38 }
 0x18a   : > { %3038 = vst [vmem:[%s4402_s22 + $0x28] sm:$0xff] %v3015_v55   ;;  %v2407_v41 = vadd.f32 %v2406_v62, %v2392_v26  ;;  %v3260_v50 = vpop.f32.mrf.mxu0 }
 0x18b   : > { %v2371_v14 = vadd.f32 %v2370_v61, %v2276_v15  ;;  %v2393_v49 = vmul.f32 %v2276_v15, %v2276_v15  ;;  %v2254_v11 = vadd.f32 %v2230_v5, %v1739_v9  ;;  %v3261_v57 = vadd.f32 %v3260_v50, %v3259_v47 }
 0x18c   : > { %v3262_v37 = vpop.f32.mrf.mxu0 }
 0x18d   : > { %v2408_v10 = vadd.f32 %v2407_v41, %v2393_v49  ;;  %v2277_v45 = vadd.f32 %v4389_v22, %v2254_v11  ;;  %v2235_v12 = vadd.f32 %v3375_v40, %v3261_v57 }
 0x18e   : > { %v3263_v51 = vpop.f32.mrf.mxu0 }
 0x18f   : > { %v3020_v24 = vpack.c.bf16 %v2277_v45, %v2276_v15  ;;  %v2372_v54 = vadd.f32 %v2371_v14, %v2277_v45  ;;  %v2394_v2 = vmul.f32 %v2277_v45, %v2277_v45  ;;  %v2255_v19 = vadd.f32 %v2235_v12, %v4378_v32 }
 0x190   : > { %v3264_v31 = vadd.f32 %v3263_v51, %v3262_v37 }
 0x191   : > { %3039 = vst [vmem:[%s4402_s22 + $0x30] sm:$0xff] %v3020_v24   ;;  %v2409_v8 = vadd.f32 %v2408_v10, %v2394_v2  ;;  %v2278_v29 = vadd.f32 %v4389_v22, %v2255_v19 }
 0x192   : > { %v2238_v13 = vadd.f32 %v3376_v30, %v3264_v31 }
 0x193   : > { %v2373_v7 = vadd.f32 %v2372_v54, %v2278_v29  ;;  %v2395_v46 = vmul.f32 %v2278_v29, %v2278_v29 }
 0x194   : > { %v2256_v58 = vadd.f32 %v2238_v13, %v4383_v17 }
 0x195   : > { %v2410_v40 = vadd.f32 %v2409_v8, %v2395_v46 }
 0x196   : > { %v2279_v60 = vadd.f32 %v4389_v22, %v2256_v58 }
 0x198   : > { %v3025_v56 = vpack.c.bf16 %v2279_v60, %v2278_v29  ;;  %v2374_v4 = vadd.f32 %v2373_v7, %v2279_v60  ;;  %v2396_v1 = vmul.f32 %v2279_v60, %v2279_v60 }
 0x19a   : > { %3040 = vst [vmem:[%s4402_s22 + $0x38] sm:$0xff] %v3025_v56   ;;  %v2375_v32 = vrot.slane %v2374_v4, 4  ;;  %v2411_v16 = vadd.f32 %v2410_v40, %v2396_v1 }
 0x19c   : > { %v2376_v59 = vadd.f32 %v2375_v32, %v2374_v4  ;;  %v2412_v34 = vrot.slane %v2411_v16, 4 }
 0x19e   : > { %v2377_v21 = vrot.slane %v2376_v59, 2  ;;  %v2413_v27 = vadd.f32 %v2412_v34, %v2411_v16 }
 0x1a0   : > { %v2378_v25 = vadd.f32 %v2377_v21, %v2376_v59  ;;  %v2414_v20 = vrot.slane %v2413_v27, 2 }
 0x1a2   : > { %v2379_v39 = vrot.slane %v2378_v25, 1  ;;  %v2415_v52 = vadd.f32 %v2414_v20, %v2413_v27 }
 0x1a4   : > { %v2416_v17 = vrot.slane %v2415_v52, 1  ;;  %v2380_v22 = vadd.f32 %v2379_v39, %v2378_v25 }
 0x1a6   : > { %v2417_v63 = vadd.f32 %v2416_v17, %v2415_v52 }
 0x1a8   : > { %v2419_v36 = vsel %vm2418_vm9, %v2380_v22, %v2417_v63 }
 0x1a9   : > { %2420 = vst [vmem:[%s437_s30] sm:$0x3] %v2419_v36 }
 0x1aa PF: > { %s17_s25 = sadd.s32 1, %s3546_s25   ;;  %s4551_s21 = smov %s3538_s23 }
 0x1ab   : > { %p14_p13 = scmp.ge.s32.totalorder %s17_s25, 6   ;;  %s4552_s22 = smov %s3542_s24 }
 0x1ac   : > { %s4553_s23 = smov %s4556_s26  ;;  %s4554_s24 = smov %s4560_s27 }
 0x1ad   :  { %16 = sbr.rel (!%p14_p13) target bundleno = 3 (0x3), region = 90 }

// kernel: _lambda_.4
= control target key start
LH: loop header
LB: loop body
LE: loop exit
PB: predicated region body
PF: predicated region fallthrough
CT: control target
= control target key end

     0   :  { %s3716_s27 = smov 0   ;;  %s3718_s28 = smov 0   ;;  %s4793_s0 = inlined_call_operand.vmem [shape: bf16[512,128], index: 0, kind: input, shape index: {}, may-alias: {0,1,2}]   ;;  %s4794_s1 = inlined_call_operand.vmem [shape: bf16[512,128], index: 1, kind: input, shape index: {}, may-alias: {0,1,2}]   ;;  %s4795_s2 = inlined_call_operand.vmem [shape: bf16[512,128], index: 2, kind: input, shape index: {}, may-alias: {0,1,2}]   ;;  %s4796_s3 = inlined_call_operand.vmem [shape: f32[1,128], index: 3, kind: input, shape index: {}]   ;;  %s4797_s4 = inlined_call_operand.vmem [shape: f32[1,128], index: 4, kind: input, shape index: {}]   ;;  %s4798_s5 = inlined_call_operand.vmem [shape: bf16[3,384,128], index: 5, kind: input, shape index: {}]   ;;  %s4799_s6 = inlined_call_operand.vmem [shape: f32[1,128], index: 6, kind: input, shape index: {}]   ;;  %s4800_s7 = inlined_call_operand.vmem [shape: bf16[512,128], index: 7, kind: output, shape index: {0}]   ;;  %s4801_s8 = inlined_call_operand.vmem [shape: f32[4,2,128], index: 8, kind: output, shape index: {1}]  }
   0x1   :  { %s3720_s29 = smov 0   ;;  %s3722_s30 = smov 0  }
   0x2   :  { %s3724_s9 = smov 0  }
   0x3 LB: > { %s28_s10 = sadd.s32 1, %s3660_s29  ;;  %s31_s11 = sadd.s32 1, %s3664_s30  ;;  %s3668_s9 = sphi %s3724_s9, %s19_s9   ;;  %s3664_s30 = sphi %s3722_s30, %s4877_s30   ;;  %s3660_s29 = sphi %s3720_s29, %s4876_s29   ;;  %s3656_s28 = sphi %s3718_s28, %s4875_s28   ;;  %s3652_s27 = sphi %s3716_s27, %s4874_s27  }
   0x4   : > { %p29_p0 = scmp.ge.s32.totalorder %s28_s10, 2  ;;  %p2704_p1 = scmp.ge.s32.totalorder %s3668_s9, 1 }
   0x5   : > { %p364_p2 = scmp.lt.s32.totalorder %s3668_s9, 5 }
   0x6   : > { %s4879_s10 = smov (%p29_p0, %s28_s10), 0  ;;  %s4881_s11 = smov (!%p29_p0, %s31_s11), %s3664_s30 }
   0x7   : > { %p365_p3 = pnand %p2704_p1, %p364_p2  ;;  %p33_p4 = scmp.ge.s32.totalorder %s4881_s11, 2 }
   0x8   : > { %s2705_s14 = sshll.u32 (!%p365_p3), %s3656_s28, 1  ;;  %s2709_s26 = sshll.u32 (!%p365_p3), %s3652_s27, 3 }
   0x9   : > { %s4883_s11 = smov (%p33_p4, %s4881_s11), 0  ;;  %368 = sbr.rel (%p365_p3) target bundleno = 425 (0x1a9), region = 48 }
   0xa   : > { %s3758_s17 = sadd.s32 (!%p365_p3), %s3652_s27, %s2705_s14  ;;  %s2710_s14 = sadd.s32 (!%p365_p3), 4294967295, %s2709_s26 }
   0xb   : > { %s2706_s22 = sshll.u32 (!%p365_p3), %s3758_s17, 4  ;;  %p443_p6 = scmp.gt.s32.totalorder (!%p365_p3), %s2710_s14, 0 }
   0xc   : > { %p433_p5 = scmp.lt.s32.totalorder (!%p365_p3), %s2706_s22, 63  ;;  %s2708_s18 = sshll.u32 (!%p365_p3), %s3656_s28, 4 }
   0xd   : > { %p495_p8 = scmp.eq.s32.totalorder (!%p365_p3), %s3652_s27, 0  ;;  %p496_p11 = scmp.eq.s32.totalorder (!%p365_p3), %s3652_s27, 1 }
   0xe   : > { %v3548_v0 = vld [vmem:[%s4798_s5 + $0x138] sm:$0xff]   ;;  %v3551_v3 = vld [vmem:[%s4798_s5 + $0x130] sm:$0xff]   ;;  %v3554_v6 = vld [vmem:[%s4798_s5 + $0x128] sm:$0xff]   ;;  %s4885_s22 = smov (!%p433_p5, %s2706_s22), 63  ;;  %v641_v11 = vlaneseq  ;;  %s4887_s14 = smov (!%p443_p6, %s2710_s14), 0  ;;  %vm4807_vm4 = vmmov 1  }
   0xf   : > { %v3549_v1 = vld [vmem:[%s4798_s5 + $0x178] sm:$0xff]   ;;  %3171 = vmatprep.subr.bf16.mxu0 %v3548_v0  ;;  %v3552_v4 = vld [vmem:[%s4798_s5 + $0x170] sm:$0xff]   ;;  %v3555_v7 = vld [vmem:[%s4798_s5 + $0x168] sm:$0xff]   ;;  %s4802_s12 = sshll.u32 %s4885_s22, 2  ;;  %s445_s13 = sadd.s32 %s2708_s18, %s4887_s14 }
  0x10   : > { %v3550_v2 = vld [vmem:[%s4798_s5 + $0xf8] sm:$0xff]   ;;  %3411 = vmatprep.subr.bf16.mxu1 %v3549_v1  ;;  %v3553_v5 = vld [vmem:[%s4798_s5 + $0xf0] sm:$0xff]   ;;  %v3556_v8 = vld [vmem:[%s4798_s5 + $0xe8] sm:$0xff]   ;;  %v3802_v15 = vshrl.u32 %v641_v11, 7  ;;  %s2711_s15 = sshll.u32 %s445_s13, 1  ;;  %s3829_s25 = scalar_lea.vmem %s4793_s0, %s4802_s12 }
  0x11   : > { %3172 = vmatpush3.bf16.msra.mxu0 %v3550_v2  ;;  %3412 = vmatpush3.bf16.msra.mxu1 %v3549_v1  ;;  %v3557_v9 = vld [vmem:[%s4798_s5 + $0x120] sm:$0xff]   ;;  %v3560_v13 = vld [vmem:[%s4798_s5 + $0x118] sm:$0xff]   ;;  %v3563_v17 = vld [vmem:[%s4798_s5 + $0x110] sm:$0xff]   ;;  %p447_p7 = scmp.lt.s32.totalorder %s2711_s15, 63  ;;  %p488_p12 = scmp.lt.s32.totalorder %s3758_s17, 3 }
  0x12   : > { %3173 = vmatprep.subr.bf16.mxu0 %v3551_v3  ;;  %3413 = vmatprep.subr.bf16.mxu1 %v3552_v4  ;;  %v3558_v10 = vld [vmem:[%s4798_s5 + $0x160] sm:$0xff]   ;;  %v3561_v14 = vld [vmem:[%s4798_s5 + $0x158] sm:$0xff]   ;;  %v3564_v18 = vld [vmem:[%s4798_s5 + $0x150] sm:$0xff]   ;;  %v643_v19 = vadd.s32 8, %v3802_v15  ;;  %v662_v29 = vand.u32 15, %v3802_v15  ;;  %v3855_v30 = vadd.s32 24, %v3802_v15 }
  0x13   : > { %v3559_v12 = vld [vmem:[%s4798_s5 + $0xe0] sm:$0xff]   ;;  %v3562_v16 = vld [vmem:[%s4798_s5 + $0xd8] sm:$0xff]   ;;  %v3565_v20 = vld [vmem:[%s4798_s5 + $0xd0] sm:$0xff]   ;;  %s4889_s15 = smov (!%p447_p7, %s2711_s15), 63  ;;  %v3872_v40 = vadd.s32 40, %v3802_v15  ;;  %v3893_v51 = vadd.s32 16, %v3802_v15 }
  0x14   : > { %v3566_v21 = vld [vmem:[%s4798_s5 + $0x108] sm:$0xff]   ;;  %v669_v24 = vand.u32 15, %v643_v19  ;;  %v3569_v25 = vld [vmem:[%s4798_s5 + $0x100] sm:$0xff]   ;;  %s2712_s23 = sshll.u32 %s4889_s15, 2  ;;  %v3158_v39 = vld [vmem:[%s3829_s25 + $0x10] sm:$0xff]   ;;  %vm850_vm2 = vcmp.ge.s32.totalorder %v662_v29, 1 }
  0x15   : > { %3174 = vmatpush3.bf16.msra.mxu0 %v3553_v5  ;;  %3414 = vmatpush3.bf16.msra.mxu1 %v3552_v4  ;;  %v3567_v22 = vld [vmem:[%s4798_s5 + $0x148] sm:$0xff]   ;;  %v3570_v26 = vld [vmem:[%s4798_s5 + $0x140] sm:$0xff]   ;;  %s450_s20 = scalar_lea.vmem %s4794_s1, %s2712_s23  ;;  %s3060_s23 = sadd.s32 8, %s2709_s26  ;;  %v3095_v46 = vunpack.c.l.bf16 %v3158_v39  ;;  %v3572_v50 = vld [vmem:[%s4798_s5 + $0x78] sm:$0xff]   ;;  %v3096_v56 = vunpack.c.h.bf16 %v3158_v39  ;;  %v683_v4 = vand.u32 15, %v3855_v30  ;;  %v4007_v44 = vadd.s32 72, %v3802_v15 }
  0x16   : > { %3175 = vmatprep.subr.bf16.mxu0 %v3554_v6  ;;  %3415 = vmatprep.subr.bf16.mxu1 %v3555_v7  ;;  %v3568_v23 = vld [vmem:[%s4798_s5 + $0xc8] sm:$0xff]   ;;  %v3847_v27 = vld [vmem:[%s4796_s3] ss:$0 sm:$0xff]  ;;  %s3867_s21 = scalar_select %p495_p8, 1, 0  ;;  %vm3881_vm0 = vcmp.le.s32.totalorder %v669_v24, 14  ;;  %vm3988_vm7 = vmpackc.low %vm4807_vm4, %vm850_vm2 }
  0x17   : > { %v3086_v28 = vld [vmem:[%s3829_s25] sm:$0xff]   ;;  %v3157_v34 = vld [vmem:[%s3829_s25 + $0x8] sm:$0xff]   ;;  %p461_p9 = scmp.lt.s32.totalorder %s3060_s23, 15  ;;  %v577_v54 = vmul.f32 %v3095_v46, %v3847_v27  ;;  %v3901_v55 = vld [vmem:[%s4798_s5 + $0xb8] sm:$0xff]   ;;  %v578_v0 = vmul.f32 %v3096_v56, %v3847_v27  ;;  %vm3956_vm3 = vcmp.le.s32.totalorder %v683_v4, 14  ;;  %s4895_s17 = smov (!%p488_p12, %s3758_s17), 3 }
  0x18   : > { %v3860_v31 = vld [vmem:[%s4797_s4] ss:$0 sm:$0xff]  ;;  %v3087_v32 = vunpack.c.l.bf16 %v3086_v28  ;;  %v3088_v33 = vunpack.c.h.bf16 %v3086_v28  ;;  %v3091_v36 = vunpack.c.l.bf16 %v3157_v34  ;;  %v3092_v37 = vunpack.c.h.bf16 %v3157_v34  ;;  %v3159_v5 = vld [vmem:[%s3829_s25 + $0x18] sm:$0xff]   ;;  %vm3969_vm5 = vmpackc.low %vm3881_vm0, %vm4807_vm4  ;;  %s4171_s13 = scalar_select %p496_p11, 1, 0 }
  0x19   : > { %3176 = vmatpush3.bf16.msra.mxu0 %v3556_v8  ;;  %3416 = vmatpush3.bf16.msra.mxu1 %v3555_v7  ;;  %v3863_v35 = vld [vmem:[%s450_s20] sm:$0xff]   ;;  %v522_v45 = vstv %s3867_s21  ;;  %s4891_s23 = smov (!%p461_p9, %s3060_s23), 15  ;;  %v3916_v63 = vadd.f32 %v3860_v31, %v577_v54  ;;  %v3099_v8 = vunpack.c.l.bf16 %v3159_v5  ;;  %vm4013_vm9 = vmpackc.low %vm3956_vm3, %vm4807_vm4  ;;  %v3574_v56 = vld [vmem:[%s4798_s5 + $0x38] sm:$0xff]  }
  0x1a   : > { %3177 = vmatprep.subr.bf16.mxu0 %v3557_v9  ;;  %3417 = vmatprep.subr.bf16.mxu1 %v3558_v10  ;;  %v3080_v38 = vunpack.c.h.bf16 %v3863_v35  ;;  %v3571_v41 = vld [vmem:[%s4798_s5 + $0xc0] sm:$0xff]   ;;  %v573_v42 = vmul.f32 %v3087_v32, %v3847_v27  ;;  %v574_v43 = vmul.f32 %v3088_v33, %v3847_v27  ;;  %v575_v47 = vmul.f32 %v3091_v36, %v3847_v27  ;;  %s3921_s20 = sadd.s32 %s2708_s18, %s4891_s23 }
  0x1b   : > { %v576_v49 = vmul.f32 %v3092_v37, %v3847_v27  ;;  %vm3910_vm1 = vcmp.eq.s32.totalorder %v522_v45, 1  ;;  %v609_v7 = vmax.f32 %v3916_v63, 0.0  ;;  %v3934_v9 = vadd.f32 %v3860_v31, %v578_v0  ;;  %s2715_s28 = sshll.u32 %s3921_s20, 1  ;;  %v3161_v37 = vld [vmem:[%s3829_s25 + $0x28] sm:$0xff]   ;;  %v3162_v45 = vld [vmem:[%s3829_s25 + $0x30] sm:$0xff]  }
  0x1c   : > { %v509_v48 = vmul.f32 %v3080_v38, %v3847_v27  ;;  %v589_v52 = vadd.f32 %v3860_v31, %v573_v42  ;;  %v590_v53 = vadd.f32 %v3860_v31, %v574_v43  ;;  %v3905_v57 = vadd.f32 %v3860_v31, %v575_v47  ;;  %p3983_p10 = scmp.lt.s32.totalorder %s2715_s28, 63 }
  0x1d   : > { %3178 = vmatpush3.bf16.msra.mxu0 %v3559_v12  ;;  %3418 = vmatpush3.bf16.msra.mxu1 %v3558_v10  ;;  %v592_v60 = vadd.f32 %v3860_v31, %v576_v49  ;;  %v3160_v10 = vld [vmem:[%s3829_s25 + $0x20] sm:$0xff]   ;;  %v697_v12 = vand.u32 15, %v3872_v40  ;;  %627 = vst [vmem:[#allocation2 + $0x38] sm:$0xff] %v609_v7  ;;  %v3079_v38 = vunpack.c.l.bf16 %v3863_v35  ;;  %v3107_v42 = vunpack.c.l.bf16 %v3161_v37 }
  0x1e   : > { %3179 = vmatprep.subr.bf16.mxu0 %v3560_v13  ;;  %3419 = vmatprep.subr.bf16.mxu1 %v3561_v14  ;;  %v3908_v58 = vadd.f32 %v3860_v31, %v509_v48  ;;  %v605_v61 = vmax.f32 %v589_v52, 0.0  ;;  %v606_v62 = vmax.f32 %v590_v53, 0.0  ;;  %v607_v1 = vmax.f32 %v3905_v57, 0.0  ;;  %s4893_s28 = smov (!%p3983_p10, %s2715_s28), 63  ;;  %v3575_v57 = vld [vmem:[%s4798_s5 + $0x70] sm:$0xff]  }
  0x1f   : > { %v3925_v3 = vmax.f32 %v592_v60, 0.0  ;;  %v3100_v13 = vunpack.c.h.bf16 %v3159_v5  ;;  %v3103_v19 = vunpack.c.l.bf16 %v3160_v10  ;;  %vm3973_vm6 = vcmp.le.s32.totalorder %v697_v12, 14  ;;  %v3578_v12 = vld [vmem:[%s4798_s5 + $0xb0] sm:$0xff]   ;;  %s2716_s20 = sshll.u32 %s4893_s28, 2 }
  0x20   : > { %v520_v2 = vmax.f32 %v3908_v58, 0.0  ;;  %623 = vst [vmem:[#allocation2 + $0x18] sm:$0xff] %v605_v61  ;;  %624 = vst [vmem:[#allocation2 + $0x20] sm:$0xff] %v606_v62  ;;  %v3929_v6 = vpack.c.bf16 %v606_v62, %v605_v61  ;;  %v4021_v49 = vadd.s32 32, %v3802_v15  ;;  %v583_v61 = vmul.f32 %v3107_v42, %v3847_v27  ;;  %s468_s26 = scalar_lea.vmem %s4795_s2, %s2716_s20 }
  0x21   : > { %3180 = vmatpush3.bf16.msra.mxu0 %v3562_v16  ;;  %3420 = vmatpush3.bf16.msra.mxu1 %v3561_v14  ;;  %625 = vst [vmem:[#allocation2 + $0x28] sm:$0xff] %v607_v1  ;;  %626 = vst [vmem:[#allocation2 + $0x30] sm:$0xff] %v3925_v3  ;;  %v649_v14 = vadd.s32 56, %v3802_v15  ;;  %v579_v16 = vmul.f32 %v3099_v8, %v3847_v27  ;;  %v581_v24 = vmul.f32 %v3103_v19, %v3847_v27 }
  0x22   : > { %3181 = vmatprep.subr.bf16.mxu0 %v3563_v17  ;;  %3421 = vmatprep.subr.bf16.mxu1 %v3564_v18  ;;  %v525_v11 = vsel %vm3910_vm1, 0.0, %v520_v2  ;;  %v610_v17 = vmax.f32 %v3934_v9, 0.0  ;;  %v4031_v60 = vpack.c.bf16 %v3925_v3, %v607_v1  ;;  %vm4053_vm10 = vmpackc.low %vm3973_vm6, %vm4807_vm4  ;;  %v508_v8 = vmul.f32 %v3079_v38, %v3847_v27  ;;  %v3163_v9 = vld [vmem:[%s3829_s25 + $0x38] sm:$0xff]   ;;  %s4873_s25 = sshll.u32 %s4885_s22, 2  ;;  %s2721_s22 = sshll.u32 %s4895_s17, 1 }
  0x23   : > { %1378 = vmatprep.mubr.bf16.mxu0 %v3929_v6  ;;  %622 = vst [vmem:[#allocation2 + $0x10] sm:$0xff] %v525_v11  ;;  %v711_v29 = vand.u32 15, %v649_v14  ;;  %v3998_v36 = vadd.f32 %v3860_v31, %v581_v24  ;;  %v725_v14 = vand.u32 15, %v4007_v44  ;;  %s4717_s12 = scalar_lea.vmem %s4800_s7, %s4873_s25  ;;  %s491_s21 = scalar_lea.vmem %s4801_s8, %s2721_s22 }
  0x24   : > { %628 = vst [vmem:[#allocation2 + $0x40] sm:$0xff] %v610_v17 }
  0x25   : > { %3182 = vmatpush3.bf16.msra.mxu0 %v3565_v20  ;;  %3422 = vmatpush3.bf16.msra.mxu1 %v3564_v18  ;;  %v676_v18 = vand.u32 15, %v3893_v51  ;;  %v580_v20 = vmul.f32 %v3100_v13, %v3847_v27  ;;  %v613_v48 = vmax.f32 %v3998_v36, 0.0  ;;  %v3111_v51 = vunpack.c.l.bf16 %v3162_v45  ;;  %v3594_v36 = vld [vmem:[%s4798_s5 + $0x88] sm:$0xff]  }
  0x26   : > { %3183 = vmatprep.subr.bf16.mxu0 %v3566_v21  ;;  %3423 = vmatprep.subr.bf16.mxu1 %v3567_v22  ;;  %v3104_v21 = vunpack.c.h.bf16 %v3160_v10  ;;  %vm4059_vm11 = vcmp.le.s32.totalorder %v711_v29, 14  ;;  %v3576_v10 = vld [vmem:[%s4798_s5 + $0x30] sm:$0xff]   ;;  %v4081_v13 = vadd.f32 %v3860_v31, %v583_v61  ;;  %vm4138_vm14 = vcmp.le.s32.totalorder %v725_v14, 14 }
  0x27   : > { %v3978_v28 = vadd.f32 %v3860_v31, %v580_v20  ;;  %vm3993_vm8 = vcmp.ge.s32.totalorder %v676_v18, 1  ;;  %v964_v39 = vld [vmem:[#allocation2 + $0x19] sm:$0xff]  ;;  %631 = vst [vmem:[#allocation2 + $0x58] sm:$0xff] %v613_v48  ;;  %v585_v18 = vmul.f32 %v3111_v51, %v3847_v27  ;;  %v3577_v20 = vld [vmem:[%s4798_s5 + $0x68] sm:$0xff]   ;;  %vm4111_vm13 = vmpackc.low %vm4059_vm11, %vm4807_vm4 }
  0x28   : > { %v582_v30 = vmul.f32 %v3104_v21, %v3847_v27  ;;  %v885_v40 = vld [vmem:[#allocation2 + $0x1f] sm:$0xff]  ;;  %v966_v47 = vld [vmem:[#allocation2 + $0x29] sm:$0xff]  ;;  %v967_v54 = vld [vmem:[#allocation2 + $0x31] sm:$0xff]  ;;  %v690_v21 = vand.u32 15, %v4021_v49  ;;  %v615_v29 = vmax.f32 %v4081_v13, 0.0 }
  0x29   : > { %3184 = vmatpush3.bf16.msra.mxu0 %v3568_v23  ;;  %3424 = vmatpush3.bf16.msra.mxu1 %v3567_v22  ;;  %v3961_v23 = vadd.f32 %v3860_v31, %v579_v16  ;;  %v965_v46 = vld [vmem:[#allocation2 + $0x21] sm:$0xff]  ;;  %v4045_v4 = vpack.c.bf16 %v967_v54, %v966_v47  ;;  %vm4073_vm12 = vmpackc.low %vm4807_vm4, %vm3993_vm8  ;;  %v3112_v22 = vunpack.c.h.bf16 %v3162_v45  ;;  %v4104_v34 = vadd.f32 %v3860_v31, %v585_v18  ;;  %v888_v54 = vld [vmem:[#allocation2 + $0x37] sm:$0xff] }
  0x2a   : > { %3185 = vmatprep.subr.bf16.mxu0 %v3569_v25  ;;  %3425 = vmatprep.subr.bf16.mxu1 %v3570_v26  ;;  %v4004_v43 = vadd.f32 %v3860_v31, %v582_v30  ;;  %v4023_v52 = vpack.c.bf16 %v965_v46, %v964_v39  ;;  %v884_v53 = vld [vmem:[#allocation2 + $0x17] sm:$0xff]  ;;  %v886_v19 = vld [vmem:[#allocation2 + $0x27] sm:$0xff]  ;;  %633 = vst [vmem:[#allocation2 + $0x68] sm:$0xff] %v615_v29  ;;  %vm4154_vm15 = vcmp.ge.s32.totalorder %v690_v21, 1  ;;  %vm4180_vm0 = vmpackc.low %vm4138_vm14, %vm4807_vm4  ;;  %v655_v18 = vadd.s32 104, %v3802_v15 }
  0x2b   : > { %v611_v33 = vmax.f32 %v3961_v23, 0.0  ;;  %v4043_v0 = vpack.c.bf16 %v885_v40, %v884_v53  ;;  %v968_v24 = vld [vmem:[#allocation2 + $0x39] sm:$0xff]  ;;  %v586_v38 = vmul.f32 %v3112_v22, %v3847_v27  ;;  %v3579_v40 = vld [vmem:[%s4798_s5 + $0x28] sm:$0xff]   ;;  %v4804_v44 = vmax.f32 %v4104_v34, 0.0  ;;  %vm4221_vm3 = vmpackc.low %vm4807_vm4, %vm4154_vm15 }
  0x2c   : > { %v614_v62 = vmax.f32 %v4004_v43, 0.0  ;;  %3427 = vmatprep.mubr.msk.bf16.mxu1 %vm3969_vm5, %v4023_v52  ;;  %v3583_v45 = vld [vmem:[%s4798_s5 + $0xa8] sm:$0xff]   ;;  %v4129_v46 = vadd.f32 %v3860_v31, %v508_v8  ;;  %v3580_v51 = vld [vmem:[%s4798_s5 + $0x60] sm:$0xff]   ;;  %v3116_v21 = vunpack.c.h.bf16 %v3163_v9  ;;  %v4847_v23 = vmov 0  ;;  %v3597_v13 = vld [vmem:[%s4798_s5 + $0x1f8] sm:$0xff]  }
  0x2d   : > { %3186 = vmatpush3.bf16.msra.mxu0 %v3571_v41  ;;  %3426 = vmatpush3.bf16.msra.mxu1 %v3570_v26  ;;  %v612_v41 = vmax.f32 %v3978_v28, 0.0  ;;  %629 = vst [vmem:[#allocation2 + $0x48] sm:$0xff] %v611_v33  ;;  %v887_v26 = vld [vmem:[#allocation2 + $0x2f] sm:$0xff]  ;;  %v889_v8 = vld [vmem:[#allocation2 + $0x3f] sm:$0xff]  ;;  %635 = vst [vmem:[#allocation2 + $0x78] sm:$0xff] %v4804_v44 }
  0x2e   : > { %3251 = vmatprep.subr.bf16.mxu1 %v3572_v50  ;;  %3443 = vmatprep.subr.bf16.mxu0 %v3901_v55  ;;  %v3108_v50 = vunpack.c.h.bf16 %v3161_v37  ;;  %632 = vst [vmem:[#allocation2 + $0x60] sm:$0xff] %v614_v62  ;;  %v4133_v49 = vpack.c.bf16 %v887_v26, %v886_v19  ;;  %v648_v19 = vadd.s32 48, %v3802_v15 }
  0x2f   : > { %630 = vst [vmem:[#allocation2 + $0x50] sm:$0xff] %v612_v41 }
  0x30   : > { %v584_v16 = vmul.f32 %v3108_v50, %v3847_v27  ;;  %2798 = vmatmul.mubr.msk.bf16.vlgmr.msra.gmra.mxu0 %vm3988_vm7, %v4043_v0  ;;  %3428 = vmatmul.mubr.msk.bf16.vlgmr.msra.gmra.mxu1 %vm4013_vm9, %v4045_v4 }
  0x31   : > { %3252 = vmatpush3.bf16.msra.mxu1 %v3574_v56  ;;  %3444 = vmatpush3.bf16.msra.mxu0 %v3901_v55  ;;  %v653_v55 = vadd.s32 88, %v3802_v15  ;;  %v4143_v56 = vadd.f32 %v3860_v31, %v586_v38  ;;  %v3582_v38 = vld [vmem:[%s4798_s5 + $0x58] sm:$0xff]  }
  0x32   : > { %v4101_v30 = vadd.f32 %v3860_v31, %v584_v16  ;;  %3253 = vmatprep.subr.bf16.mxu1 %v3575_v57  ;;  %1386 = vmatprep.mubr.bf16.mxu0 %v4031_v60  ;;  %v4152_v57 = vpack.c.bf16 %v610_v17, %v609_v7  ;;  %v3115_v16 = vunpack.c.l.bf16 %v3163_v9  ;;  %v3588_v9 = vld [vmem:[%s4798_s5 + $0xa0] sm:$0xff]  }
  0x33   : > { %3445 = vmatprep.subr.bf16.mxu0 %v3578_v12  ;;  %v739_v7 = vand.u32 15, %v653_v55  ;;  %v4803_v17 = vmax.f32 %v4143_v56, 0.0  ;;  %v4199_v55 = vpack.c.bf16 %v889_v8, %v888_v54  ;;  %v537_v54 = vstv %s4171_s13 }
  0x34   : > { %v969_v39 = vld [vmem:[#allocation2 + $0x41] sm:$0xff]  ;;  %v616_v42 = vmax.f32 %v4101_v30, 0.0  ;;  %v657_v8 = vadd.s32 120, %v3802_v15  ;;  %vm4259_vm8 = vcmp.eq.s32.totalorder %v537_v54, 1  ;;  %v3592_v54 = vld [vmem:[%s4798_s5 + $0x98] sm:$0xff]  }
  0x35   : > { %v4131_v47 = vpack.c.bf16 %v969_v39, %v968_v24  ;;  %3254 = vmatpush3.bf16.msra.mxu1 %v3576_v10  ;;  %3446 = vmatpush3.bf16.msra.mxu0 %v3578_v12  ;;  %v519_v10 = vmax.f32 %v4129_v46, 0.0  ;;  %v3581_v12 = vld [vmem:[%s4798_s5 + $0x20] sm:$0xff]   ;;  %636 = vst [vmem:[#allocation2 + $0x80] sm:$0xff] %v4803_v17  ;;  %v587_v39 = vmul.f32 %v3115_v16, %v3847_v27  ;;  %vm4206_vm2 = vcmp.le.s32.totalorder %v739_v7, 14 }
  0x36   : > { %v970_v50 = vld [vmem:[#allocation2 + $0x49] sm:$0xff]  ;;  %v971_v61 = vld [vmem:[#allocation2 + $0x51] sm:$0xff]  ;;  %634 = vst [vmem:[#allocation2 + $0x70] sm:$0xff] %v616_v42  ;;  %3255 = vmatprep.subr.bf16.mxu1 %v3577_v20  ;;  %3447 = vmatprep.subr.bf16.mxu0 %v3583_v45  ;;  %v3082_v20 = vld [vmem:[%s468_s26] sm:$0xff]   ;;  %v4232_v7 = vpack.c.bf16 %v612_v41, %v611_v33  ;;  %v4381_v58 = vpack.c.bf16 %v616_v42, %v615_v29 }
  0x37   : > { %3431 = vmatprep.mubr.msk.bf16.mxu1 %vm4053_vm10, %v4131_v47  ;;  %v4165_v63 = vpack.c.bf16 %v971_v61, %v970_v50  ;;  %v972_v22 = vld [vmem:[#allocation2 + $0x59] sm:$0xff]  ;;  %v3083_v24 = vunpack.c.l.bf16 %v3082_v20  ;;  %v524_v26 = vsel %vm3910_vm1, 0.0, %v519_v10  ;;  %v588_v50 = vmul.f32 %v3116_v21, %v3847_v27  ;;  %v973_v53 = vld [vmem:[#allocation2 + $0x61] sm:$0xff]  ;;  %vm4249_vm6 = vmpackc.low %vm4206_vm2, %vm4807_vm4 }
  0x38   : > { %2801 = vmatmul.mubr.msk.bf16.gmra.mxu0 %vm4073_vm12, %v4133_v49  ;;  %621 = vst [vmem:[#allocation2 + $0x8] sm:$0xff] %v524_v26  ;;  %v4216_v16 = vpack.c.bf16 %v973_v53, %v972_v22  ;;  %v4235_v21 = vadd.f32 %v3860_v31, %v587_v39  ;;  %v753_v26 = vand.u32 15, %v655_v18  ;;  %v704_v53 = vand.u32 15, %v648_v19  ;;  %v3585_v33 = vld [vmem:[%s4798_s5 + $0x50] sm:$0xff]   ;;  %v894_v46 = vld [vmem:[#allocation2 + $0x67] sm:$0xff] }
  0x39   : > { %3432 = vmatmul.mubr.msk.bf16.gmra.mxu1 %vm4111_vm13, %v4165_v63  ;;  %1394 = vmatprep.mubr.bf16.mxu0 %v4152_v57  ;;  %v4238_v5 = vadd.f32 %v3860_v31, %v588_v50  ;;  %v3084_v44 = vunpack.c.h.bf16 %v3082_v20  ;;  %v4848_v23 = vsel %vm4249_vm6, 4294967295, %v4847_v23  ;;  %v767_v20 = vand.u32 15, %v657_v8  ;;  %v3587_v8 = vld [vmem:[%s4798_s5 + $0x48] sm:$0xff]   ;;  %v3601_v29 = vld [vmem:[%s4798_s5 + $0x230] sm:$0xff]  }
  0x3a   : > { %3256 = vmatpush3.bf16.msra.mxu1 %v3579_v40  ;;  %3448 = vmatpush3.bf16.msra.mxu0 %v3583_v45  ;;  %v530_v40 = vmul.f32 %v3083_v24, %v3847_v27  ;;  %v3584_v45 = vld [vmem:[%s4798_s5 + $0x18] sm:$0xff]   ;;  %v619_v41 = vmax.f32 %v4235_v21, 0.0  ;;  %vm4279_vm11 = vcmp.le.s32.totalorder %v753_v26, 14  ;;  %vm856_vm14 = vcmp.ge.s32.totalorder %v704_v53, 1  ;;  %v3613_v21 = vld [vmem:[%s4798_s5 + $0x210] sm:$0xff]  }
  0x3b   : > { %3257 = vmatprep.subr.bf16.mxu1 %v3580_v51  ;;  %3449 = vmatprep.subr.bf16.mxu0 %v3588_v9  ;;  %v620_v18 = vmax.f32 %v4238_v5, 0.0  ;;  %v531_v39 = vmul.f32 %v3084_v44, %v3847_v27  ;;  %v890_v44 = vld [vmem:[#allocation2 + $0x47] sm:$0xff]  ;;  %vm881_vm15 = vcmp.le.s32.totalorder %v767_v20, 14  ;;  %vm4302_vm2 = vmpackc.low %vm4279_vm11, %vm4807_vm4  ;;  %v4857_v20 = vmov 0 }
  0x3c   : > { %v4241_v17 = vadd.f32 %v3860_v31, %v530_v40  ;;  %3435 = vmatprep.mubr.msk.bf16.mxu1 %vm4180_vm0, %v4216_v16  ;;  %637 = vst [vmem:[#allocation2 + $0x88] sm:$0xff] %v619_v41  ;;  %v891_v40 = vld [vmem:[#allocation2 + $0x4f] sm:$0xff]  ;;  %vm4321_vm11 = vmpackc.low %vm881_vm15, %vm4807_vm4 }
  0x3d   : > { %v974_v22 = vld [vmem:[#allocation2 + $0x69] sm:$0xff]  ;;  %v975_v24 = vld [vmem:[#allocation2 + $0x71] sm:$0xff]  ;;  %638 = vst [vmem:[#allocation2 + $0x90] sm:$0xff] %v620_v18  ;;  %v4288_v61 = vadd.f32 %v3860_v31, %v531_v39  ;;  %v4314_v53 = vpack.c.bf16 %v891_v40, %v890_v44  ;;  %v4858_v20 = vsel %vm4321_vm11, 4294967295, %v4857_v20  ;;  %vm3620_vm15 = vmneg %vm3910_vm1 }
  0x3e   : > { %3258 = vmatpush3.bf16.msra.mxu1 %v3581_v12  ;;  %v4253_v28 = vpack.c.bf16 %v975_v24, %v974_v22  ;;  %v4849_v12 = vmov 0  ;;  %v534_v19 = vmax.f32 %v4241_v17, 0.0  ;;  %3450 = vmatpush3.bf16.msra.mxu0 %v3588_v9  ;;  %v650_v9 = vadd.s32 64, %v3802_v15  ;;  %v3593_v22 = vld [vmem:[%s4798_s5 + $0x90] sm:$0xff]   ;;  %v976_v24 = vld [vmem:[#allocation2 + $0x79] sm:$0xff]  ;;  %v3589_v39 = vld [vmem:[%s4798_s5 + $0x8] sm:$0xff]  }
  0x3f   : > { %v4850_v12 = vsel %vm4259_vm8, 4294967295, %v4849_v12  ;;  %3259 = vmatprep.subr.bf16.mxu1 %v3582_v38  ;;  %v3586_v38 = vld [vmem:[%s4798_s5 + $0x10] sm:$0xff]   ;;  %v535_v31 = vmax.f32 %v4288_v61, 0.0  ;;  %3451 = vmatprep.subr.bf16.mxu0 %v3592_v54 }
  0x40   : > { %2804 = vmatmul.mubr.msk.bf16.gmra.mxu0 %vm4221_vm3, %v4199_v55  ;;  %v539_v50 = vsel %vm4259_vm8, 0.0, %v534_v19  ;;  %v718_v40 = vand.u32 15, %v650_v9  ;;  %v652_v9 = vadd.s32 80, %v3802_v15  ;;  %v962_v5 = vld [vmem:[#allocation2 + $0x9] sm:$0xff] }
  0x41   : > { %3436 = vmatmul.mubr.msk.bf16.gmra.mxu1 %vm4249_vm6, %v4253_v28  ;;  %1402 = vmatprep.mubr.bf16.mxu0 %v4232_v7  ;;  %639 = vst [vmem:[#allocation2 + $0x98] sm:$0xff] %v539_v50  ;;  %vm4310_vm6 = vmpackc.low %vm4807_vm4, %vm856_vm14  ;;  %v3590_v50 = vld [vmem:[%s4798_s5 + $0x40] sm:$0xff]   ;;  %v3628_v35 = vpack.c.bf16 %v535_v31, %v534_v19 }
  0x42   : > { %3260 = vmatpush3.bf16.msra.mxu1 %v3584_v45  ;;  %3452 = vmatpush3.bf16.msra.mxu0 %v3592_v54  ;;  %vm858_vm14 = vcmp.ge.s32.totalorder %v718_v40, 1  ;;  %vm3622_vm4 = vmpackc.low %vm3620_vm15, %vm3620_vm15  ;;  %v3595_v40 = vld [vmem:[%s4798_s5 + $0x80] sm:$0xff]   ;;  %v732_v59 = vand.u32 15, %v652_v9  ;;  %v896_v9 = vld [vmem:[#allocation2 + $0x77] sm:$0xff] }
  0x43   : > { %3261 = vmatprep.subr.bf16.mxu1 %v3585_v33  ;;  %v540_v33 = vsel %vm4259_vm8, 0.0, %v535_v31  ;;  %3453 = vmatprep.subr.bf16.mxu0 %v3593_v22  ;;  %v977_v27 = vld [vmem:[#allocation2 + $0x81] sm:$0xff]  ;;  %vm4859_vm8 = vmmov 1  }
  0x44   : > { %640 = vst [vmem:[#allocation2 + $0xa0] sm:$0xff] %v540_v33  ;;  %v1118_v44 = vld [vmem:[#allocation2 + $0x89] sm:$0xff]  ;;  %v4337_v54 = vpack.c.bf16 %v977_v27, %v976_v24  ;;  %v3591_v33 = vld [vmem:[%s4798_s5] sm:$0xff]   ;;  %v3596_v27 = vld [vmem:[%s4798_s5 + $0x238] sm:$0xff]   ;;  %vm860_vm1 = vcmp.ge.s32.totalorder %v732_v59, 1 }
  0x45   : > { %v882_v24 = vld [vmem:[#allocation2 + $0x7] sm:$0xff] }
  0x46   : > { %3262 = vmatpush3.bf16.msra.mxu1 %v3586_v38  ;;  %v4335_v38 = vpack.c.bf16 %v614_v62, %v613_v48  ;;  %3439 = vmatprep.mubr.msk.bf16.mxu1 %vm4302_vm2, %v4337_v54  ;;  %v892_v48 = vld [vmem:[#allocation2 + $0x57] sm:$0xff]  ;;  %v893_v62 = vld [vmem:[#allocation2 + $0x5f] sm:$0xff] }
  0x47   : > { %3263 = vmatprep.subr.bf16.mxu1 %v3587_v8  ;;  %3454 = vmatpush3.bf16.msra.mxu0 %v3593_v22 }
  0x48   : > { %2807 = vmatmul.mubr.msk.bf16.gmra.mxu0 %vm4310_vm6, %v4314_v53  ;;  %v1119_v8 = vld [vmem:[#allocation2 + $0x91] sm:$0xff]  ;;  %3455 = vmatprep.subr.bf16.mxu0 %v3594_v36 }
  0x49   : > { %v4351_v43 = vpack.c.bf16 %v1119_v8, %v1118_v44  ;;  %1410 = vmatprep.mubr.bf16.mxu0 %v4335_v38  ;;  %v883_v44 = vld [vmem:[#allocation2 + $0xf] sm:$0xff]  ;;  %v4864_v8 = vmax.f32 %v4104_v34, 0.0  ;;  %v3607_v34 = vld [vmem:[%s4798_s5 + $0x220] sm:$0xff]  }
  0x4a   : > { %3264 = vmatpush3.bf16.msra.mxu1 %v3589_v39  ;;  %v3623_v39 = vpack.c.bf16 %v520_v2, %v519_v10  ;;  %v2869_v2 = vpack.c.bf16 %v883_v44, %v882_v24  ;;  %v895_v10 = vld [vmem:[#allocation2 + $0x6f] sm:$0xff]  ;;  %v897_v24 = vld [vmem:[#allocation2 + $0x7f] sm:$0xff] }
  0x4b   : > { %3265 = vmatprep.subr.bf16.mxu1 %v3590_v50  ;;  %3440 = vmatmul.mubr.msk.bf16.gmra.mxu1 %vm4321_vm11, %v4351_v43  ;;  %v4367_v50 = vpack.c.bf16 %v893_v62, %v892_v48  ;;  %vm4373_vm11 = vmpackc.low %vm4859_vm8, %vm858_vm14  ;;  %v4402_v42 = vpack.c.bf16 %v895_v10, %v894_v46  ;;  %v4430_v44 = vpack.c.bf16 %v897_v24, %v896_v9  ;;  %v3616_v46 = vld [vmem:[%s4798_s5 + $0x208] sm:$0xff]   ;;  %v3619_v10 = vld [vmem:[%s4798_s5 + $0x200] sm:$0xff]  }
  0x4c   : > { %3624 = vmatprep.mubr.msk.bf16.mxu1 %vm3622_vm4, %v3623_v39  ;;  %3456 = vmatpush3.bf16.msra.mxu0 %v3594_v36  ;;  %vm4398_vm4 = vmpackc.low %vm4859_vm8, %vm860_vm1  ;;  %v4865_v36 = vmax.f32 %v4143_v56, 0.0  ;;  %v656_v56 = vadd.s32 112, %v3802_v15  ;;  %v4436_v39 = vpack.c.bf16 %v620_v18, %v619_v41  ;;  %v963_v41 = vld [vmem:[#allocation2 + $0x11] sm:$0xff]  ;;  %v1941_v25 = vld [vmem:[#allocation2 + $0xa1] sm:$0xff] }
  0x4d   : > { %3457 = vmatprep.subr.bf16.mxu0 %v3595_v40  ;;  %v3609_v9 = vld [vmem:[%s4798_s5 + $0x198] sm:$0xff]   ;;  %v3611_v24 = vld [vmem:[%s4798_s5 + $0x1d0] sm:$0xff]  }
  0x4e   : > { %3266 = vmatpush3.bf16.msra.mxu1 %v3591_v33  ;;  %v654_v33 = vadd.s32 96, %v3802_v15  ;;  %v4408_v48 = vpack.c.bf16 %v4865_v36, %v4864_v8  ;;  %v3610_v15 = vld [vmem:[%s4798_s5 + $0x218] sm:$0xff]   ;;  %v3602_v8 = vld [vmem:[%s4798_s5 + $0x1e8] sm:$0xff]   ;;  %v3605_v36 = vld [vmem:[%s4798_s5 + $0x1e0] sm:$0xff]  }
  0x4f   : > { %3475 = vmatprep.subr.bf16.mxu1 %v3596_v27  ;;  %v1893_v1 = vld [vmem:[#allocation2 + $0x9f] sm:$0xff] }
  0x50   : > { %2810 = vmatmul.mubr.msk.bf16.gmra.mxu0 %vm4373_vm11, %v4367_v50  ;;  %v746_v62 = vand.u32 15, %v654_v33  ;;  %v3598_v33 = vld [vmem:[%s4798_s5 + $0x1b8] sm:$0xff]  }
  0x51   : > { %1418 = vmatprep.mubr.bf16.mxu0 %v4381_v58  ;;  %3458 = vmatpush3.bf16.msra.mxu0 %v3595_v40  ;;  %v1099_v40 = vld [vmem:[#allocation2 + $0x8f] sm:$0xff] }
  0x52   : > { %3331 = vmatprep.subr.bf16.mxu0 %v3597_v13  ;;  %vm862_vm14 = vcmp.ge.s32.totalorder %v746_v62, 1  ;;  %v3599_v13 = vld [vmem:[%s4798_s5 + $0x1f0] sm:$0xff]   ;;  %v3606_v62 = vld [vmem:[%s4798_s5 + $0x1a0] sm:$0xff]  }
  0x53   : > { %2870 = vmatmul.mubr.msk.bf16.vlgmr.msra.gmra.mxu1 %vm3988_vm7, %v2869_v2  ;;  %vm4426_vm15 = vmpackc.low %vm4859_vm8, %vm862_vm14  ;;  %v2893_v2 = vpack.c.bf16 %v963_v41, %v962_v5 }
  0x54   : > { %1724 = vmatprep.mubr.bf16.mxu1 %v3929_v6  ;;  %3476 = vmatpush3.bf16.msra.mxu1 %v3596_v27  ;;  %v3604_v6 = vld [vmem:[%s4798_s5 + $0x228] sm:$0xff]  }
  0x55   : > { %3477 = vmatprep.subr.bf16.mxu1 %v3601_v29 }
  0x58   : > { %2813 = vmatmul.mubr.msk.bf16.gmra.mxu0 %vm4398_vm4, %v4402_v42  ;;  %3478 = vmatpush3.bf16.msra.mxu1 %v3601_v29  ;;  %v3600_v29 = vld [vmem:[%s4798_s5 + $0x1b0] sm:$0xff]  }
  0x59   : > { %1426 = vmatprep.mubr.bf16.mxu0 %v4408_v48  ;;  %3479 = vmatprep.subr.bf16.mxu1 %v3604_v6 }
  0x5b   : > { %2873 = vmatmul.mubr.msk.bf16.gmra.mxu1 %vm4073_vm12, %v4043_v0  ;;  %v1098_v0 = vld [vmem:[#allocation2 + $0x87] sm:$0xff] }
  0x5c   : > { %1732 = vmatprep.mubr.bf16.mxu1 %v4031_v60  ;;  %3480 = vmatpush3.bf16.msra.mxu1 %v3604_v6  ;;  %v760_v60 = vand.u32 15, %v656_v56  ;;  %v4452_v18 = vpack.c.bf16 %v1099_v40, %v1098_v0  ;;  %v3608_v6 = vld [vmem:[%s4798_s5 + $0x1d8] sm:$0xff]   ;;  %v3614_v56 = vld [vmem:[%s4798_s5 + $0x1c8] sm:$0xff]   ;;  %v3617_v40 = vld [vmem:[%s4798_s5 + $0x1c0] sm:$0xff]  }
  0x5d   : > { %3481 = vmatprep.subr.bf16.mxu1 %v3607_v34 }
  0x5e   : > { %vm864_vm1 = vcmp.ge.s32.totalorder %v760_v60, 1  ;;  %v3615_v60 = vld [vmem:[%s4798_s5 + $0x188] sm:$0xff]  }
  0x5f   : > { %vm4455_vm14 = vmpackc.low %vm4859_vm8, %vm864_vm1  ;;  %vm4870_vm8 = vnez %v4848_v23  ;;  %vm4871_vm1 = vnez %v4858_v20 }
  0x60   : > { %2816 = vmatmul.mubr.msk.bf16.gmra.mxu0 %vm4426_vm15, %v4430_v44  ;;  %3482 = vmatpush3.bf16.msra.mxu1 %v3607_v34  ;;  %v3612_v34 = vld [vmem:[%s4798_s5 + $0x190] sm:$0xff]  }
  0x61   : > { %1434 = vmatprep.mubr.bf16.mxu0 %v4436_v39  ;;  %3483 = vmatprep.subr.bf16.mxu1 %v3610_v15 }
  0x63   : > { %2876 = vmatmul.mubr.msk.bf16.gmra.mxu1 %vm4221_vm3, %v4133_v49 }
  0x64   : > { %1740 = vmatprep.mubr.bf16.mxu1 %v4152_v57  ;;  %3484 = vmatpush3.bf16.msra.mxu1 %v3610_v15  ;;  %v1910_v15 = vld [vmem:[#allocation2 + $0x28] sm:$0xff] }
  0x65   : > { %3485 = vmatprep.subr.bf16.mxu1 %v3613_v21  ;;  %v1959_v0 = vpack.c.bf16 %v3925_v3, %v1910_v15  ;;  %v1940_v3 = vld [vmem:[#allocation2 + $0x99] sm:$0xff] }
  0x66   : > { %v3034_v32 = vpack.c.bf16 %v1941_v25, %v1940_v3 }
  0x68   : > { %2819 = vmatmul.mubr.msk.bf16.gmra.mxu0 %vm4455_vm14, %v4452_v18  ;;  %3486 = vmatpush3.bf16.msra.mxu1 %v3613_v21  ;;  %v3618_v21 = vld [vmem:[%s4798_s5 + $0x180] sm:$0xff]  }
  0x69   : > { %3459 = vmatprep.mubr.msk.bf16.mxu0 %vm3969_vm5, %v2893_v2  ;;  %3487 = vmatprep.subr.bf16.mxu1 %v3616_v46 }
  0x6b   : > { %2879 = vmatmul.mubr.msk.bf16.gmra.mxu1 %vm4310_vm6, %v4199_v55 }
  0x6c   : > { %1748 = vmatprep.mubr.bf16.mxu1 %v4232_v7  ;;  %3488 = vmatpush3.bf16.msra.mxu1 %v3616_v46 }
  0x6d   : > { %3489 = vmatprep.subr.bf16.mxu1 %v3619_v10 }
  0x70   : > { %3460 = vmatmul.mubr.msk.bf16.vlgmr.msra.gmra.mxu0 %vm4013_vm9, %v4023_v52  ;;  %3490 = vmatpush3.bf16.msra.mxu1 %v3619_v10  ;;  %v3603_v52 = vld [vmem:[%s4798_s5 + $0x1a8] sm:$0xff]  }
  0x71   : > { %3332 = vmatpush3.bf16.msra.mxu0 %v3598_v33  ;;  %3463 = vmatprep.mubr.msk.bf16.mxu0 %vm4053_vm10, %v4045_v4 }
  0x72   : > { %3333 = vmatprep.subr.bf16.mxu0 %v3599_v13 }
  0x73   : > { %2882 = vmatmul.mubr.msk.bf16.gmra.mxu1 %vm4373_vm11, %v4314_v53 }
  0x74   : > { %1756 = vmatprep.mubr.bf16.mxu1 %v4335_v38 }
  0x75   : > { %3334 = vmatpush3.bf16.msra.mxu0 %v3600_v29 }
  0x76   : > { %3335 = vmatprep.subr.bf16.mxu0 %v3602_v8 }
  0x78   : > { %3464 = vmatmul.mubr.msk.bf16.gmra.mxu0 %vm4111_vm13, %v4131_v47 }
  0x79   : > { %3336 = vmatpush3.bf16.msra.mxu0 %v3603_v52  ;;  %3467 = vmatprep.mubr.msk.bf16.mxu0 %vm4180_vm0, %v4165_v63 }
  0x7a   : > { %3337 = vmatprep.subr.bf16.mxu0 %v3605_v36 }
  0x7b   : > { %2885 = vmatmul.mubr.msk.bf16.gmra.mxu1 %vm4398_vm4, %v4367_v50 }
  0x7c   : > { %1764 = vmatprep.mubr.bf16.mxu1 %v4381_v58 }
  0x7d   : > { %3338 = vmatpush3.bf16.msra.mxu0 %v3606_v62 }
  0x7e   : > { %3339 = vmatprep.subr.bf16.mxu0 %v3608_v6 }
  0x80   : > { %3468 = vmatmul.mubr.msk.bf16.gmra.mxu0 %vm4870_vm8, %v4216_v16 }
  0x81   : > { %3340 = vmatpush3.bf16.msra.mxu0 %v3609_v9  ;;  %3471 = vmatprep.mubr.msk.bf16.mxu0 %vm4302_vm2, %v4253_v28 }
  0x82   : > { %3341 = vmatprep.subr.bf16.mxu0 %v3611_v24 }
  0x83   : > { %2888 = vmatmul.mubr.msk.bf16.gmra.mxu1 %vm4426_vm15, %v4402_v42 }
  0x84   : > { %1772 = vmatprep.mubr.bf16.mxu1 %v4408_v48 }
  0x85   : > { %3342 = vmatpush3.bf16.msra.mxu0 %v3612_v34 }
  0x86   : > { %3343 = vmatprep.subr.bf16.mxu0 %v3614_v56 }
  0x88   : > { %3472 = vmatmul.mubr.msk.bf16.gmra.mxu0 %vm4871_vm1, %v4337_v54 }
  0x89   : > { %3344 = vmatpush3.bf16.msra.mxu0 %v3615_v60  ;;  %2207 = vmatprep.mubr.bf16.mxu0 %v1959_v0 }
  0x8a   : > { %3345 = vmatprep.subr.bf16.mxu0 %v3617_v40 }
  0x8b   : > { %2891 = vmatmul.mubr.msk.bf16.gmra.mxu1 %vm4455_vm14, %v4430_v44 }
  0x8c   : > { %3491 = vmatprep.mubr.msk.bf16.mxu1 %vm3969_vm5, %v4045_v4  ;;  %vm4872_vm5 = vnez %v4850_v12  ;;  %v1892_v4 = vld [vmem:[#allocation2 + $0x97] sm:$0xff] }
  0x8d   : > { %3346 = vmatpush3.bf16.msra.mxu0 %v3618_v21  ;;  %v3010_v11 = vpack.c.bf16 %v1893_v1, %v1892_v4 }
  0x90   : > { %2990 = vmatmul.mubr.msk.bf16.vlgmr.msra.gmra.mxu0 %vm3988_vm7, %v4133_v49  ;;  %vm3625_vm7 = vmneg %vm4872_vm5 }
  0x91   : > { %2215 = vmatprep.mubr.bf16.mxu0 %v4152_v57 }
  0x93   : > { %3492 = vmatmul.mubr.msk.bf16.vlgmr.msra.gmra.mxu1 %vm4013_vm9, %v4131_v47  ;;  %vm3627_vm9 = vmpackc.low %vm3625_vm7, %vm3625_vm7 }
  0x94   : > { %3495 = vmatprep.mubr.msk.bf16.mxu1 %vm4053_vm10, %v4165_v63  ;;  %vm2546_vm10 = vcmask 1040384  }
  0x98   : > { %2993 = vmatmul.mubr.msk.bf16.gmra.mxu0 %vm4073_vm12, %v4199_v55 }
  0x99   : > { %2223 = vmatprep.mubr.bf16.mxu0 %v4232_v7 }
  0x9b   : > { %3496 = vmatmul.mubr.msk.bf16.gmra.mxu1 %vm4111_vm13, %v4216_v16 }
  0x9c   : > { %3499 = vmatprep.mubr.msk.bf16.mxu1 %vm4180_vm0, %v4253_v28 }
  0xa0   : > { %2996 = vmatmul.mubr.msk.bf16.gmra.mxu0 %vm4221_vm3, %v4314_v53 }
  0xa1   : > { %2231 = vmatprep.mubr.bf16.mxu0 %v4335_v38 }
  0xa3   : > { %3500 = vmatmul.mubr.msk.bf16.gmra.mxu1 %vm4870_vm8, %v4337_v54 }
  0xa4   : > { %3503 = vmatprep.mubr.msk.bf16.mxu1 %vm4302_vm2, %v4351_v43 }
  0xa8   : > { %2999 = vmatmul.mubr.msk.bf16.gmra.mxu0 %vm4310_vm6, %v4367_v50 }
  0xa9   : > { %2239 = vmatprep.mubr.bf16.mxu0 %v4381_v58 }
  0xab   : > { %3504 = vmatmul.mubr.msk.bf16.gmra.mxu1 %vm4871_vm1, %v3034_v32 }
  0xb0   : > { %3002 = vmatmul.mubr.msk.bf16.gmra.mxu0 %vm4373_vm11, %v4402_v42 }
  0xb1   : > { %2247 = vmatprep.mubr.bf16.mxu0 %v4408_v48 }
  0xb8   : > { %3005 = vmatmul.mubr.msk.bf16.gmra.mxu0 %vm4398_vm4, %v4430_v44 }
  0xb9   : > { %2255 = vmatprep.mubr.bf16.mxu0 %v4436_v39 }
  0xc0   : > { %3008 = vmatmul.mubr.msk.bf16.gmra.mxu0 %vm4426_vm15, %v4452_v18 }
  0xc1   : > { %3629 = vmatprep.mubr.msk.bf16.mxu0 %vm3627_vm9, %v3628_v35 }
  0xc8   : > { %3011 = vmatmul.mubr.msk.bf16.gmra.mxu0 %vm4455_vm14, %v3010_v11 }
  0xf0   : > { %v3187_v37 = vpop.f32.mrf.mxu0  ;;  %v3429_v47 = vpop.f32.mrf.mxu1 }
  0xf2   : > { %v3188_v49 = vpop.f32.mrf.mxu0  ;;  %v1477_v57 = vpop.f32.mrf.mxu1 }
  0xf3   : > { %v3189_v63 = vadd.f32 %v3188_v49, %v3187_v37 }
  0xf4   : > { %v3190_v14 = vpop.f32.mrf.mxu0  ;;  %v3430_v55 = vpop.f32.mrf.mxu1 }
  0xf5   : > { %v1478_v16 = vadd.f32 %v3189_v63, %v1477_v57 }
  0xf6   : > { %v3191_v51 = vpop.f32.mrf.mxu0  ;;  %v1480_v17 = vpop.f32.mrf.mxu1 }
  0xf7   : > { %v3192_v7 = vadd.f32 %v3191_v51, %v3190_v14 }
  0xf8   : > { %v3193_v23 = vpop.f32.mrf.mxu0 }
  0xf9   : > { %v3433_v28 = vpop.f32.mrf.mxu1  ;;  %v4614_v12 = vadd.f32 %v3192_v7, %v1480_v17 }
  0xfa   : > { %v3194_v19 = vpop.f32.mrf.mxu0 }
  0xfb   : > { %v1493_v61 = vpop.f32.mrf.mxu1  ;;  %v3195_v31 = vadd.f32 %v3194_v19, %v3193_v23 }
  0xfc   : > { %v3196_v45 = vpop.f32.mrf.mxu0 }
  0xfd   : > { %v3434_v26 = vpop.f32.mrf.mxu1  ;;  %v1486_v53 = vadd.f32 %v3429_v47, %v3195_v31 }
  0xfe   : > { %v3197_v20 = vpop.f32.mrf.mxu0 }
  0xff   : > { %v1496_v38 = vpop.f32.mrf.mxu1  ;;  %v3198_v54 = vadd.f32 %v3197_v20, %v3196_v45 }
 0x100   : > { %v3199_v43 = vpop.f32.mrf.mxu0 }
 0x101   : > { %v3437_v50 = vpop.f32.mrf.mxu1  ;;  %v4616_v22 = vadd.f32 %v3430_v55, %v3198_v54 }
 0x102   : > { %v3200_v58 = vpop.f32.mrf.mxu0 }
 0x103   : > { %v1509_v30 = vpop.f32.mrf.mxu1  ;;  %v3201_v42 = vadd.f32 %v3200_v58, %v3199_v43 }
 0x104   : > { %v3202_v48 = vpop.f32.mrf.mxu0 }
 0x105   : > { %v3438_v27 = vpop.f32.mrf.mxu1  ;;  %v1494_v44 = vadd.f32 %v3201_v42, %v1493_v61 }
 0x106   : > { %v3203_v39 = vpop.f32.mrf.mxu0 }
 0x107   : > { %v3204_v5 = vadd.f32 %v3203_v39, %v3202_v48  ;;  %v1512_v41 = vpop.f32.mrf.mxu1 }
 0x108   : > { %v3205_v18 = vpop.f32.mrf.mxu0 }
 0x109   : > { %v4618_v59 = vadd.f32 %v3204_v5, %v1496_v38 }
 0x10a   : > { %v3206_v2 = vpop.f32.mrf.mxu0 }
 0x10b   : > { %v3441_v46 = vpop.f32.mrf.mxu1  ;;  %v3207_v10 = vadd.f32 %v3206_v2, %v3205_v18 }
 0x10c   : > { %v3208_v33 = vpop.f32.mrf.mxu0 }
 0x10d   : > { %v1502_v13 = vadd.f32 %v3433_v28, %v3207_v10  ;;  %v1525_v29 = vpop.f32.mrf.mxu1 }
 0x10e   : > { %v3209_v8 = vpop.f32.mrf.mxu0 }
 0x10f   : > { %v3442_v52 = vpop.f32.mrf.mxu1  ;;  %v3210_v36 = vadd.f32 %v3209_v8, %v3208_v33 }
 0x110   : > { %v3211_v62 = vpop.f32.mrf.mxu0 }
 0x111   : > { %v4620_v6 = vadd.f32 %v3434_v26, %v3210_v36  ;;  %v1528_v9 = vpop.f32.mrf.mxu1 }
 0x112   : > { %v3212_v24 = vpop.f32.mrf.mxu0 }
 0x113   : > { %v3267_v34 = vpop.f32.mrf.mxu1  ;;  %v3213_v56 = vadd.f32 %v3212_v24, %v3211_v62 }
 0x114   : > { %v3214_v15 = vpop.f32.mrf.mxu0 }
 0x115   : > { %v1510_v60 = vadd.f32 %v3213_v56, %v1509_v30  ;;  %v3268_v0 = vpop.f32.mrf.mxu1 }
 0x116   : > { %v3269_v40 = vadd.f32 %v3268_v0, %v3267_v34  ;;  %v3215_v21 = vpop.f32.mrf.mxu0 }
 0x117   : > { %v4622_v3 = vpop.f32.mrf.mxu1  ;;  %v3216_v25 = vadd.f32 %v3215_v21, %v3214_v15 }
 0x118   : > { %v3217_v32 = vpop.f32.mrf.mxu0  ;;  %v4624_v35 = vadd.f32 %v3269_v40, %v1478_v16 }
 0x119   : > { %v4626_v4 = vadd.f32 %v3216_v25, %v1512_v41  ;;  %v4628_v1 = vpop.f32.mrf.mxu1 }
 0x11a   : > { %v3218_v11 = vpop.f32.mrf.mxu0 }
 0x11b   : > { %v3273_v37 = vpop.f32.mrf.mxu1  ;;  %v3219_v47 = vadd.f32 %v3218_v11, %v3217_v32 }
 0x11c   : > { %v3220_v49 = vpop.f32.mrf.mxu0 }
 0x11d   : > { %v1518_v57 = vadd.f32 %v3437_v50, %v3219_v47  ;;  %v3274_v63 = vpop.f32.mrf.mxu1 }
 0x11e   : > { %v3275_v14 = vadd.f32 %v3274_v63, %v3273_v37  ;;  %v3221_v55 = vpop.f32.mrf.mxu0 }
 0x11f   : > { %v4630_v51 = vpop.f32.mrf.mxu1  ;;  %v3222_v17 = vadd.f32 %v3221_v55, %v3220_v49 }
 0x120   : > { %v3223_v7 = vpop.f32.mrf.mxu0  ;;  %v4632_v23 = vadd.f32 %v3275_v14, %v1486_v53 }
 0x121   : > { %v4634_v16 = vadd.f32 %v3438_v27, %v3222_v17  ;;  %v4636_v28 = vpop.f32.mrf.mxu1 }
 0x122   : > { %v3224_v19 = vpop.f32.mrf.mxu0 }
 0x123   : > { %v3279_v61 = vpop.f32.mrf.mxu1  ;;  %v3225_v31 = vadd.f32 %v3224_v19, %v3223_v7 }
 0x124   : > { %v3226_v45 = vpop.f32.mrf.mxu0 }
 0x125   : > { %v1526_v26 = vadd.f32 %v3225_v31, %v1525_v29  ;;  %v3280_v20 = vpop.f32.mrf.mxu1 }
 0x126   : > { %v3281_v38 = vadd.f32 %v3280_v20, %v3279_v61  ;;  %v3227_v54 = vpop.f32.mrf.mxu0 }
 0x127   : > { %v4638_v43 = vpop.f32.mrf.mxu1  ;;  %v3228_v50 = vadd.f32 %v3227_v54, %v3226_v45 }
 0x128   : > { %v3229_v58 = vpop.f32.mrf.mxu0  ;;  %v4640_v30 = vadd.f32 %v3281_v38, %v1494_v44 }
 0x129   : > { %v4642_v53 = vadd.f32 %v3228_v50, %v1528_v9  ;;  %v4644_v42 = vpop.f32.mrf.mxu1 }
 0x12a   : > { %v3230_v48 = vpop.f32.mrf.mxu0 }
 0x12b   : > { %v3285_v27 = vpop.f32.mrf.mxu1  ;;  %v3231_v39 = vadd.f32 %v3230_v48, %v3229_v58 }
 0x12c   : > { %v3232_v5 = vpop.f32.mrf.mxu0 }
 0x12d   : > { %v1534_v41 = vadd.f32 %v3441_v46, %v3231_v39  ;;  %v3286_v18 = vpop.f32.mrf.mxu1 }
 0x12e   : > { %v3287_v2 = vadd.f32 %v3286_v18, %v3285_v27  ;;  %v3233_v10 = vpop.f32.mrf.mxu0 }
 0x12f   : > { %v4646_v33 = vpop.f32.mrf.mxu1  ;;  %v3234_v29 = vadd.f32 %v3233_v10, %v3232_v5 }
 0x130   : > { %v4648_v8 = vpop.f32.mrf.mxu0  ;;  %v4650_v36 = vadd.f32 %v3287_v2, %v1502_v13 }
 0x131   : > { %v1537_v44 = vadd.f32 %v3442_v52, %v3234_v29  ;;  %v4652_v62 = vpop.f32.mrf.mxu1 }
 0x132   : > { %v1815_v9 = vpop.f32.mrf.mxu0 }
 0x133   : > { %v3291_v24 = vpop.f32.mrf.mxu1 }
 0x134   : > { %v4654_v34 = vpop.f32.mrf.mxu0 }
 0x135   : > { %v3292_v56 = vpop.f32.mrf.mxu1 }
 0x136   : > { %v3293_v15 = vadd.f32 %v3292_v56, %v3291_v24  ;;  %v1818_v46 = vpop.f32.mrf.mxu0 }
 0x137   : > { %v4656_v0 = vpop.f32.mrf.mxu1 }
 0x138   : > { %v4658_v40 = vpop.f32.mrf.mxu0  ;;  %v4660_v21 = vadd.f32 %v3293_v15, %v1510_v60 }
 0x139   : > { %v4662_v25 = vpop.f32.mrf.mxu1 }
 0x13a   : > { %v4664_v13 = vpop.f32.mrf.mxu0 }
 0x13b   : > { %v3297_v52 = vpop.f32.mrf.mxu1 }
 0x13c   : > { %v4666_v32 = vpop.f32.mrf.mxu0 }
 0x13d   : > { %v3298_v11 = vpop.f32.mrf.mxu1 }
 0x13e   : > { %v3299_v37 = vadd.f32 %v3298_v11, %v3297_v52  ;;  %v4668_v47 = vpop.f32.mrf.mxu0  ;;  %v3272_v11 = vadd.f32 %v4628_v1, %v4622_v3 }
 0x13f   : > { %v4670_v49 = vpop.f32.mrf.mxu1 }
 0x140   : > { %v1759_v63 = vadd.f32 %v3299_v37, %v1518_v57  ;;  %v3469_v14 = vpop.f32.mrf.mxu0 }
 0x141   : > { %v4672_v55 = vpop.f32.mrf.mxu1 }
 0x142   : > { %v4674_v17 = vadd.f32 %v3469_v14, %v1759_v63  ;;  %v4676_v60 = vpop.f32.mrf.mxu0 }
 0x143   : > { %v3303_v7 = vpop.f32.mrf.mxu1 }
 0x144   : > { %v4678_v19 = vpop.f32.mrf.mxu0 }
 0x145   : > { %v3304_v61 = vpop.f32.mrf.mxu1 }
 0x146   : > { %v3305_v31 = vadd.f32 %v3304_v61, %v3303_v7  ;;  %v4680_v45 = vpop.f32.mrf.mxu0  ;;  %v1816_v7 = vadd.f32 %v1815_v9, %v4624_v35  ;;  %v3278_v9 = vadd.f32 %v4636_v28, %v4630_v51 }
 0x147   : > { %v4682_v20 = vpop.f32.mrf.mxu1 }
 0x148   : > { %v3473_v38 = vpop.f32.mrf.mxu0  ;;  %v4684_v54 = vadd.f32 %v3305_v31, %v1526_v26 }
 0x149   : > { %v4686_v57 = vpop.f32.mrf.mxu1 }
 0x14a   : > { %v4688_v50 = vpop.f32.mrf.mxu0 }
 0x14b   : > { %v3309_v58 = vpop.f32.mrf.mxu1 }
 0x14c   : > { %v3474_v48 = vpop.f32.mrf.mxu0 }
 0x14d   : > { %v3310_v27 = vpop.f32.mrf.mxu1 }
 0x14e   : > { %v3311_v39 = vadd.f32 %v3310_v27, %v3309_v58  ;;  %v4690_v5 = vpop.f32.mrf.mxu0 }
 0x14f   : > { %v3312_v18 = vpop.f32.mrf.mxu1 }
 0x150   : > { %v1775_v2 = vadd.f32 %v3311_v39, %v1534_v41  ;;  %v3347_v10 = vpop.f32.mrf.mxu0 }
 0x151   : > { %v3313_v29 = vpop.f32.mrf.mxu1 }
 0x152   : > { %v4692_v24 = vadd.f32 %v3473_v38, %v1775_v2  ;;  %v3314_v56 = vadd.f32 %v3313_v29, %v3312_v18  ;;  %v3348_v15 = vpop.f32.mrf.mxu0  ;;  %v1722_v38 = vadd.f32 %v3272_v11, %v4614_v12  ;;  %v4703_v2 = vld [vmem:[%s4799_s6] ss:$0 sm:$0xff] }
 0x153   : > { %v3349_v26 = vadd.f32 %v3348_v15, %v3347_v10  ;;  %v3493_v52 = vpop.f32.mrf.mxu1  ;;  %v1824_v15 = vadd.f32 %v4648_v8, %v4632_v23 }
 0x154   : > { %v1778_v37 = vadd.f32 %v3314_v56, %v1537_v44  ;;  %v3350_v63 = vpop.f32.mrf.mxu0  ;;  %v1819_v1 = vadd.f32 %v1818_v46, %v1722_v38  ;;  %v1730_v46 = vadd.f32 %v3278_v9, %v4616_v22 }
 0x155   : > { %v2306_v14 = vpop.f32.mrf.mxu1 }
 0x156   : > { %v4697_v61 = vadd.f32 %v3474_v48, %v1778_v37  ;;  %v2307_v31 = vadd.f32 %v3349_v26, %v2306_v14  ;;  %v3351_v41 = vpop.f32.mrf.mxu0 }
 0x157   : > { %v3352_v58 = vadd.f32 %v3351_v41, %v3350_v63  ;;  %v3494_v27 = vpop.f32.mrf.mxu1 }
 0x158   : > { %v2369_v39 = vadd.f32 %v2307_v31, %v1816_v7  ;;  %v3353_v18 = vpop.f32.mrf.mxu0 }
 0x159   : > { %v2309_v3 = vpop.f32.mrf.mxu1 }
 0x15a   : > { %v2310_v44 = vadd.f32 %v3352_v58, %v2309_v3  ;;  %v3354_v35 = vpop.f32.mrf.mxu0  ;;  %v2392_v29 = vadd.f32 %v4703_v2, %v2369_v39 }
 0x15b   : > { %v3355_v48 = vadd.f32 %v3354_v35, %v3353_v18  ;;  %v3497_v10 = vpop.f32.mrf.mxu1  ;;  %v3284_v35 = vadd.f32 %v4644_v42, %v4638_v43 }
 0x15c   : > { %v2370_v12 = vadd.f32 %v2310_v44, %v1819_v1  ;;  %v3356_v56 = vpop.f32.mrf.mxu0  ;;  %v2509_v14 = vmul.f32 %v2392_v29, %v2392_v29 }
 0x15d   : > { %v2315_v26 = vadd.f32 %v3493_v52, %v3355_v48  ;;  %v2322_v63 = vpop.f32.mrf.mxu1  ;;  %v1827_v52 = vadd.f32 %v4654_v34, %v1730_v46  ;;  %v1832_v48 = vadd.f32 %v4664_v13, %v4640_v30  ;;  %v1738_v46 = vadd.f32 %v3284_v35, %v4618_v59 }
 0x15e   : > { %v2393_v11 = vadd.f32 %v4703_v2, %v2370_v12  ;;  %v3357_v37 = vpop.f32.mrf.mxu0  ;;  %v1840_v59 = vadd.f32 %v4658_v40, %v4650_v36 }
 0x15f   : > { %v2371_v51 = vadd.f32 %v2315_v26, %v1824_v15  ;;  %v3358_v28 = vadd.f32 %v3357_v37, %v3356_v56  ;;  %v3498_v44 = vpop.f32.mrf.mxu1  ;;  %v1835_v30 = vadd.f32 %v4668_v47, %v1738_v46 }
 0x160   : > { %v3120_v7 = vpack.c.bf16 %v2393_v11, %v2392_v29  ;;  %v2488_v31 = vadd.f32 %v2393_v11, %v2392_v29  ;;  %v2510_v23 = vmul.f32 %v2393_v11, %v2393_v11  ;;  %v3359_v8 = vpop.f32.mrf.mxu0 }
 0x161   : > { %v2394_v41 = vadd.f32 %v4703_v2, %v2371_v51  ;;  %v2318_v22 = vadd.f32 %v3494_v27, %v3358_v28  ;;  %v2325_v37 = vpop.f32.mrf.mxu1 }
 0x162   : > { %3121 = vst [vmem:[%s4717_s12] sm:$0xff] %v3120_v7   ;;  %v2525_v58 = vadd.f32 %v2510_v23, %v2509_v14  ;;  %v3360_v38 = vpop.f32.mrf.mxu0 }
 0x163   : > { %v2489_v39 = vadd.f32 %v2488_v31, %v2394_v41  ;;  %v2511_v18 = vmul.f32 %v2394_v41, %v2394_v41  ;;  %v2372_v3 = vadd.f32 %v2318_v22, %v1827_v52  ;;  %v3361_v1 = vadd.f32 %v3360_v38, %v3359_v8  ;;  %v3501_v8 = vpop.f32.mrf.mxu1 }
 0x164   : > { %v3362_v9 = vpop.f32.mrf.mxu0 }
 0x165   : > { %v2526_v34 = vadd.f32 %v2525_v58, %v2511_v18  ;;  %v2395_v29 = vadd.f32 %v4703_v2, %v2372_v3  ;;  %v2323_v27 = vadd.f32 %v3361_v1, %v2322_v63  ;;  %v3290_v63 = vadd.f32 %v4652_v62, %v4646_v33  ;;  %v2338_v33 = vpop.f32.mrf.mxu1 }
 0x166   : > { %v3363_v12 = vpop.f32.mrf.mxu0 }
 0x167   : > { %v3125_v56 = vpack.c.bf16 %v2395_v29, %v2394_v41  ;;  %v2512_v15 = vmul.f32 %v2395_v29, %v2395_v29  ;;  %v2373_v26 = vadd.f32 %v2323_v27, %v1832_v48  ;;  %v2490_v11 = vadd.f32 %v2489_v39, %v2395_v29 }
 0x168   : > { %v3364_v51 = vadd.f32 %v3363_v12, %v3362_v9  ;;  %v3365_v28 = vpop.f32.mrf.mxu0  ;;  %v1746_v39 = vadd.f32 %v3290_v63, %v4620_v6  ;;  %v3502_v6 = vpop.f32.mrf.mxu1 }
 0x169   : > { %3164 = vst [vmem:[%s4717_s12 + $0x8] sm:$0xff] %v3125_v56   ;;  %v2396_v43 = vadd.f32 %v4703_v2, %v2373_v26  ;;  %v2527_v42 = vadd.f32 %v2526_v34, %v2512_v15  ;;  %v3296_v15 = vadd.f32 %v4662_v25, %v4656_v0 }
 0x16a   : > { %v2326_v13 = vadd.f32 %v3364_v51, %v2325_v37  ;;  %v3366_v14 = vpop.f32.mrf.mxu0  ;;  %v1843_v48 = vadd.f32 %v4666_v32, %v1746_v39 }
 0x16b   : > { %v2491_v7 = vadd.f32 %v2490_v11, %v2396_v43  ;;  %v2513_v31 = vmul.f32 %v2396_v43, %v2396_v43  ;;  %v3367_v23 = vadd.f32 %v3366_v14, %v3365_v28  ;;  %v1848_v11 = vadd.f32 %v4676_v60, %v4660_v21 }
 0x16c   : > { %v2374_v52 = vadd.f32 %v2326_v13, %v1835_v30  ;;  %v3368_v41 = vpop.f32.mrf.mxu0  ;;  %v2341_v30 = vpop.f32.mrf.mxu1  ;;  %v1754_v13 = vadd.f32 %v3296_v15, %v4626_v4 }
 0x16d   : > { %v2528_v22 = vadd.f32 %v2527_v42, %v2513_v31  ;;  %v2331_v58 = vadd.f32 %v3497_v10, %v3367_v23  ;;  %v3302_v31 = vadd.f32 %v4672_v55, %v4670_v49 }
 0x16e   : > { %v2397_v38 = vadd.f32 %v4703_v2, %v2374_v52  ;;  %v3369_v47 = vpop.f32.mrf.mxu0  ;;  %v1851_v21 = vadd.f32 %v4680_v45, %v1754_v13 }
 0x16f   : > { %v2375_v18 = vadd.f32 %v2331_v58, %v1840_v59  ;;  %v3370_v3 = vadd.f32 %v3369_v47, %v3368_v41 }
 0x170   : > { %v3130_v62 = vpack.c.bf16 %v2397_v38, %v2396_v43  ;;  %v2492_v1 = vadd.f32 %v2491_v7, %v2397_v38  ;;  %v2514_v35 = vmul.f32 %v2397_v38, %v2397_v38  ;;  %v3371_v9 = vpop.f32.mrf.mxu0  ;;  %v3505_v38 = vpop.f32.mrf.mxu1 }
 0x171   : > { %v2398_v34 = vadd.f32 %v4703_v2, %v2375_v18  ;;  %v2334_v36 = vadd.f32 %v3498_v44, %v3370_v3  ;;  %v1762_v18 = vadd.f32 %v3302_v31, %v4634_v16 }
 0x172   : > { %3165 = vst [vmem:[%s4717_s12 + $0x10] sm:$0xff] %v3130_v62   ;;  %v2529_v40 = vadd.f32 %v2528_v22, %v2514_v35  ;;  %v3372_v10 = vpop.f32.mrf.mxu0 }
 0x173   : > { %v2493_v29 = vadd.f32 %v2492_v1, %v2398_v34  ;;  %v2515_v27 = vmul.f32 %v2398_v34, %v2398_v34  ;;  %v2376_v12 = vadd.f32 %v2334_v36, %v1843_v48  ;;  %v3373_v56 = vadd.f32 %v3372_v10, %v3371_v9  ;;  %v2354_v48 = vpop.f32.mrf.mxu1 }
 0x174   : > { %v3374_v26 = vpop.f32.mrf.mxu0  ;;  %v1859_v1 = vadd.f32 %v4678_v19, %v1762_v18 }
 0x175   : > { %v2530_v32 = vadd.f32 %v2529_v40, %v2515_v27  ;;  %v2399_v37 = vadd.f32 %v4703_v2, %v2376_v12  ;;  %v2339_v44 = vadd.f32 %v3373_v56, %v2338_v33  ;;  %v1864_v27 = vadd.f32 %v4688_v50, %v4684_v54 }
 0x176   : > { %v3375_v46 = vpop.f32.mrf.mxu0 }
 0x177   : > { %v3135_v51 = vpack.c.bf16 %v2399_v37, %v2398_v34  ;;  %v2516_v28 = vmul.f32 %v2399_v37, %v2399_v37  ;;  %v2377_v43 = vadd.f32 %v2339_v44, %v1848_v11  ;;  %v2494_v42 = vadd.f32 %v2493_v29, %v2399_v37 }
 0x178   : > { %v3376_v14 = vadd.f32 %v3375_v46, %v3374_v26  ;;  %v3377_v63 = vpop.f32.mrf.mxu0 }
 0x179   : > { %3166 = vst [vmem:[%s4717_s12 + $0x18] sm:$0xff] %v3135_v51   ;;  %v2400_v0 = vadd.f32 %v4703_v2, %v2377_v43  ;;  %v2531_v25 = vadd.f32 %v2530_v32, %v2516_v28 }
 0x17a   : > { %v2342_v60 = vadd.f32 %v3376_v14, %v2341_v30  ;;  %v3378_v7 = vpop.f32.mrf.mxu0 }
 0x17b   : > { %v2495_v23 = vadd.f32 %v2494_v42, %v2400_v0  ;;  %v2517_v52 = vmul.f32 %v2400_v0, %v2400_v0  ;;  %v3379_v41 = vadd.f32 %v3378_v7, %v3377_v63 }
 0x17c   : > { %v2378_v59 = vadd.f32 %v2342_v60, %v1851_v21  ;;  %v3380_v22 = vpop.f32.mrf.mxu0 }
 0x17d   : > { %v2532_v58 = vadd.f32 %v2531_v25, %v2517_v52  ;;  %v2347_v4 = vadd.f32 %v3501_v8, %v3379_v41 }
 0x17e   : > { %v2401_v47 = vadd.f32 %v4703_v2, %v2378_v59  ;;  %v3381_v39 = vpop.f32.mrf.mxu0 }
 0x17f   : > { %v2379_v45 = vadd.f32 %v2347_v4, %v4674_v17  ;;  %v3382_v3 = vadd.f32 %v3381_v39, %v3380_v22  ;;  %v3308_v17 = vadd.f32 %v4686_v57, %v4682_v20 }
 0x180   : > { %v3140_v33 = vpack.c.bf16 %v2401_v47, %v2400_v0  ;;  %v2496_v62 = vadd.f32 %v2495_v23, %v2401_v47  ;;  %v2518_v49 = vmul.f32 %v2401_v47, %v2401_v47  ;;  %v3383_v55 = vpop.f32.mrf.mxu0 }
 0x181   : > { %v2402_v35 = vadd.f32 %v4703_v2, %v2379_v45  ;;  %v2350_v9 = vadd.f32 %v3502_v6, %v3382_v3  ;;  %v3506_v6 = vpop.f32.mrf.mxu1  ;;  %v1770_v44 = vadd.f32 %v3308_v17, %v4642_v53 }
 0x182   : > { %3167 = vst [vmem:[%s4717_s12 + $0x20] sm:$0xff] %v3140_v33   ;;  %v2533_v8 = vadd.f32 %v2532_v58, %v2518_v49  ;;  %v3384_v34 = vpop.f32.mrf.mxu0 }
 0x183   : > { %v2497_v36 = vadd.f32 %v2496_v62, %v2402_v35  ;;  %v2519_v40 = vmul.f32 %v2402_v35, %v2402_v35  ;;  %v2380_v10 = vadd.f32 %v2350_v9, %v1859_v1  ;;  %v3385_v16 = vadd.f32 %v3384_v34, %v3383_v55  ;;  %v2357_v28 = vpop.f32.mrf.mxu1 }
 0x184   : > { %v3386_v29 = vpop.f32.mrf.mxu0  ;;  %v1867_v54 = vadd.f32 %v4690_v5, %v1770_v44 }
 0x185   : > { %v2534_v19 = vadd.f32 %v2533_v8, %v2519_v40  ;;  %v2403_v12 = vadd.f32 %v4703_v2, %v2380_v10  ;;  %v2355_v56 = vadd.f32 %v3385_v16, %v2354_v48 }
 0x186   : > { %v3387_v15 = vpop.f32.mrf.mxu0 }
 0x187   : > { %v3145_v26 = vpack.c.bf16 %v2403_v12, %v2402_v35  ;;  %v2520_v11 = vmul.f32 %v2403_v12, %v2403_v12  ;;  %v2381_v32 = vadd.f32 %v2355_v56, %v1864_v27  ;;  %v2498_v37 = vadd.f32 %v2497_v36, %v2403_v12 }
 0x188   : > { %v3388_v46 = vadd.f32 %v3387_v15, %v3386_v29  ;;  %v3389_v51 = vpop.f32.mrf.mxu0 }
 0x189   : > { %3168 = vst [vmem:[%s4717_s12 + $0x28] sm:$0xff] %v3145_v26   ;;  %v2404_v20 = vadd.f32 %v4703_v2, %v2381_v32  ;;  %v2535_v57 = vadd.f32 %v2534_v19, %v2520_v11 }
 0x18a   : > { %v2358_v50 = vadd.f32 %v3388_v46, %v2357_v28  ;;  %v3390_v43 = vpop.f32.mrf.mxu0 }
 0x18b   : > { %v2499_v42 = vadd.f32 %v2498_v37, %v2404_v20  ;;  %v2521_v30 = vmul.f32 %v2404_v20, %v2404_v20  ;;  %v3391_v13 = vadd.f32 %v3390_v43, %v3389_v51 }
 0x18c   : > { %v2382_v14 = vadd.f32 %v2358_v50, %v1867_v54  ;;  %v3392_v63 = vpop.f32.mrf.mxu0 }
 0x18d   : > { %v2536_v0 = vadd.f32 %v2535_v57, %v2521_v30  ;;  %v2363_v25 = vadd.f32 %v3505_v38, %v3391_v13 }
 0x18e   : > { %v2405_v53 = vadd.f32 %v4703_v2, %v2382_v14  ;;  %v3393_v21 = vpop.f32.mrf.mxu0 }
 0x18f   : > { %v2383_v60 = vadd.f32 %v2363_v25, %v4692_v24  ;;  %v3394_v7 = vadd.f32 %v3393_v21, %v3392_v63 }
 0x190   : > { %v3150_v31 = vpack.c.bf16 %v2405_v53, %v2404_v20  ;;  %v2500_v23 = vadd.f32 %v2499_v42, %v2405_v53  ;;  %v2522_v5 = vmul.f32 %v2405_v53, %v2405_v53 }
 0x191   : > { %v2406_v52 = vadd.f32 %v4703_v2, %v2383_v60  ;;  %v2366_v41 = vadd.f32 %v3506_v6, %v3394_v7 }
 0x192   : > { %3169 = vst [vmem:[%s4717_s12 + $0x30] sm:$0xff] %v3150_v31   ;;  %v2537_v59 = vadd.f32 %v2536_v0, %v2522_v5 }
 0x193   : > { %v2501_v22 = vadd.f32 %v2500_v23, %v2406_v52  ;;  %v2523_v58 = vmul.f32 %v2406_v52, %v2406_v52  ;;  %v2384_v4 = vadd.f32 %v2366_v41, %v4697_v61 }
 0x195   : > { %v2538_v38 = vadd.f32 %v2537_v59, %v2523_v58  ;;  %v2407_v47 = vadd.f32 %v4703_v2, %v2384_v4 }
 0x197   : > { %v3155_v24 = vpack.c.bf16 %v2407_v47, %v2406_v52  ;;  %v2502_v39 = vadd.f32 %v2501_v22, %v2407_v47  ;;  %v2524_v18 = vmul.f32 %v2407_v47, %v2407_v47 }
 0x199   : > { %3170 = vst [vmem:[%s4717_s12 + $0x38] sm:$0xff] %v3155_v24   ;;  %v2503_v45 = vrot.slane %v2502_v39, 4  ;;  %v2539_v3 = vadd.f32 %v2538_v38, %v2524_v18 }
 0x19b   : > { %v2504_v33 = vadd.f32 %v2503_v45, %v2502_v39  ;;  %v2540_v62 = vrot.slane %v2539_v3, 4 }
 0x19d   : > { %v2505_v49 = vrot.slane %v2504_v33, 2  ;;  %v2541_v55 = vadd.f32 %v2540_v62, %v2539_v3 }
 0x19f   : > { %v2506_v1 = vadd.f32 %v2505_v49, %v2504_v33  ;;  %v2542_v35 = vrot.slane %v2541_v55, 2 }
 0x1a1   : > { %v2507_v9 = vrot.slane %v2506_v1, 1  ;;  %v2543_v48 = vadd.f32 %v2542_v35, %v2541_v55 }
 0x1a3   : > { %v2544_v61 = vrot.slane %v2543_v48, 1  ;;  %v2508_v2 = vadd.f32 %v2507_v9, %v2506_v1 }
 0x1a5   : > { %v2545_v8 = vadd.f32 %v2544_v61, %v2543_v48 }
 0x1a7   : > { %v2547_v34 = vsel %vm2546_vm10, %v2508_v2, %v2545_v8 }
 0x1a8   : > { %2548 = vst [vmem:[%s491_s21] sm:$0x3] %v2547_v34 }
 0x1a9 PF: > { %s19_s9 = sadd.s32 1, %s3668_s9   ;;  %s4874_s27 = smov %s3660_s29 }
 0x1aa   : > { %p16_p13 = scmp.ge.s32.totalorder %s19_s9, 6   ;;  %s4875_s28 = smov %s3664_s30 }
 0x1ab   : > { %s4876_s29 = smov %s4879_s10  ;;  %s4877_s30 = smov %s4883_s11 }
 0x1ac   :  { %18 = sbr.rel (!%p16_p13) target bundleno = 3 (0x3), region = 98 }

</bundles_post_ra>
